<compile_context>
chip_gen: v7x
topology: tpu7x:2x2x1
jax: 0.10.0
libtpu: 0.0.40
codegen_flags: <defaults>
</compile_context>

<pallas_src>
import jax
import jax.numpy as jnp
from jax.experimental import pallas as pl
from jax.experimental.pallas import tpu as pltpu


def _round_up(x, m):
    return (x + m - 1) // m * m


def _fast_sigmoid(x):
    # sigmoid(x) == 0.5 * (tanh(0.5 * x) + 1): one EUP op instead of exp + reciprocal.
    return 0.5 * jnp.tanh(0.5 * x) + 0.5


# ---------------------------------------------------------------------------
# Pallas kernel.  One grid step = BLOCK_T timesteps for one batch block.
#   blkmax_ref : (num_batch_blocks,) i32 in SMEM (scalar prefetch)  - per-block max len
#   emb_ref    : (BLOCK_T, BLOCK_B, E) bf16  - time-major embeddings (streamed)
#   len_ref    : (BLOCK_B, 1) i32            - per-row sequence lengths
#   wih_ref    : (E, 4H) bf16  (resident)    - fused input weights  [i|f|g|o]
#   whh_ref    : (H, 4H) f32   (resident)    - fused recurrent weights
#   bias_ref   : (1, 4H) f32   (resident)    - b_ih + b_hh
#   out_ref    : (BLOCK_B, BLOCK_T, H) f32   - batch-first outputs
#   hid_ref / cell_ref : (1, BLOCK_B, H) f32 - VMEM-resident carried state
#   pre_ref    : (BLOCK_T*BLOCK_B, 4H) f32 scratch - block pre-activations
# ---------------------------------------------------------------------------
def _lstm_block_kernel(blkmax_ref,
                       emb_ref, len_ref, wih_ref, whh_ref, bias_ref,
                       out_ref, hid_ref, cell_ref,
                       pre_ref):
    bb = pl.program_id(0)                   # batch-block index ("parallel")
    tb = pl.program_id(1)                   # time-block index  ("arbitrary")
    block_t, block_b, _ = emb_ref.shape
    H = hid_ref.shape[-1]
    t0 = tb * block_t

    @pl.when(tb == 0)
    def _init():
        hid_ref[...] = jnp.zeros_like(hid_ref)
        cell_ref[...] = jnp.zeros_like(cell_ref)

    block_active = t0 < blkmax_ref[bb]

    # Fully padded time block: no compute, just zero the output tile.  The resident
    # hid/cell blocks keep their last valid value and are flushed to HBM at the end.
    @pl.when(jnp.logical_not(block_active))
    def _skip():
        out_ref[...] = jnp.zeros_like(out_ref)

    @pl.when(block_active)
    def _run():
        lengths = len_ref[...]                                   # (BLOCK_B, 1) i32
        w_hh = whh_ref[...]                                      # (H, 4H) f32

        # Fused, hoisted input projection: ONE batched MXU matmul per grid step.
        x = emb_ref[...].reshape(block_t * block_b, emb_ref.shape[-1])    # bf16
        pre_ref[...] = (jnp.dot(x, wih_ref[...],
                                preferred_element_type=jnp.float32)
                        + bias_ref[...])                         # (BT*BB, 4H) f32

        def step(k, carry):
            h, c = carry                                         # (BLOCK_B, H) f32
            row = pl.multiple_of(k * block_b, block_b)
            # Recurrent matmul kept in f32 (no bf16 error feedback into the state).
            gates = (pre_ref[pl.ds(row, block_b), :]
                     + jnp.dot(h, w_hh, preferred_element_type=jnp.float32))
            i_g = _fast_sigmoid(gates[:, 0 * H:1 * H])
            f_g = _fast_sigmoid(gates[:, 1 * H:2 * H])
            g_g = jnp.tanh(gates[:, 2 * H:3 * H])
            o_g = _fast_sigmoid(gates[:, 3 * H:4 * H])

            c_new = f_g * c + i_g * g_g
            h_new = o_g * jnp.tanh(c_new)

            valid = (t0 + k) < lengths                           # (BLOCK_B, 1)
            # TODO(synk): if the vst slot ever binds (v5e), buffer the block in VMEM
            # and emit one full-tile store per grid step instead of per-timestep.
            out_ref[:, pl.ds(k, 1), :] = jnp.where(valid, h_new, 0.0)[:, None, :]
            return jnp.where(valid, h_new, h), jnp.where(valid, c_new, c)

        h, c = jax.lax.fori_loop(0, block_t, step,
                                 (hid_ref[0], cell_ref[0]),
                                 unroll=min(8, block_t))
        hid_ref[0] = h
        cell_ref[0] = c


def _lstm_recurrence(blk_max, emb_tm, lens_2d, w_ih_bf16, w_hh_f32, bias_2d,
                     *, block_t, block_b):
    """emb_tm: (Tp, Bp, E) bf16 time-major embeddings; lens_2d: (Bp, 1) i32;
    blk_max: (Bp//block_b,) i32.  Returns (Bp, Tp, H) outputs, (1, Bp, H) h, c."""
    Tp, Bp, E = emb_tm.shape
    G = w_hh_f32.shape[1]
    H = G // 4

    grid = (Bp // block_b, Tp // block_t)          # (batch blocks, time blocks)

    grid_spec = pltpu.PrefetchScalarGridSpec(
        num_scalar_prefetch=1,
        grid=grid,
        in_specs=[
            pl.BlockSpec((block_t, block_b, E), lambda b, t, bm: (t, b, 0)),  # emb
            pl.BlockSpec((block_b, 1), lambda b, t, bm: (b, 0)),              # lengths
            pl.BlockSpec((E, G), lambda b, t, bm: (0, 0)),                    # W_ih
            pl.BlockSpec((H, G), lambda b, t, bm: (0, 0)),                    # W_hh
            pl.BlockSpec((1, G), lambda b, t, bm: (0, 0)),                    # bias
        ],
        out_specs=[
            pl.BlockSpec((block_b, block_t, H), lambda b, t, bm: (b, t, 0)),  # outputs
            pl.BlockSpec((1, block_b, H), lambda b, t, bm: (0, b, 0)),        # hidden
            pl.BlockSpec((1, block_b, H), lambda b, t, bm: (0, b, 0)),        # cell
        ],
        scratch_shapes=[pltpu.VMEM((block_t * block_b, G), jnp.float32)],
    )

    # Rough VMEM footprint (double-buffered streams + resident weights + scratch).
    vmem_est = (2 * block_t * block_b * E * 2          # emb bf16, x2 buffers
                + 2 * block_b * block_t * H * 4        # out f32, x2 buffers
                + E * G * 2 + H * G * 4 + G * 4        # resident W_ih / W_hh / bias
                + block_t * block_b * G * 4            # pre scratch
                + 4 * block_b * H * 4)                 # hid/cell buffers
    cparams = dict(dimension_semantics=("parallel", "arbitrary"))
    if vmem_est > 12 * 1024 * 1024:
        # Raise the scoped VMEM limit only when the conservative default (v5e: 16 MiB,
        # v6e/v7x: 32 MiB) would be tight; keep headroom below v7x's 64 MiB physical.
        cparams["vmem_limit_bytes"] = int(min(vmem_est * 2, 48 * 1024 * 1024))

    return pl.pallas_call(
        _lstm_block_kernel,
        grid_spec=grid_spec,
        out_shape=(
            jax.ShapeDtypeStruct((Bp, Tp, H), jnp.float32),
            jax.ShapeDtypeStruct((1, Bp, H), jnp.float32),
            jax.ShapeDtypeStruct((1, Bp, H), jnp.float32),
        ),
        compiler_params=pltpu.CompilerParams(**cparams),
    )(blk_max, emb_tm, lens_2d, w_ih_bf16, w_hh_f32, bias_2d)


# ---------------------------------------------------------------------------
# Encoder forward: embedding gather (time-major, bf16) in XLA; the entire LSTM
# (input projection + recurrence) runs in the Pallas kernel.  pack_padded_sequence /
# pad_packed_sequence semantics are reproduced by per-timestep validity masking.
# ---------------------------------------------------------------------------
@jax.jit
def encoder_forward(tokens, lengths, params):
    emb_tbl = params["embedding"]            # (V, E) f32
    w_ih = params["w_ih"]                    # (E, 4H) fused, gate order [i|f|g|o]
    w_hh = params["w_hh"]                    # (H, 4H)
    bias = params["b"]                       # (4H,)  = b_ih + b_hh

    B, T = tokens.shape
    H = w_hh.shape[0]

    # Block sizes: time blocked to amortize per-grid-step overhead; batch padded to a
    # sublane-friendly multiple (16) and grown toward the MXU M width for big batches.
    BLOCK_T = min(32, _round_up(T, 8))
    BLOCK_B = min(128, _round_up(B, 16))
    Tp = _round_up(T, BLOCK_T)
    Bp = _round_up(B, BLOCK_B)

    tokens_p = jnp.zeros((Bp, Tp), tokens.dtype).at[:B, :T].set(tokens)
    # Padded batch rows get length 0 -> they never update state and emit zeros.
    lens_p = jnp.zeros((Bp, 1), jnp.int32).at[:B, 0].set(lengths.astype(jnp.int32))
    # Per-batch-block max length (SMEM scalar prefetch) -> skip fully padded time blocks.
    blk_max = jnp.max(lens_p.reshape(Bp // BLOCK_B, BLOCK_B), axis=1).astype(jnp.int32)

    # Embedding gathered directly time-major and streamed in bf16 (halves HBM traffic).
    emb_tm = emb_tbl.astype(jnp.bfloat16)[tokens_p.T]            # (Tp, Bp, E) bf16

    outs, hidden, cell = _lstm_recurrence(
        blk_max, emb_tm, lens_p,
        w_ih.astype(jnp.bfloat16),                  # input projection in bf16 (non-recurrent)
        w_hh.astype(jnp.float32),                   # recurrent matmul in f32 (no drift)
        bias.reshape(1, -1).astype(jnp.float32),
        block_t=BLOCK_T, block_b=BLOCK_B)

    # Kernel emits batch-first; just drop padding.
    return outs[:B, :T], hidden[:, :B], cell[:, :B]
    # TODO(synk): pack_padded_sequence(enforce_sorted=False) internal reordering is a
    # no-op on the returned tensors; the validity masking above reproduces its semantics.


# ---------------------------------------------------------------------------
# Pure-JAX f32 reference (same semantics) for correctness checking.
# ---------------------------------------------------------------------------
def encoder_ref(tokens, lengths, params):
    emb = params["embedding"][tokens]            # (B, T, E)
    w_ih, w_hh, b = params["w_ih"], params["w_hh"], params["b"]
    B, T, _ = emb.shape
    H = w_hh.shape[0]

    def step(carry, xs):
        h, c = carry
        x_t, t = xs
        g = x_t @ w_ih + h @ w_hh + b
        i_g = jax.nn.sigmoid(g[:, 0 * H:1 * H])
        f_g = jax.nn.sigmoid(g[:, 1 * H:2 * H])
        g_g = jnp.tanh(g[:, 2 * H:3 * H])
        o_g = jax.nn.sigmoid(g[:, 3 * H:4 * H])
        c_new = f_g * c + i_g * g_g
        h_new = o_g * jnp.tanh(c_new)
        valid = (t < lengths)[:, None]
        h2 = jnp.where(valid, h_new, h)
        c2 = jnp.where(valid, c_new, c)
        return (h2, c2), jnp.where(valid, h_new, 0.0)

    init = (jnp.zeros((B, H), jnp.float32), jnp.zeros((B, H), jnp.float32))
    (hT, cT), outs = jax.lax.scan(
        step, init, (jnp.transpose(emb, (1, 0, 2)), jnp.arange(T)))
    return jnp.transpose(outs, (1, 0, 2)), hT[None], cT[None]


if __name__ == "__main__":
    # Small shapes consistent with the module's config (embedding_dim=256, hidden_dim=128);
    # vocab reduced for a compact self-contained test.
    VOCAB, E, H = 1000, 256, 128
    B, T = 2, 8

    key = jax.random.PRNGKey(0)
    k_emb, k_wih, k_whh, k_bih, k_bhh, k_tok = jax.random.split(key, 6)
    bound = 1.0 / jnp.sqrt(H)
    params = {
        "embedding": jax.random.normal(k_emb, (VOCAB, E), jnp.float32),
        # PyTorch weight_ih_l0 (4H, E) / weight_hh_l0 (4H, H), gate order [i, f, g, o],
        # stored pre-transposed & gate-fused as (E, 4H) / (H, 4H); biases pre-summed.
        "w_ih": jax.random.uniform(k_wih, (E, 4 * H), jnp.float32, -bound, bound),
        "w_hh": jax.random.uniform(k_whh, (H, 4 * H), jnp.float32, -bound, bound),
        "b": (jax.random.uniform(k_bih, (4 * H,), jnp.float32, -bound, bound)
              + jax.random.uniform(k_bhh, (4 * H,), jnp.float32, -bound, bound)),
    }

    tokens = jax.random.randint(k_tok, (B, T), 1, VOCAB, dtype=jnp.int32)
    lengths = jnp.array([T, 5], dtype=jnp.int32)   # max length == T (pad_packed_sequence)

    enc_out, hidden, cell = encoder_forward(tokens, lengths, params)
    jax.block_until_ready((enc_out, hidden, cell))

    ref_out, ref_h, ref_c = encoder_ref(tokens, lengths, params)
    assert enc_out.shape == (B, T, H)
    assert hidden.shape == (1, B, H) and cell.shape == (1, B, H)
    # bf16 input projection with f32 accumulation, f32 recurrence -> small deviation.
    assert jnp.allclose(enc_out, ref_out, atol=3e-2, rtol=3e-2)
    assert jnp.allclose(hidden, ref_h, atol=3e-2, rtol=3e-2)
    assert jnp.allclose(cell, ref_c, atol=3e-2, rtol=3e-2)

    print("KERNEL_OK")
</pallas_src>

<mosaic_0001>
module attributes {stable_mosaic.version = 11 : i64} {
  func.func @_lstm_block_kernel(%arg0: i32, %arg1: i32, %arg2: memref<1xi32, #tpu.memory_space<smem>>, %arg3: memref<8x16x256xbf16, #tpu.memory_space<vmem>>, %arg4: memref<16x1xi32, #tpu.memory_space<vmem>>, %arg5: memref<256x512xbf16, #tpu.memory_space<vmem>>, %arg6: memref<128x512xf32, #tpu.memory_space<vmem>>, %arg7: memref<1x512xf32, #tpu.memory_space<vmem>>, %arg8: memref<16x8x128xf32, #tpu.memory_space<vmem>>, %arg9: memref<1x16x128xf32, #tpu.memory_space<vmem>>, %arg10: memref<1x16x128xf32, #tpu.memory_space<vmem>>, %arg11: memref<128x512xf32, #tpu.memory_space<vmem>>) attributes {dimension_semantics = [#tpu.dimension_semantics<parallel>, #tpu.dimension_semantics<arbitrary>], iteration_bounds = array<i64: 1, 1>, scalar_prefetch = 1 : i64, scratch_operands = 1 : i64, tpu.core_type = #tpu.core_type<tc>, window_params = [{transform_indices = @transform_0, window_bounds = array<i64: 8, 16, 256>}, {transform_indices = @transform_1, window_bounds = array<i64: 16, 1>}, {pipeline_mode = #tpu.pipeline_mode<synchronous>, transform_indices = @transform_2, window_bounds = array<i64: 256, 512>}, {pipeline_mode = #tpu.pipeline_mode<synchronous>, transform_indices = @transform_3, window_bounds = array<i64: 128, 512>}, {pipeline_mode = #tpu.pipeline_mode<synchronous>, transform_indices = @transform_4, window_bounds = array<i64: 1, 512>}, {transform_indices = @transform_5, window_bounds = array<i64: 16, 8, 128>}, {transform_indices = @transform_6, window_bounds = array<i64: 1, 16, 128>}, {transform_indices = @transform_7, window_bounds = array<i64: 1, 16, 128>}]} {
    %c8_i32 = arith.constant 8 : i32
    %0 = arith.muli %arg1, %c8_i32 : i32
    %c0_i32 = arith.constant 0 : i32
    %1 = arith.cmpi eq, %arg1, %c0_i32 : i32
    %2 = arith.extui %1 : i1 to i32
    %c0_i32_0 = arith.constant 0 : i32
    %3 = arith.cmpi ne, %2, %c0_i32_0 : i32
    scf.if %3 {
      %cst = arith.constant 0.000000e+00 : f32
      %12 = vector.broadcast %cst : f32 to vector<1x16x128xf32>
      %c0 = arith.constant 0 : index
      %c0_3 = arith.constant 0 : index
      %c0_4 = arith.constant 0 : index
      %13 = vector.load %arg9[%c0, %c0_3, %c0_4] : memref<1x16x128xf32, #tpu.memory_space<vmem>>, vector<1x16x128xf32>
      tpu.vector_store %arg9[%c0, %c0_3, %c0_4], %12 {strides = array<i32>} : memref<1x16x128xf32, #tpu.memory_space<vmem>>, vector<1x16x128xf32>,
      %cst_5 = arith.constant 0.000000e+00 : f32
      %14 = vector.broadcast %cst_5 : f32 to vector<1x16x128xf32>
      %c0_6 = arith.constant 0 : index
      %c0_7 = arith.constant 0 : index
      %c0_8 = arith.constant 0 : index
      %15 = vector.load %arg10[%c0_6, %c0_7, %c0_8] : memref<1x16x128xf32, #tpu.memory_space<vmem>>, vector<1x16x128xf32>
      tpu.vector_store %arg10[%c0_6, %c0_7, %c0_8], %14 {strides = array<i32>} : memref<1x16x128xf32, #tpu.memory_space<vmem>>, vector<1x16x128xf32>,
    } else {
    }
    %4 = arith.index_cast %arg0 : i32 to index
    %5 = memref.load %arg2[%4] : memref<1xi32, #tpu.memory_space<smem>>
    %6 = arith.cmpi slt, %0, %5 : i32
    %true = arith.constant true
    %7 = arith.xori %6, %true : i1
    %8 = arith.extui %7 : i1 to i32
    %c0_i32_1 = arith.constant 0 : i32
    %9 = arith.cmpi ne, %8, %c0_i32_1 : i32
    scf.if %9 {
      %cst = arith.constant 0.000000e+00 : f32
      %12 = vector.broadcast %cst : f32 to vector<16x8x128xf32>
      %c0 = arith.constant 0 : index
      %c0_3 = arith.constant 0 : index
      %c0_4 = arith.constant 0 : index
      %13 = vector.load %arg8[%c0, %c0_3, %c0_4] : memref<16x8x128xf32, #tpu.memory_space<vmem>>, vector<16x8x128xf32>
      tpu.vector_store %arg8[%c0, %c0_3, %c0_4], %12 {strides = array<i32>} : memref<16x8x128xf32, #tpu.memory_space<vmem>>, vector<16x8x128xf32>,
    } else {
    }
    %10 = arith.extui %6 : i1 to i32
    %c0_i32_2 = arith.constant 0 : i32
    %11 = arith.cmpi ne, %10, %c0_i32_2 : i32
    scf.if %11 {
      %c0 = arith.constant 0 : index
      %c0_3 = arith.constant 0 : index
      %12 = vector.load %arg4[%c0, %c0_3] : memref<16x1xi32, #tpu.memory_space<vmem>>, vector<16x1xi32>
      %c0_4 = arith.constant 0 : index
      %c0_5 = arith.constant 0 : index
      %13 = vector.load %arg6[%c0_4, %c0_5] : memref<128x512xf32, #tpu.memory_space<vmem>>, vector<128x512xf32>
      %c0_6 = arith.constant 0 : index
      %c0_7 = arith.constant 0 : index
      %c0_8 = arith.constant 0 : index
      %14 = vector.load %arg3[%c0_6, %c0_7, %c0_8] : memref<8x16x256xbf16, #tpu.memory_space<vmem>>, vector<8x16x256xbf16>
      %15 = vector.shape_cast %14 : vector<8x16x256xbf16> to vector<128x256xbf16>
      %c0_9 = arith.constant 0 : index
      %c0_10 = arith.constant 0 : index
      %16 = vector.load %arg5[%c0_9, %c0_10] : memref<256x512xbf16, #tpu.memory_space<vmem>>, vector<256x512xbf16>
      %cst = arith.constant dense<0.000000e+00> : vector<128x512xf32>
      %17 = tpu.matmul %15, %16, %cst {dimension_numbers = #tpu.dot_dimension_numbers<[1], [0], [0], [1], [0, 0, 1, 1], [], []>} : vector<128x256xbf16>, vector<256x512xbf16>, vector<128x512xf32> -> vector<128x512xf32>
      %c0_11 = arith.constant 0 : index
      %c0_12 = arith.constant 0 : index
      %18 = vector.load %arg7[%c0_11, %c0_12] : memref<1x512xf32, #tpu.memory_space<vmem>>, vector<1x512xf32>
      %19 = vector.broadcast %18 : vector<1x512xf32> to vector<128x512xf32>
      %20 = arith.addf %17, %19 : vector<128x512xf32>
      %c0_13 = arith.constant 0 : index
      %c0_14 = arith.constant 0 : index
      %21 = vector.load %arg11[%c0_13, %c0_14] : memref<128x512xf32, #tpu.memory_space<vmem>>, vector<128x512xf32>
      tpu.vector_store %arg11[%c0_13, %c0_14], %20 {strides = array<i32>} : memref<128x512xf32, #tpu.memory_space<vmem>>, vector<128x512xf32>,
      %c0_15 = arith.constant 0 : index
      %c0_16 = arith.constant 0 : index
      %c0_17 = arith.constant 0 : index
      %22 = vector.load %arg9[%c0_15, %c0_16, %c0_17] : memref<1x16x128xf32, #tpu.memory_space<vmem>>, vector<1x16x128xf32>
      %23 = vector.shape_cast %22 : vector<1x16x128xf32> to vector<16x128xf32>
      %c0_18 = arith.constant 0 : index
      %c0_19 = arith.constant 0 : index
      %c0_20 = arith.constant 0 : index
      %24 = vector.load %arg10[%c0_18, %c0_19, %c0_20] : memref<1x16x128xf32, #tpu.memory_space<vmem>>, vector<1x16x128xf32>
      %25 = vector.shape_cast %24 : vector<1x16x128xf32> to vector<16x128xf32>
      %c0_i32_21 = arith.constant 0 : i32
      %c16_i32 = arith.constant 16 : i32
      %26 = arith.muli %c0_i32_21, %c16_i32 : i32
      %27 = tpu.assume_multiple %26, 16 : i32
      %28 = arith.index_cast %27 : i32 to index
      %c0_22 = arith.constant 0 : index
      %29 = vector.load %arg11[%28, %c0_22] : memref<128x512xf32, #tpu.memory_space<vmem>>, vector<16x512xf32>
      %cst_23 = arith.constant dense<0.000000e+00> : vector<16x512xf32>
      %30 = tpu.matmul %23, %13, %cst_23 {dimension_numbers = #tpu.dot_dimension_numbers<[1], [0], [0], [1], [0, 0, 1, 1], [], []>} : vector<16x128xf32>, vector<128x512xf32>, vector<16x512xf32> -> vector<16x512xf32>
      %31 = arith.addf %29, %30 : vector<16x512xf32>
      %32 = vector.extract_strided_slice %31 {offsets = [0, 0], sizes = [16, 128], strides = [1, 1]} : vector<16x512xf32> to vector<16x128xf32>
      %cst_24 = arith.constant 5.000000e-01 : f32
      %33 = vector.broadcast %cst_24 : f32 to vector<16x128xf32>
      %34 = arith.mulf %33, %32 : vector<16x128xf32>
      %35 = math.tanh %34 : vector<16x128xf32>
      %cst_25 = arith.constant 5.000000e-01 : f32
      %36 = vector.broadcast %cst_25 : f32 to vector<16x128xf32>
      %37 = arith.mulf %36, %35 : vector<16x128xf32>
      %cst_26 = arith.constant 5.000000e-01 : f32
      %38 = vector.broadcast %cst_26 : f32 to vector<16x128xf32>
      %39 = arith.addf %37, %38 : vector<16x128xf32>
      %40 = vector.extract_strided_slice %31 {offsets = [0, 128], sizes = [16, 128], strides = [1, 1]} : vector<16x512xf32> to vector<16x128xf32>
      %cst_27 = arith.constant 5.000000e-01 : f32
      %41 = vector.broadcast %cst_27 : f32 to vector<16x128xf32>
      %42 = arith.mulf %41, %40 : vector<16x128xf32>
      %43 = math.tanh %42 : vector<16x128xf32>
      %cst_28 = arith.constant 5.000000e-01 : f32
      %44 = vector.broadcast %cst_28 : f32 to vector<16x128xf32>
      %45 = arith.mulf %44, %43 : vector<16x128xf32>
      %cst_29 = arith.constant 5.000000e-01 : f32
      %46 = vector.broadcast %cst_29 : f32 to vector<16x128xf32>
      %47 = arith.addf %45, %46 : vector<16x128xf32>
      %48 = vector.extract_strided_slice %31 {offsets = [0, 256], sizes = [16, 128], strides = [1, 1]} : vector<16x512xf32> to vector<16x128xf32>
      %49 = math.tanh %48 : vector<16x128xf32>
      %50 = vector.extract_strided_slice %31 {offsets = [0, 384], sizes = [16, 128], strides = [1, 1]} : vector<16x512xf32> to vector<16x128xf32>
      %cst_30 = arith.constant 5.000000e-01 : f32
      %51 = vector.broadcast %cst_30 : f32 to vector<16x128xf32>
      %52 = arith.mulf %51, %50 : vector<16x128xf32>
      %53 = math.tanh %52 : vector<16x128xf32>
      %cst_31 = arith.constant 5.000000e-01 : f32
      %54 = vector.broadcast %cst_31 : f32 to vector<16x128xf32>
      %55 = arith.mulf %54, %53 : vector<16x128xf32>
      %cst_32 = arith.constant 5.000000e-01 : f32
      %56 = vector.broadcast %cst_32 : f32 to vector<16x128xf32>
      %57 = arith.addf %55, %56 : vector<16x128xf32>
      %58 = arith.mulf %47, %25 : vector<16x128xf32>
      %59 = arith.mulf %39, %49 : vector<16x128xf32>
      %60 = arith.addf %58, %59 : vector<16x128xf32>
      %61 = math.tanh %60 : vector<16x128xf32>
      %62 = arith.mulf %57, %61 : vector<16x128xf32>
      %63 = arith.addi %0, %c0_i32_21 : i32
      %64 = vector.broadcast %63 : i32 to vector<16x1xi32>
      %65 = arith.cmpi slt, %64, %12 : vector<16x1xi32>
      %cst_33 = arith.constant 0.000000e+00 : f32
      %66 = vector.shape_cast %65 : vector<16x1xi1> to vector<16x1xi1>
      %67 = vector.broadcast %66 : vector<16x1xi1> to vector<16x128xi1>
      %68 = vector.broadcast %cst_33 : f32 to vector<16x128xf32>
      %69 = arith.select %67, %62, %68 : vector<16x128xi1>, vector<16x128xf32>
      %70 = vector.shape_cast %69 : vector<16x128xf32> to vector<16x1x128xf32>
      %c0_34 = arith.constant 0 : index
      %71 = arith.index_cast %c0_i32_21 : i32 to index
      %c0_35 = arith.constant 0 : index
      %72 = vector.load %arg8[%c0_34, %71, %c0_35] : memref<16x8x128xf32, #tpu.memory_space<vmem>>, vector<16x1x128xf32>
      tpu.vector_store %arg8[%c0_34, %71, %c0_35], %70 {strides = array<i32>} : memref<16x8x128xf32, #tpu.memory_space<vmem>>, vector<16x1x128xf32>,
      %73 = vector.shape_cast %65 : vector<16x1xi1> to vector<16x1xi1>
      %74 = vector.broadcast %73 : vector<16x1xi1> to vector<16x128xi1>
      %75 = arith.select %74, %62, %23 : vector<16x128xi1>, vector<16x128xf32>
      %76 = vector.shape_cast %65 : vector<16x1xi1> to vector<16x1xi1>
      %77 = vector.broadcast %76 : vector<16x1xi1> to vector<16x128xi1>
      %78 = arith.select %77, %60, %25 : vector<16x128xi1>, vector<16x128xf32>
      %c1_i32 = arith.constant 1 : i32
      %c16_i32_36 = arith.constant 16 : i32
      %79 = arith.muli %c1_i32, %c16_i32_36 : i32
      %80 = tpu.assume_multiple %79, 16 : i32
      %81 = arith.index_cast %80 : i32 to index
      %c0_37 = arith.constant 0 : index
      %82 = vector.load %arg11[%81, %c0_37] : memref<128x512xf32, #tpu.memory_space<vmem>>, vector<16x512xf32>
      %cst_38 = arith.constant dense<0.000000e+00> : vector<16x512xf32>
      %83 = tpu.matmul %75, %13, %cst_38 {dimension_numbers = #tpu.dot_dimension_numbers<[1], [0], [0], [1], [0, 0, 1, 1], [], []>} : vector<16x128xf32>, vector<128x512xf32>, vector<16x512xf32> -> vector<16x512xf32>
      %84 = arith.addf %82, %83 : vector<16x512xf32>
      %85 = vector.extract_strided_slice %84 {offsets = [0, 0], sizes = [16, 128], strides = [1, 1]} : vector<16x512xf32> to vector<16x128xf32>
      %cst_39 = arith.constant 5.000000e-01 : f32
      %86 = vector.broadcast %cst_39 : f32 to vector<16x128xf32>
      %87 = arith.mulf %86, %85 : vector<16x128xf32>
      %88 = math.tanh %87 : vector<16x128xf32>
      %cst_40 = arith.constant 5.000000e-01 : f32
      %89 = vector.broadcast %cst_40 : f32 to vector<16x128xf32>
      %90 = arith.mulf %89, %88 : vector<16x128xf32>
      %cst_41 = arith.constant 5.000000e-01 : f32
      %91 = vector.broadcast %cst_41 : f32 to vector<16x128xf32>
      %92 = arith.addf %90, %91 : vector<16x128xf32>
      %93 = vector.extract_strided_slice %84 {offsets = [0, 128], sizes = [16, 128], strides = [1, 1]} : vector<16x512xf32> to vector<16x128xf32>
      %cst_42 = arith.constant 5.000000e-01 : f32
      %94 = vector.broadcast %cst_42 : f32 to vector<16x128xf32>
      %95 = arith.mulf %94, %93 : vector<16x128xf32>
      %96 = math.tanh %95 : vector<16x128xf32>
      %cst_43 = arith.constant 5.000000e-01 : f32
      %97 = vector.broadcast %cst_43 : f32 to vector<16x128xf32>
      %98 = arith.mulf %97, %96 : vector<16x128xf32>
      %cst_44 = arith.constant 5.000000e-01 : f32
      %99 = vector.broadcast %cst_44 : f32 to vector<16x128xf32>
      %100 = arith.addf %98, %99 : vector<16x128xf32>
      %101 = vector.extract_strided_slice %84 {offsets = [0, 256], sizes = [16, 128], strides = [1, 1]} : vector<16x512xf32> to vector<16x128xf32>
      %102 = math.tanh %101 : vector<16x128xf32>
      %103 = vector.extract_strided_slice %84 {offsets = [0, 384], sizes = [16, 128], strides = [1, 1]} : vector<16x512xf32> to vector<16x128xf32>
      %cst_45 = arith.constant 5.000000e-01 : f32
      %104 = vector.broadcast %cst_45 : f32 to vector<16x128xf32>
      %105 = arith.mulf %104, %103 : vector<16x128xf32>
      %106 = math.tanh %105 : vector<16x128xf32>
      %cst_46 = arith.constant 5.000000e-01 : f32
      %107 = vector.broadcast %cst_46 : f32 to vector<16x128xf32>
      %108 = arith.mulf %107, %106 : vector<16x128xf32>
      %cst_47 = arith.constant 5.000000e-01 : f32
      %109 = vector.broadcast %cst_47 : f32 to vector<16x128xf32>
      %110 = arith.addf %108, %109 : vector<16x128xf32>
      %111 = arith.mulf %100, %78 : vector<16x128xf32>
      %112 = arith.mulf %92, %102 : vector<16x128xf32>
      %113 = arith.addf %111, %112 : vector<16x128xf32>
      %114 = math.tanh %113 : vector<16x128xf32>
      %115 = arith.mulf %110, %114 : vector<16x128xf32>
      %116 = arith.addi %0, %c1_i32 : i32
      %117 = vector.broadcast %116 : i32 to vector<16x1xi32>
      %118 = arith.cmpi slt, %117, %12 : vector<16x1xi32>
      %cst_48 = arith.constant 0.000000e+00 : f32
      %119 = vector.shape_cast %118 : vector<16x1xi1> to vector<16x1xi1>
      %120 = vector.broadcast %119 : vector<16x1xi1> to vector<16x128xi1>
      %121 = vector.broadcast %cst_48 : f32 to vector<16x128xf32>
      %122 = arith.select %120, %115, %121 : vector<16x128xi1>, vector<16x128xf32>
      %123 = vector.shape_cast %122 : vector<16x128xf32> to vector<16x1x128xf32>
      %c0_49 = arith.constant 0 : index
      %124 = arith.index_cast %c1_i32 : i32 to index
      %c0_50 = arith.constant 0 : index
      %125 = vector.load %arg8[%c0_49, %124, %c0_50] : memref<16x8x128xf32, #tpu.memory_space<vmem>>, vector<16x1x128xf32>
      tpu.vector_store %arg8[%c0_49, %124, %c0_50], %123 {strides = array<i32>} : memref<16x8x128xf32, #tpu.memory_space<vmem>>, vector<16x1x128xf32>,
      %126 = vector.shape_cast %118 : vector<16x1xi1> to vector<16x1xi1>
      %127 = vector.broadcast %126 : vector<16x1xi1> to vector<16x128xi1>
      %128 = arith.select %127, %115, %75 : vector<16x128xi1>, vector<16x128xf32>
      %129 = vector.shape_cast %118 : vector<16x1xi1> to vector<16x1xi1>
      %130 = vector.broadcast %129 : vector<16x1xi1> to vector<16x128xi1>
      %131 = arith.select %130, %113, %78 : vector<16x128xi1>, vector<16x128xf32>
      %c2_i32 = arith.constant 2 : i32
      %c16_i32_51 = arith.constant 16 : i32
      %132 = arith.muli %c2_i32, %c16_i32_51 : i32
      %133 = tpu.assume_multiple %132, 16 : i32
      %134 = arith.index_cast %133 : i32 to index
      %c0_52 = arith.constant 0 : index
      %135 = vector.load %arg11[%134, %c0_52] : memref<128x512xf32, #tpu.memory_space<vmem>>, vector<16x512xf32>
      %cst_53 = arith.constant dense<0.000000e+00> : vector<16x512xf32>
      %136 = tpu.matmul %128, %13, %cst_53 {dimension_numbers = #tpu.dot_dimension_numbers<[1], [0], [0], [1], [0, 0, 1, 1], [], []>} : vector<16x128xf32>, vector<128x512xf32>, vector<16x512xf32> -> vector<16x512xf32>
      %137 = arith.addf %135, %136 : vector<16x512xf32>
      %138 = vector.extract_strided_slice %137 {offsets = [0, 0], sizes = [16, 128], strides = [1, 1]} : vector<16x512xf32> to vector<16x128xf32>
      %cst_54 = arith.constant 5.000000e-01 : f32
      %139 = vector.broadcast %cst_54 : f32 to vector<16x128xf32>
      %140 = arith.mulf %139, %138 : vector<16x128xf32>
      %141 = math.tanh %140 : vector<16x128xf32>
      %cst_55 = arith.constant 5.000000e-01 : f32
      %142 = vector.broadcast %cst_55 : f32 to vector<16x128xf32>
      %143 = arith.mulf %142, %141 : vector<16x128xf32>
      %cst_56 = arith.constant 5.000000e-01 : f32
      %144 = vector.broadcast %cst_56 : f32 to vector<16x128xf32>
      %145 = arith.addf %143, %144 : vector<16x128xf32>
      %146 = vector.extract_strided_slice %137 {offsets = [0, 128], sizes = [16, 128], strides = [1, 1]} : vector<16x512xf32> to vector<16x128xf32>
      %cst_57 = arith.constant 5.000000e-01 : f32
      %147 = vector.broadcast %cst_57 : f32 to vector<16x128xf32>
      %148 = arith.mulf %147, %146 : vector<16x128xf32>
      %149 = math.tanh %148 : vector<16x128xf32>
      %cst_58 = arith.constant 5.000000e-01 : f32
      %150 = vector.broadcast %cst_58 : f32 to vector<16x128xf32>
      %151 = arith.mulf %150, %149 : vector<16x128xf32>
      %cst_59 = arith.constant 5.000000e-01 : f32
      %152 = vector.broadcast %cst_59 : f32 to vector<16x128xf32>
      %153 = arith.addf %151, %152 : vector<16x128xf32>
      %154 = vector.extract_strided_slice %137 {offsets = [0, 256], sizes = [16, 128], strides = [1, 1]} : vector<16x512xf32> to vector<16x128xf32>
      %155 = math.tanh %154 : vector<16x128xf32>
      %156 = vector.extract_strided_slice %137 {offsets = [0, 384], sizes = [16, 128], strides = [1, 1]} : vector<16x512xf32> to vector<16x128xf32>
      %cst_60 = arith.constant 5.000000e-01 : f32
      %157 = vector.broadcast %cst_60 : f32 to vector<16x128xf32>
      %158 = arith.mulf %157, %156 : vector<16x128xf32>
      %159 = math.tanh %158 : vector<16x128xf32>
      %cst_61 = arith.constant 5.000000e-01 : f32
      %160 = vector.broadcast %cst_61 : f32 to vector<16x128xf32>
      %161 = arith.mulf %160, %159 : vector<16x128xf32>
      %cst_62 = arith.constant 5.000000e-01 : f32
      %162 = vector.broadcast %cst_62 : f32 to vector<16x128xf32>
      %163 = arith.addf %161, %162 : vector<16x128xf32>
      %164 = arith.mulf %153, %131 : vector<16x128xf32>
      %165 = arith.mulf %145, %155 : vector<16x128xf32>
      %166 = arith.addf %164, %165 : vector<16x128xf32>
      %167 = math.tanh %166 : vector<16x128xf32>
      %168 = arith.mulf %163, %167 : vector<16x128xf32>
      %169 = arith.addi %0, %c2_i32 : i32
      %170 = vector.broadcast %169 : i32 to vector<16x1xi32>
      %171 = arith.cmpi slt, %170, %12 : vector<16x1xi32>
      %cst_63 = arith.constant 0.000000e+00 : f32
      %172 = vector.shape_cast %171 : vector<16x1xi1> to vector<16x1xi1>
      %173 = vector.broadcast %172 : vector<16x1xi1> to vector<16x128xi1>
      %174 = vector.broadcast %cst_63 : f32 to vector<16x128xf32>
      %175 = arith.select %173, %168, %174 : vector<16x128xi1>, vector<16x128xf32>
      %176 = vector.shape_cast %175 : vector<16x128xf32> to vector<16x1x128xf32>
      %c0_64 = arith.constant 0 : index
      %177 = arith.index_cast %c2_i32 : i32 to index
      %c0_65 = arith.constant 0 : index
      %178 = vector.load %arg8[%c0_64, %177, %c0_65] : memref<16x8x128xf32, #tpu.memory_space<vmem>>, vector<16x1x128xf32>
      tpu.vector_store %arg8[%c0_64, %177, %c0_65], %176 {strides = array<i32>} : memref<16x8x128xf32, #tpu.memory_space<vmem>>, vector<16x1x128xf32>,
      %179 = vector.shape_cast %171 : vector<16x1xi1> to vector<16x1xi1>
      %180 = vector.broadcast %179 : vector<16x1xi1> to vector<16x128xi1>
      %181 = arith.select %180, %168, %128 : vector<16x128xi1>, vector<16x128xf32>
      %182 = vector.shape_cast %171 : vector<16x1xi1> to vector<16x1xi1>
      %183 = vector.broadcast %182 : vector<16x1xi1> to vector<16x128xi1>
      %184 = arith.select %183, %166, %131 : vector<16x128xi1>, vector<16x128xf32>
      %c3_i32 = arith.constant 3 : i32
      %c16_i32_66 = arith.constant 16 : i32
      %185 = arith.muli %c3_i32, %c16_i32_66 : i32
      %186 = tpu.assume_multiple %185, 16 : i32
      %187 = arith.index_cast %186 : i32 to index
      %c0_67 = arith.constant 0 : index
      %188 = vector.load %arg11[%187, %c0_67] : memref<128x512xf32, #tpu.memory_space<vmem>>, vector<16x512xf32>
      %cst_68 = arith.constant dense<0.000000e+00> : vector<16x512xf32>
      %189 = tpu.matmul %181, %13, %cst_68 {dimension_numbers = #tpu.dot_dimension_numbers<[1], [0], [0], [1], [0, 0, 1, 1], [], []>} : vector<16x128xf32>, vector<128x512xf32>, vector<16x512xf32> -> vector<16x512xf32>
      %190 = arith.addf %188, %189 : vector<16x512xf32>
      %191 = vector.extract_strided_slice %190 {offsets = [0, 0], sizes = [16, 128], strides = [1, 1]} : vector<16x512xf32> to vector<16x128xf32>
      %cst_69 = arith.constant 5.000000e-01 : f32
      %192 = vector.broadcast %cst_69 : f32 to vector<16x128xf32>
      %193 = arith.mulf %192, %191 : vector<16x128xf32>
      %194 = math.tanh %193 : vector<16x128xf32>
      %cst_70 = arith.constant 5.000000e-01 : f32
      %195 = vector.broadcast %cst_70 : f32 to vector<16x128xf32>
      %196 = arith.mulf %195, %194 : vector<16x128xf32>
      %cst_71 = arith.constant 5.000000e-01 : f32
      %197 = vector.broadcast %cst_71 : f32 to vector<16x128xf32>
      %198 = arith.addf %196, %197 : vector<16x128xf32>
      %199 = vector.extract_strided_slice %190 {offsets = [0, 128], sizes = [16, 128], strides = [1, 1]} : vector<16x512xf32> to vector<16x128xf32>
      %cst_72 = arith.constant 5.000000e-01 : f32
      %200 = vector.broadcast %cst_72 : f32 to vector<16x128xf32>
      %201 = arith.mulf %200, %199 : vector<16x128xf32>
      %202 = math.tanh %201 : vector<16x128xf32>
      %cst_73 = arith.constant 5.000000e-01 : f32
      %203 = vector.broadcast %cst_73 : f32 to vector<16x128xf32>
      %204 = arith.mulf %203, %202 : vector<16x128xf32>
      %cst_74 = arith.constant 5.000000e-01 : f32
      %205 = vector.broadcast %cst_74 : f32 to vector<16x128xf32>
      %206 = arith.addf %204, %205 : vector<16x128xf32>
      %207 = vector.extract_strided_slice %190 {offsets = [0, 256], sizes = [16, 128], strides = [1, 1]} : vector<16x512xf32> to vector<16x128xf32>
      %208 = math.tanh %207 : vector<16x128xf32>
      %209 = vector.extract_strided_slice %190 {offsets = [0, 384], sizes = [16, 128], strides = [1, 1]} : vector<16x512xf32> to vector<16x128xf32>
      %cst_75 = arith.constant 5.000000e-01 : f32
      %210 = vector.broadcast %cst_75 : f32 to vector<16x128xf32>
      %211 = arith.mulf %210, %209 : vector<16x128xf32>
      %212 = math.tanh %211 : vector<16x128xf32>
      %cst_76 = arith.constant 5.000000e-01 : f32
      %213 = vector.broadcast %cst_76 : f32 to vector<16x128xf32>
      %214 = arith.mulf %213, %212 : vector<16x128xf32>
      %cst_77 = arith.constant 5.000000e-01 : f32
      %215 = vector.broadcast %cst_77 : f32 to vector<16x128xf32>
      %216 = arith.addf %214, %215 : vector<16x128xf32>
      %217 = arith.mulf %206, %184 : vector<16x128xf32>
      %218 = arith.mulf %198, %208 : vector<16x128xf32>
      %219 = arith.addf %217, %218 : vector<16x128xf32>
      %220 = math.tanh %219 : vector<16x128xf32>
      %221 = arith.mulf %216, %220 : vector<16x128xf32>
      %222 = arith.addi %0, %c3_i32 : i32
      %223 = vector.broadcast %222 : i32 to vector<16x1xi32>
      %224 = arith.cmpi slt, %223, %12 : vector<16x1xi32>
      %cst_78 = arith.constant 0.000000e+00 : f32
      %225 = vector.shape_cast %224 : vector<16x1xi1> to vector<16x1xi1>
      %226 = vector.broadcast %225 : vector<16x1xi1> to vector<16x128xi1>
      %227 = vector.broadcast %cst_78 : f32 to vector<16x128xf32>
      %228 = arith.select %226, %221, %227 : vector<16x128xi1>, vector<16x128xf32>
      %229 = vector.shape_cast %228 : vector<16x128xf32> to vector<16x1x128xf32>
      %c0_79 = arith.constant 0 : index
      %230 = arith.index_cast %c3_i32 : i32 to index
      %c0_80 = arith.constant 0 : index
      %231 = vector.load %arg8[%c0_79, %230, %c0_80] : memref<16x8x128xf32, #tpu.memory_space<vmem>>, vector<16x1x128xf32>
      tpu.vector_store %arg8[%c0_79, %230, %c0_80], %229 {strides = array<i32>} : memref<16x8x128xf32, #tpu.memory_space<vmem>>, vector<16x1x128xf32>,
      %232 = vector.shape_cast %224 : vector<16x1xi1> to vector<16x1xi1>
      %233 = vector.broadcast %232 : vector<16x1xi1> to vector<16x128xi1>
      %234 = arith.select %233, %221, %181 : vector<16x128xi1>, vector<16x128xf32>
      %235 = vector.shape_cast %224 : vector<16x1xi1> to vector<16x1xi1>
      %236 = vector.broadcast %235 : vector<16x1xi1> to vector<16x128xi1>
      %237 = arith.select %236, %219, %184 : vector<16x128xi1>, vector<16x128xf32>
      %c4_i32 = arith.constant 4 : i32
      %c16_i32_81 = arith.constant 16 : i32
      %238 = arith.muli %c4_i32, %c16_i32_81 : i32
      %239 = tpu.assume_multiple %238, 16 : i32
      %240 = arith.index_cast %239 : i32 to index
      %c0_82 = arith.constant 0 : index
      %241 = vector.load %arg11[%240, %c0_82] : memref<128x512xf32, #tpu.memory_space<vmem>>, vector<16x512xf32>
      %cst_83 = arith.constant dense<0.000000e+00> : vector<16x512xf32>
      %242 = tpu.matmul %234, %13, %cst_83 {dimension_numbers = #tpu.dot_dimension_numbers<[1], [0], [0], [1], [0, 0, 1, 1], [], []>} : vector<16x128xf32>, vector<128x512xf32>, vector<16x512xf32> -> vector<16x512xf32>
      %243 = arith.addf %241, %242 : vector<16x512xf32>
      %244 = vector.extract_strided_slice %243 {offsets = [0, 0], sizes = [16, 128], strides = [1, 1]} : vector<16x512xf32> to vector<16x128xf32>
      %cst_84 = arith.constant 5.000000e-01 : f32
      %245 = vector.broadcast %cst_84 : f32 to vector<16x128xf32>
      %246 = arith.mulf %245, %244 : vector<16x128xf32>
      %247 = math.tanh %246 : vector<16x128xf32>
      %cst_85 = arith.constant 5.000000e-01 : f32
      %248 = vector.broadcast %cst_85 : f32 to vector<16x128xf32>
      %249 = arith.mulf %248, %247 : vector<16x128xf32>
      %cst_86 = arith.constant 5.000000e-01 : f32
      %250 = vector.broadcast %cst_86 : f32 to vector<16x128xf32>
      %251 = arith.addf %249, %250 : vector<16x128xf32>
      %252 = vector.extract_strided_slice %243 {offsets = [0, 128], sizes = [16, 128], strides = [1, 1]} : vector<16x512xf32> to vector<16x128xf32>
      %cst_87 = arith.constant 5.000000e-01 : f32
      %253 = vector.broadcast %cst_87 : f32 to vector<16x128xf32>
      %254 = arith.mulf %253, %252 : vector<16x128xf32>
      %255 = math.tanh %254 : vector<16x128xf32>
      %cst_88 = arith.constant 5.000000e-01 : f32
      %256 = vector.broadcast %cst_88 : f32 to vector<16x128xf32>
      %257 = arith.mulf %256, %255 : vector<16x128xf32>
      %cst_89 = arith.constant 5.000000e-01 : f32
      %258 = vector.broadcast %cst_89 : f32 to vector<16x128xf32>
      %259 = arith.addf %257, %258 : vector<16x128xf32>
      %260 = vector.extract_strided_slice %243 {offsets = [0, 256], sizes = [16, 128], strides = [1, 1]} : vector<16x512xf32> to vector<16x128xf32>
      %261 = math.tanh %260 : vector<16x128xf32>
      %262 = vector.extract_strided_slice %243 {offsets = [0, 384], sizes = [16, 128], strides = [1, 1]} : vector<16x512xf32> to vector<16x128xf32>
      %cst_90 = arith.constant 5.000000e-01 : f32
      %263 = vector.broadcast %cst_90 : f32 to vector<16x128xf32>
      %264 = arith.mulf %263, %262 : vector<16x128xf32>
      %265 = math.tanh %264 : vector<16x128xf32>
      %cst_91 = arith.constant 5.000000e-01 : f32
      %266 = vector.broadcast %cst_91 : f32 to vector<16x128xf32>
      %267 = arith.mulf %266, %265 : vector<16x128xf32>
      %cst_92 = arith.constant 5.000000e-01 : f32
      %268 = vector.broadcast %cst_92 : f32 to vector<16x128xf32>
      %269 = arith.addf %267, %268 : vector<16x128xf32>
      %270 = arith.mulf %259, %237 : vector<16x128xf32>
      %271 = arith.mulf %251, %261 : vector<16x128xf32>
      %272 = arith.addf %270, %271 : vector<16x128xf32>
      %273 = math.tanh %272 : vector<16x128xf32>
      %274 = arith.mulf %269, %273 : vector<16x128xf32>
      %275 = arith.addi %0, %c4_i32 : i32
      %276 = vector.broadcast %275 : i32 to vector<16x1xi32>
      %277 = arith.cmpi slt, %276, %12 : vector<16x1xi32>
      %cst_93 = arith.constant 0.000000e+00 : f32
      %278 = vector.shape_cast %277 : vector<16x1xi1> to vector<16x1xi1>
      %279 = vector.broadcast %278 : vector<16x1xi1> to vector<16x128xi1>
      %280 = vector.broadcast %cst_93 : f32 to vector<16x128xf32>
      %281 = arith.select %279, %274, %280 : vector<16x128xi1>, vector<16x128xf32>
      %282 = vector.shape_cast %281 : vector<16x128xf32> to vector<16x1x128xf32>
      %c0_94 = arith.constant 0 : index
      %283 = arith.index_cast %c4_i32 : i32 to index
      %c0_95 = arith.constant 0 : index
      %284 = vector.load %arg8[%c0_94, %283, %c0_95] : memref<16x8x128xf32, #tpu.memory_space<vmem>>, vector<16x1x128xf32>
      tpu.vector_store %arg8[%c0_94, %283, %c0_95], %282 {strides = array<i32>} : memref<16x8x128xf32, #tpu.memory_space<vmem>>, vector<16x1x128xf32>,
      %285 = vector.shape_cast %277 : vector<16x1xi1> to vector<16x1xi1>
      %286 = vector.broadcast %285 : vector<16x1xi1> to vector<16x128xi1>
      %287 = arith.select %286, %274, %234 : vector<16x128xi1>, vector<16x128xf32>
      %288 = vector.shape_cast %277 : vector<16x1xi1> to vector<16x1xi1>
      %289 = vector.broadcast %288 : vector<16x1xi1> to vector<16x128xi1>
      %290 = arith.select %289, %272, %237 : vector<16x128xi1>, vector<16x128xf32>
      %c5_i32 = arith.constant 5 : i32
      %c16_i32_96 = arith.constant 16 : i32
      %291 = arith.muli %c5_i32, %c16_i32_96 : i32
      %292 = tpu.assume_multiple %291, 16 : i32
      %293 = arith.index_cast %292 : i32 to index
      %c0_97 = arith.constant 0 : index
      %294 = vector.load %arg11[%293, %c0_97] : memref<128x512xf32, #tpu.memory_space<vmem>>, vector<16x512xf32>
      %cst_98 = arith.constant dense<0.000000e+00> : vector<16x512xf32>
      %295 = tpu.matmul %287, %13, %cst_98 {dimension_numbers = #tpu.dot_dimension_numbers<[1], [0], [0], [1], [0, 0, 1, 1], [], []>} : vector<16x128xf32>, vector<128x512xf32>, vector<16x512xf32> -> vector<16x512xf32>
      %296 = arith.addf %294, %295 : vector<16x512xf32>
      %297 = vector.extract_strided_slice %296 {offsets = [0, 0], sizes = [16, 128], strides = [1, 1]} : vector<16x512xf32> to vector<16x128xf32>
      %cst_99 = arith.constant 5.000000e-01 : f32
      %298 = vector.broadcast %cst_99 : f32 to vector<16x128xf32>
      %299 = arith.mulf %298, %297 : vector<16x128xf32>
      %300 = math.tanh %299 : vector<16x128xf32>
      %cst_100 = arith.constant 5.000000e-01 : f32
      %301 = vector.broadcast %cst_100 : f32 to vector<16x128xf32>
      %302 = arith.mulf %301, %300 : vector<16x128xf32>
      %cst_101 = arith.constant 5.000000e-01 : f32
      %303 = vector.broadcast %cst_101 : f32 to vector<16x128xf32>
      %304 = arith.addf %302, %303 : vector<16x128xf32>
      %305 = vector.extract_strided_slice %296 {offsets = [0, 128], sizes = [16, 128], strides = [1, 1]} : vector<16x512xf32> to vector<16x128xf32>
      %cst_102 = arith.constant 5.000000e-01 : f32
      %306 = vector.broadcast %cst_102 : f32 to vector<16x128xf32>
      %307 = arith.mulf %306, %305 : vector<16x128xf32>
      %308 = math.tanh %307 : vector<16x128xf32>
      %cst_103 = arith.constant 5.000000e-01 : f32
      %309 = vector.broadcast %cst_103 : f32 to vector<16x128xf32>
      %310 = arith.mulf %309, %308 : vector<16x128xf32>
      %cst_104 = arith.constant 5.000000e-01 : f32
      %311 = vector.broadcast %cst_104 : f32 to vector<16x128xf32>
      %312 = arith.addf %310, %311 : vector<16x128xf32>
      %313 = vector.extract_strided_slice %296 {offsets = [0, 256], sizes = [16, 128], strides = [1, 1]} : vector<16x512xf32> to vector<16x128xf32>
      %314 = math.tanh %313 : vector<16x128xf32>
      %315 = vector.extract_strided_slice %296 {offsets = [0, 384], sizes = [16, 128], strides = [1, 1]} : vector<16x512xf32> to vector<16x128xf32>
      %cst_105 = arith.constant 5.000000e-01 : f32
      %316 = vector.broadcast %cst_105 : f32 to vector<16x128xf32>
      %317 = arith.mulf %316, %315 : vector<16x128xf32>
      %318 = math.tanh %317 : vector<16x128xf32>
      %cst_106 = arith.constant 5.000000e-01 : f32
      %319 = vector.broadcast %cst_106 : f32 to vector<16x128xf32>
      %320 = arith.mulf %319, %318 : vector<16x128xf32>
      %cst_107 = arith.constant 5.000000e-01 : f32
      %321 = vector.broadcast %cst_107 : f32 to vector<16x128xf32>
      %322 = arith.addf %320, %321 : vector<16x128xf32>
      %323 = arith.mulf %312, %290 : vector<16x128xf32>
      %324 = arith.mulf %304, %314 : vector<16x128xf32>
      %325 = arith.addf %323, %324 : vector<16x128xf32>
      %326 = math.tanh %325 : vector<16x128xf32>
      %327 = arith.mulf %322, %326 : vector<16x128xf32>
      %328 = arith.addi %0, %c5_i32 : i32
      %329 = vector.broadcast %328 : i32 to vector<16x1xi32>
      %330 = arith.cmpi slt, %329, %12 : vector<16x1xi32>
      %cst_108 = arith.constant 0.000000e+00 : f32
      %331 = vector.shape_cast %330 : vector<16x1xi1> to vector<16x1xi1>
      %332 = vector.broadcast %331 : vector<16x1xi1> to vector<16x128xi1>
      %333 = vector.broadcast %cst_108 : f32 to vector<16x128xf32>
      %334 = arith.select %332, %327, %333 : vector<16x128xi1>, vector<16x128xf32>
      %335 = vector.shape_cast %334 : vector<16x128xf32> to vector<16x1x128xf32>
      %c0_109 = arith.constant 0 : index
      %336 = arith.index_cast %c5_i32 : i32 to index
      %c0_110 = arith.constant 0 : index
      %337 = vector.load %arg8[%c0_109, %336, %c0_110] : memref<16x8x128xf32, #tpu.memory_space<vmem>>, vector<16x1x128xf32>
      tpu.vector_store %arg8[%c0_109, %336, %c0_110], %335 {strides = array<i32>} : memref<16x8x128xf32, #tpu.memory_space<vmem>>, vector<16x1x128xf32>,
      %338 = vector.shape_cast %330 : vector<16x1xi1> to vector<16x1xi1>
      %339 = vector.broadcast %338 : vector<16x1xi1> to vector<16x128xi1>
      %340 = arith.select %339, %327, %287 : vector<16x128xi1>, vector<16x128xf32>
      %341 = vector.shape_cast %330 : vector<16x1xi1> to vector<16x1xi1>
      %342 = vector.broadcast %341 : vector<16x1xi1> to vector<16x128xi1>
      %343 = arith.select %342, %325, %290 : vector<16x128xi1>, vector<16x128xf32>
      %c6_i32 = arith.constant 6 : i32
      %c16_i32_111 = arith.constant 16 : i32
      %344 = arith.muli %c6_i32, %c16_i32_111 : i32
      %345 = tpu.assume_multiple %344, 16 : i32
      %346 = arith.index_cast %345 : i32 to index
      %c0_112 = arith.constant 0 : index
      %347 = vector.load %arg11[%346, %c0_112] : memref<128x512xf32, #tpu.memory_space<vmem>>, vector<16x512xf32>
      %cst_113 = arith.constant dense<0.000000e+00> : vector<16x512xf32>
      %348 = tpu.matmul %340, %13, %cst_113 {dimension_numbers = #tpu.dot_dimension_numbers<[1], [0], [0], [1], [0, 0, 1, 1], [], []>} : vector<16x128xf32>, vector<128x512xf32>, vector<16x512xf32> -> vector<16x512xf32>
      %349 = arith.addf %347, %348 : vector<16x512xf32>
      %350 = vector.extract_strided_slice %349 {offsets = [0, 0], sizes = [16, 128], strides = [1, 1]} : vector<16x512xf32> to vector<16x128xf32>
      %cst_114 = arith.constant 5.000000e-01 : f32
      %351 = vector.broadcast %cst_114 : f32 to vector<16x128xf32>
      %352 = arith.mulf %351, %350 : vector<16x128xf32>
      %353 = math.tanh %352 : vector<16x128xf32>
      %cst_115 = arith.constant 5.000000e-01 : f32
      %354 = vector.broadcast %cst_115 : f32 to vector<16x128xf32>
      %355 = arith.mulf %354, %353 : vector<16x128xf32>
      %cst_116 = arith.constant 5.000000e-01 : f32
      %356 = vector.broadcast %cst_116 : f32 to vector<16x128xf32>
      %357 = arith.addf %355, %356 : vector<16x128xf32>
      %358 = vector.extract_strided_slice %349 {offsets = [0, 128], sizes = [16, 128], strides = [1, 1]} : vector<16x512xf32> to vector<16x128xf32>
      %cst_117 = arith.constant 5.000000e-01 : f32
      %359 = vector.broadcast %cst_117 : f32 to vector<16x128xf32>
      %360 = arith.mulf %359, %358 : vector<16x128xf32>
      %361 = math.tanh %360 : vector<16x128xf32>
      %cst_118 = arith.constant 5.000000e-01 : f32
      %362 = vector.broadcast %cst_118 : f32 to vector<16x128xf32>
      %363 = arith.mulf %362, %361 : vector<16x128xf32>
      %cst_119 = arith.constant 5.000000e-01 : f32
      %364 = vector.broadcast %cst_119 : f32 to vector<16x128xf32>
      %365 = arith.addf %363, %364 : vector<16x128xf32>
      %366 = vector.extract_strided_slice %349 {offsets = [0, 256], sizes = [16, 128], strides = [1, 1]} : vector<16x512xf32> to vector<16x128xf32>
      %367 = math.tanh %366 : vector<16x128xf32>
      %368 = vector.extract_strided_slice %349 {offsets = [0, 384], sizes = [16, 128], strides = [1, 1]} : vector<16x512xf32> to vector<16x128xf32>
      %cst_120 = arith.constant 5.000000e-01 : f32
      %369 = vector.broadcast %cst_120 : f32 to vector<16x128xf32>
      %370 = arith.mulf %369, %368 : vector<16x128xf32>
      %371 = math.tanh %370 : vector<16x128xf32>
      %cst_121 = arith.constant 5.000000e-01 : f32
      %372 = vector.broadcast %cst_121 : f32 to vector<16x128xf32>
      %373 = arith.mulf %372, %371 : vector<16x128xf32>
      %cst_122 = arith.constant 5.000000e-01 : f32
      %374 = vector.broadcast %cst_122 : f32 to vector<16x128xf32>
      %375 = arith.addf %373, %374 : vector<16x128xf32>
      %376 = arith.mulf %365, %343 : vector<16x128xf32>
      %377 = arith.mulf %357, %367 : vector<16x128xf32>
      %378 = arith.addf %376, %377 : vector<16x128xf32>
      %379 = math.tanh %378 : vector<16x128xf32>
      %380 = arith.mulf %375, %379 : vector<16x128xf32>
      %381 = arith.addi %0, %c6_i32 : i32
      %382 = vector.broadcast %381 : i32 to vector<16x1xi32>
      %383 = arith.cmpi slt, %382, %12 : vector<16x1xi32>
      %cst_123 = arith.constant 0.000000e+00 : f32
      %384 = vector.shape_cast %383 : vector<16x1xi1> to vector<16x1xi1>
      %385 = vector.broadcast %384 : vector<16x1xi1> to vector<16x128xi1>
      %386 = vector.broadcast %cst_123 : f32 to vector<16x128xf32>
      %387 = arith.select %385, %380, %386 : vector<16x128xi1>, vector<16x128xf32>
      %388 = vector.shape_cast %387 : vector<16x128xf32> to vector<16x1x128xf32>
      %c0_124 = arith.constant 0 : index
      %389 = arith.index_cast %c6_i32 : i32 to index
      %c0_125 = arith.constant 0 : index
      %390 = vector.load %arg8[%c0_124, %389, %c0_125] : memref<16x8x128xf32, #tpu.memory_space<vmem>>, vector<16x1x128xf32>
      tpu.vector_store %arg8[%c0_124, %389, %c0_125], %388 {strides = array<i32>} : memref<16x8x128xf32, #tpu.memory_space<vmem>>, vector<16x1x128xf32>,
      %391 = vector.shape_cast %383 : vector<16x1xi1> to vector<16x1xi1>
      %392 = vector.broadcast %391 : vector<16x1xi1> to vector<16x128xi1>
      %393 = arith.select %392, %380, %340 : vector<16x128xi1>, vector<16x128xf32>
      %394 = vector.shape_cast %383 : vector<16x1xi1> to vector<16x1xi1>
      %395 = vector.broadcast %394 : vector<16x1xi1> to vector<16x128xi1>
      %396 = arith.select %395, %378, %343 : vector<16x128xi1>, vector<16x128xf32>
      %c7_i32 = arith.constant 7 : i32
      %c16_i32_126 = arith.constant 16 : i32
      %397 = arith.muli %c7_i32, %c16_i32_126 : i32
      %398 = tpu.assume_multiple %397, 16 : i32
      %399 = arith.index_cast %398 : i32 to index
      %c0_127 = arith.constant 0 : index
      %400 = vector.load %arg11[%399, %c0_127] : memref<128x512xf32, #tpu.memory_space<vmem>>, vector<16x512xf32>
      %cst_128 = arith.constant dense<0.000000e+00> : vector<16x512xf32>
      %401 = tpu.matmul %393, %13, %cst_128 {dimension_numbers = #tpu.dot_dimension_numbers<[1], [0], [0], [1], [0, 0, 1, 1], [], []>} : vector<16x128xf32>, vector<128x512xf32>, vector<16x512xf32> -> vector<16x512xf32>
      %402 = arith.addf %400, %401 : vector<16x512xf32>
      %403 = vector.extract_strided_slice %402 {offsets = [0, 0], sizes = [16, 128], strides = [1, 1]} : vector<16x512xf32> to vector<16x128xf32>
      %cst_129 = arith.constant 5.000000e-01 : f32
      %404 = vector.broadcast %cst_129 : f32 to vector<16x128xf32>
      %405 = arith.mulf %404, %403 : vector<16x128xf32>
      %406 = math.tanh %405 : vector<16x128xf32>
      %cst_130 = arith.constant 5.000000e-01 : f32
      %407 = vector.broadcast %cst_130 : f32 to vector<16x128xf32>
      %408 = arith.mulf %407, %406 : vector<16x128xf32>
      %cst_131 = arith.constant 5.000000e-01 : f32
      %409 = vector.broadcast %cst_131 : f32 to vector<16x128xf32>
      %410 = arith.addf %408, %409 : vector<16x128xf32>
      %411 = vector.extract_strided_slice %402 {offsets = [0, 128], sizes = [16, 128], strides = [1, 1]} : vector<16x512xf32> to vector<16x128xf32>
      %cst_132 = arith.constant 5.000000e-01 : f32
      %412 = vector.broadcast %cst_132 : f32 to vector<16x128xf32>
      %413 = arith.mulf %412, %411 : vector<16x128xf32>
      %414 = math.tanh %413 : vector<16x128xf32>
      %cst_133 = arith.constant 5.000000e-01 : f32
      %415 = vector.broadcast %cst_133 : f32 to vector<16x128xf32>
      %416 = arith.mulf %415, %414 : vector<16x128xf32>
      %cst_134 = arith.constant 5.000000e-01 : f32
      %417 = vector.broadcast %cst_134 : f32 to vector<16x128xf32>
      %418 = arith.addf %416, %417 : vector<16x128xf32>
      %419 = vector.extract_strided_slice %402 {offsets = [0, 256], sizes = [16, 128], strides = [1, 1]} : vector<16x512xf32> to vector<16x128xf32>
      %420 = math.tanh %419 : vector<16x128xf32>
      %421 = vector.extract_strided_slice %402 {offsets = [0, 384], sizes = [16, 128], strides = [1, 1]} : vector<16x512xf32> to vector<16x128xf32>
      %cst_135 = arith.constant 5.000000e-01 : f32
      %422 = vector.broadcast %cst_135 : f32 to vector<16x128xf32>
      %423 = arith.mulf %422, %421 : vector<16x128xf32>
      %424 = math.tanh %423 : vector<16x128xf32>
      %cst_136 = arith.constant 5.000000e-01 : f32
      %425 = vector.broadcast %cst_136 : f32 to vector<16x128xf32>
      %426 = arith.mulf %425, %424 : vector<16x128xf32>
      %cst_137 = arith.constant 5.000000e-01 : f32
      %427 = vector.broadcast %cst_137 : f32 to vector<16x128xf32>
      %428 = arith.addf %426, %427 : vector<16x128xf32>
      %429 = arith.mulf %418, %396 : vector<16x128xf32>
      %430 = arith.mulf %410, %420 : vector<16x128xf32>
      %431 = arith.addf %429, %430 : vector<16x128xf32>
      %432 = math.tanh %431 : vector<16x128xf32>
      %433 = arith.mulf %428, %432 : vector<16x128xf32>
      %434 = arith.addi %0, %c7_i32 : i32
      %435 = vector.broadcast %434 : i32 to vector<16x1xi32>
      %436 = arith.cmpi slt, %435, %12 : vector<16x1xi32>
      %cst_138 = arith.constant 0.000000e+00 : f32
      %437 = vector.shape_cast %436 : vector<16x1xi1> to vector<16x1xi1>
      %438 = vector.broadcast %437 : vector<16x1xi1> to vector<16x128xi1>
      %439 = vector.broadcast %cst_138 : f32 to vector<16x128xf32>
      %440 = arith.select %438, %433, %439 : vector<16x128xi1>, vector<16x128xf32>
      %441 = vector.shape_cast %440 : vector<16x128xf32> to vector<16x1x128xf32>
      %c0_139 = arith.constant 0 : index
      %442 = arith.index_cast %c7_i32 : i32 to index
      %c0_140 = arith.constant 0 : index
      %443 = vector.load %arg8[%c0_139, %442, %c0_140] : memref<16x8x128xf32, #tpu.memory_space<vmem>>, vector<16x1x128xf32>
      tpu.vector_store %arg8[%c0_139, %442, %c0_140], %441 {strides = array<i32>} : memref<16x8x128xf32, #tpu.memory_space<vmem>>, vector<16x1x128xf32>,
      %444 = vector.shape_cast %436 : vector<16x1xi1> to vector<16x1xi1>
      %445 = vector.broadcast %444 : vector<16x1xi1> to vector<16x128xi1>
      %446 = arith.select %445, %433, %393 : vector<16x128xi1>, vector<16x128xf32>
      %447 = vector.shape_cast %436 : vector<16x1xi1> to vector<16x1xi1>
      %448 = vector.broadcast %447 : vector<16x1xi1> to vector<16x128xi1>
      %449 = arith.select %448, %431, %396 : vector<16x128xi1>, vector<16x128xf32>
      %c8_i32_141 = arith.constant 8 : i32
      %c0_142 = arith.constant 0 : index
      %c0_143 = arith.constant 0 : index
      %c0_144 = arith.constant 0 : index
      %450 = vector.load %arg9[%c0_142, %c0_143, %c0_144] : memref<1x16x128xf32, #tpu.memory_space<vmem>>, vector<1x16x128xf32>
      %451 = vector.shape_cast %450 : vector<1x16x128xf32> to vector<16x128xf32>
      %452 = vector.shape_cast %446 : vector<16x128xf32> to vector<1x16x128xf32>
      tpu.vector_store %arg9[%c0_142, %c0_143, %c0_144], %452 {strides = array<i32>} : memref<1x16x128xf32, #tpu.memory_space<vmem>>, vector<1x16x128xf32>,
      %c0_145 = arith.constant 0 : index
      %c0_146 = arith.constant 0 : index
      %c0_147 = arith.constant 0 : index
      %453 = vector.load %arg10[%c0_145, %c0_146, %c0_147] : memref<1x16x128xf32, #tpu.memory_space<vmem>>, vector<1x16x128xf32>
      %454 = vector.shape_cast %453 : vector<1x16x128xf32> to vector<16x128xf32>
      %455 = vector.shape_cast %449 : vector<16x128xf32> to vector<1x16x128xf32>
      tpu.vector_store %arg10[%c0_145, %c0_146, %c0_147], %455 {strides = array<i32>} : memref<1x16x128xf32, #tpu.memory_space<vmem>>, vector<1x16x128xf32>,
    } else {
    }
    return
  }
  func.func @transform_0(%arg0: i32, %arg1: i32, %arg2: memref<1xi32, #tpu.memory_space<smem>>) -> (i32, i32, i32) {
    %c0_i32 = arith.constant 0 : i32
    %c0_i32_0 = arith.constant 0 : i32
    return %arg1, %arg0, %c0_i32 : i32, i32, i32
  }
  func.func @transform_1(%arg0: i32, %arg1: i32, %arg2: memref<1xi32, #tpu.memory_space<smem>>) -> (i32, i32) {
    %c0_i32 = arith.constant 0 : i32
    %c0_i32_0 = arith.constant 0 : i32
    return %arg0, %c0_i32 : i32, i32
  }
  func.func @transform_2(%arg0: i32, %arg1: i32, %arg2: memref<1xi32, #tpu.memory_space<smem>>) -> (i32, i32) {
    %c0_i32 = arith.constant 0 : i32
    %c0_i32_0 = arith.constant 0 : i32
    %c0_i32_1 = arith.constant 0 : i32
    return %c0_i32, %c0_i32_0 : i32, i32
  }
  func.func @transform_3(%arg0: i32, %arg1: i32, %arg2: memref<1xi32, #tpu.memory_space<smem>>) -> (i32, i32) {
    %c0_i32 = arith.constant 0 : i32
    %c0_i32_0 = arith.constant 0 : i32
    %c0_i32_1 = arith.constant 0 : i32
    return %c0_i32, %c0_i32_0 : i32, i32
  }
  func.func @transform_4(%arg0: i32, %arg1: i32, %arg2: memref<1xi32, #tpu.memory_space<smem>>) -> (i32, i32) {
    %c0_i32 = arith.constant 0 : i32
    %c0_i32_0 = arith.constant 0 : i32
    %c0_i32_1 = arith.constant 0 : i32
    return %c0_i32, %c0_i32_0 : i32, i32
  }
  func.func @transform_5(%arg0: i32, %arg1: i32, %arg2: memref<1xi32, #tpu.memory_space<smem>>) -> (i32, i32, i32) {
    %c0_i32 = arith.constant 0 : i32
    %c0_i32_0 = arith.constant 0 : i32
    return %arg0, %arg1, %c0_i32 : i32, i32, i32
  }
  func.func @transform_6(%arg0: i32, %arg1: i32, %arg2: memref<1xi32, #tpu.memory_space<smem>>) -> (i32, i32, i32) {
    %c0_i32 = arith.constant 0 : i32
    %c0_i32_0 = arith.constant 0 : i32
    %c0_i32_1 = arith.constant 0 : i32
    return %c0_i32, %arg0, %c0_i32_0 : i32, i32, i32
  }
  func.func @transform_7(%arg0: i32, %arg1: i32, %arg2: memref<1xi32, #tpu.memory_space<smem>>) -> (i32, i32, i32) {
    %c0_i32 = arith.constant 0 : i32
    %c0_i32_0 = arith.constant 0 : i32
    %c0_i32_1 = arith.constant 0 : i32
    return %c0_i32, %arg0, %c0_i32_0 : i32, i32, i32
  }
}

</mosaic_0001>

<bundles_post_ra>
// kernel: encoder_forward.1
= control target key start
LH: loop header
LB: loop body
LE: loop exit
PB: predicated region body
PF: predicated region fallthrough
CT: control target
= control target key end

     0   :  { %v4794_v0 = vmov 0.0   ;;  %s6704_s0 = inlined_call_operand.<no memory space> [shape: s32[1], index: 0, kind: input, shape index: {}]   ;;  %s6705_s1 = inlined_call_operand.vmem [shape: bf16[8,16,256], index: 1, kind: input, shape index: {}]   ;;  %s6706_s2 = inlined_call_operand.vmem [shape: s32[16,1], index: 2, kind: input, shape index: {}]   ;;  %s6707_s3 = inlined_call_operand.vmem [shape: bf16[256,512], index: 3, kind: input, shape index: {}]   ;;  %s6708_s4 = inlined_call_operand.vmem [shape: f32[128,512], index: 4, kind: input, shape index: {}]   ;;  %s6709_s5 = inlined_call_operand.vmem [shape: f32[1,512], index: 5, kind: input, shape index: {}]   ;;  %s6710_s6 = inlined_call_operand.vmem [shape: f32[16,8,128], index: 6, kind: output, shape index: {0}]   ;;  %s6711_s7 = inlined_call_operand.vmem [shape: f32[1,16,128], index: 7, kind: output, shape index: {1}]   ;;  %s6712_s8 = inlined_call_operand.vmem [shape: f32[1,16,128], index: 8, kind: output, shape index: {2}]  }
   0x1   :  { %30 = vst [vmem:[%s6711_s7] sm:$0xff] %v4794_v0  ;;  %31 = vst [vmem:[%s6711_s7 + $0x8] sm:$0xff] %v4794_v0  ;;  %p3833_p0 = scmp.gt.s32.totalorder %s6704_s0, 0 }
   0x2   :  { %32 = vst [vmem:[%s6712_s8] sm:$0xff] %v4794_v0  ;;  %33 = vst [vmem:[%s6712_s8 + $0x8] sm:$0xff] %v4794_v0  ;;  %v4795_v1 = vmov (!%p3833_p0), 0.0  }
   0x3   :  { %39 = sbr.rel (%p3833_p0) target bundleno = 11 (0xb), region = 29  ;;  %40 = vst [vmem:[%s6710_s6] sm:$0xff] (!%p3833_p0), %v4795_v1  ;;  %41 = vst [vmem:[%s6710_s6 + $0x8] sm:$0xff] (!%p3833_p0), %v4795_v1 }
   0x4   :  { %42 = vst [vmem:[%s6710_s6 + $0x10] sm:$0xff] (!%p3833_p0), %v4795_v1  ;;  %43 = vst [vmem:[%s6710_s6 + $0x18] sm:$0xff] (!%p3833_p0), %v4795_v1 }
   0x5   :  { %44 = vst [vmem:[%s6710_s6 + $0x20] sm:$0xff] (!%p3833_p0), %v4795_v1  ;;  %45 = vst [vmem:[%s6710_s6 + $0x28] sm:$0xff] (!%p3833_p0), %v4795_v1 }
   0x6   :  { %46 = vst [vmem:[%s6710_s6 + $0x30] sm:$0xff] (!%p3833_p0), %v4795_v1  ;;  %47 = vst [vmem:[%s6710_s6 + $0x38] sm:$0xff] (!%p3833_p0), %v4795_v1 }
   0x7   :  { %48 = vst [vmem:[%s6710_s6 + $0x40] sm:$0xff] (!%p3833_p0), %v4795_v1  ;;  %49 = vst [vmem:[%s6710_s6 + $0x48] sm:$0xff] (!%p3833_p0), %v4795_v1 }
   0x8   :  { %50 = vst [vmem:[%s6710_s6 + $0x50] sm:$0xff] (!%p3833_p0), %v4795_v1  ;;  %51 = vst [vmem:[%s6710_s6 + $0x58] sm:$0xff] (!%p3833_p0), %v4795_v1 }
   0x9   :  { %52 = vst [vmem:[%s6710_s6 + $0x60] sm:$0xff] (!%p3833_p0), %v4795_v1  ;;  %53 = vst [vmem:[%s6710_s6 + $0x68] sm:$0xff] (!%p3833_p0), %v4795_v1 }
   0xa   :  { %54 = vst [vmem:[%s6710_s6 + $0x70] sm:$0xff] %v4795_v1  ;;  %55 = vst [vmem:[%s6710_s6 + $0x78] sm:$0xff] %v4795_v1 }
   0xb PF:  { %p3834_p1 = scmp.le.s32.totalorder %s6704_s0, 0 }
   0xd   :  { %58 = sbr.rel (%p3834_p1) target bundleno = 2165 (0x875), region = 33 }
  0x14   :  { %v4514_v2 = vld [vmem:[%s6707_s3 + $0x4] ss:$16 sps:$4 sm:$0xff]   ;;  %v4516_v3 = vld [vmem:[%s6707_s3 + $0xc] ss:$16 sps:$4 sm:$0xff]   ;;  %v4518_v4 = vld [vmem:[%s6707_s3] ss:$16 sps:$4 sm:$0xff]  }
  0x15   :  { %627 = vmatprep.subr.bf16.mxu0 %v4514_v2  ;;  %v4519_v5 = vld [vmem:[%s6707_s3 + $0x8] ss:$16 sps:$4 sm:$0xff]   ;;  %740 = vmatprep.subr.bf16.mxu1 %v4516_v3  ;;  %v4520_v6 = vld [vmem:[%s6707_s3 + $0x24] ss:$16 sps:$4 sm:$0xff]   ;;  %v4522_v7 = vld [vmem:[%s6707_s3 + $0x2c] ss:$16 sps:$4 sm:$0xff]  }
  0x16   :  { %628 = vmatpush1.bf16.msra.mxu0 %v4518_v4  ;;  %741 = vmatpush1.bf16.msra.mxu1 %v4519_v5  ;;  %v4524_v8 = vld [vmem:[%s6707_s3 + $0x20] ss:$16 sps:$4 sm:$0xff]   ;;  %v4525_v9 = vld [vmem:[%s6707_s3 + $0x28] ss:$16 sps:$4 sm:$0xff]   ;;  %v4526_v10 = vld [vmem:[%s6707_s3 + $0x44] ss:$16 sps:$4 sm:$0xff]  }
  0x17   :  { %629 = vmatprep.subr.bf16.mxu0 %v4520_v6  ;;  %742 = vmatprep.subr.bf16.mxu1 %v4522_v7  ;;  %v4528_v11 = vld [vmem:[%s6707_s3 + $0x4c] ss:$16 sps:$4 sm:$0xff]   ;;  %v4530_v12 = vld [vmem:[%s6707_s3 + $0x40] ss:$16 sps:$4 sm:$0xff]   ;;  %v4531_v13 = vld [vmem:[%s6707_s3 + $0x48] ss:$16 sps:$4 sm:$0xff]  }
  0x18   :  { %v4532_v14 = vld [vmem:[%s6707_s3 + $0x64] ss:$16 sps:$4 sm:$0xff]   ;;  %v4534_v15 = vld [vmem:[%s6707_s3 + $0x6c] ss:$16 sps:$4 sm:$0xff]   ;;  %v4796_v16 = vmov 0  }
  0x19   :  { %4512 = vset.pattern.permute.xlu0 %v4796_v16  ;;  %4513 = vset.pattern.permute.xlu1 %v4796_v16  ;;  %v4536_v17 = vld [vmem:[%s6707_s3 + $0x60] ss:$16 sps:$4 sm:$0xff]   ;;  %v4537_v18 = vld [vmem:[%s6707_s3 + $0x68] ss:$16 sps:$4 sm:$0xff]   ;;  %v4538_v19 = vld [vmem:[%s6707_s3 + $0x84] ss:$16 sps:$4 sm:$0xff]  }
  0x1a   :  { %630 = vmatpush1.bf16.msra.mxu0 %v4524_v8  ;;  %743 = vmatpush1.bf16.msra.mxu1 %v4525_v9  ;;  %v4540_v20 = vld [vmem:[%s6707_s3 + $0x8c] ss:$16 sps:$4 sm:$0xff]   ;;  %v4542_v21 = vld [vmem:[%s6707_s3 + $0x80] ss:$16 sps:$4 sm:$0xff]   ;;  %v4543_v22 = vld [vmem:[%s6707_s3 + $0x88] ss:$16 sps:$4 sm:$0xff]  }
  0x1b   :  { %631 = vmatprep.subr.bf16.mxu0 %v4526_v10  ;;  %744 = vmatprep.subr.bf16.mxu1 %v4528_v11  ;;  %v4544_v23 = vld [vmem:[%s6707_s3 + $0xa4] ss:$16 sps:$4 sm:$0xff]   ;;  %v4546_v24 = vld [vmem:[%s6707_s3 + $0xac] ss:$16 sps:$4 sm:$0xff]   ;;  %v4548_v25 = vld [vmem:[%s6707_s3 + $0xa0] ss:$16 sps:$4 sm:$0xff]  }
  0x1c   :  { %v4549_v26 = vld [vmem:[%s6707_s3 + $0xa8] ss:$16 sps:$4 sm:$0xff]   ;;  %v4550_v27 = vld [vmem:[%s6707_s3 + $0xc4] ss:$16 sps:$4 sm:$0xff]   ;;  %v4552_v28 = vld [vmem:[%s6707_s3 + $0xcc] ss:$16 sps:$4 sm:$0xff]  }
  0x1d   :  { %v4554_v29 = vld [vmem:[%s6707_s3 + $0xc0] ss:$16 sps:$4 sm:$0xff]   ;;  %v4555_v30 = vld [vmem:[%s6707_s3 + $0xc8] ss:$16 sps:$4 sm:$0xff]   ;;  %v4556_v31 = vld [vmem:[%s6707_s3 + $0xe4] ss:$16 sps:$4 sm:$0xff]  }
  0x1e   :  { %632 = vmatpush1.bf16.msra.mxu0 %v4530_v12  ;;  %745 = vmatpush1.bf16.msra.mxu1 %v4531_v13  ;;  %v4558_v32 = vld [vmem:[%s6707_s3 + $0xec] ss:$16 sps:$4 sm:$0xff]   ;;  %v4560_v33 = vld [vmem:[%s6707_s3 + $0xe0] ss:$16 sps:$4 sm:$0xff]   ;;  %v4561_v34 = vld [vmem:[%s6707_s3 + $0xe8] ss:$16 sps:$4 sm:$0xff]  }
  0x1f   :  { %633 = vmatprep.subr.bf16.mxu0 %v4532_v14  ;;  %746 = vmatprep.subr.bf16.mxu1 %v4534_v15  ;;  %v4562_v35 = vld [vmem:[%s6707_s3 + $0x104] ss:$16 sps:$4 sm:$0xff]   ;;  %v4564_v36 = vld [vmem:[%s6707_s3 + $0x10c] ss:$16 sps:$4 sm:$0xff]   ;;  %v4566_v37 = vld [vmem:[%s6707_s3 + $0x100] ss:$16 sps:$4 sm:$0xff]  }
  0x20   :  { %v4567_v38 = vld [vmem:[%s6707_s3 + $0x108] ss:$16 sps:$4 sm:$0xff]   ;;  %v4568_v39 = vld [vmem:[%s6707_s3 + $0x124] ss:$16 sps:$4 sm:$0xff]   ;;  %v4570_v40 = vld [vmem:[%s6707_s3 + $0x12c] ss:$16 sps:$4 sm:$0xff]  }
  0x21   :  { %v4572_v41 = vld [vmem:[%s6707_s3 + $0x120] ss:$16 sps:$4 sm:$0xff]   ;;  %v4573_v42 = vld [vmem:[%s6707_s3 + $0x128] ss:$16 sps:$4 sm:$0xff]   ;;  %v4574_v43 = vld [vmem:[%s6707_s3 + $0x144] ss:$16 sps:$4 sm:$0xff]  }
  0x22   :  { %634 = vmatpush1.bf16.msra.mxu0 %v4536_v17  ;;  %747 = vmatpush1.bf16.msra.mxu1 %v4537_v18  ;;  %v4576_v44 = vld [vmem:[%s6707_s3 + $0x14c] ss:$16 sps:$4 sm:$0xff]   ;;  %v4578_v45 = vld [vmem:[%s6707_s3 + $0x140] ss:$16 sps:$4 sm:$0xff]   ;;  %v4579_v46 = vld [vmem:[%s6707_s3 + $0x148] ss:$16 sps:$4 sm:$0xff]  }
  0x23   :  { %635 = vmatprep.subr.bf16.mxu0 %v4538_v19  ;;  %748 = vmatprep.subr.bf16.mxu1 %v4540_v20  ;;  %v4580_v47 = vld [vmem:[%s6707_s3 + $0x164] ss:$16 sps:$4 sm:$0xff]   ;;  %v4582_v48 = vld [vmem:[%s6707_s3 + $0x16c] ss:$16 sps:$4 sm:$0xff]   ;;  %v4584_v50 = vld [vmem:[%s6707_s3 + $0x160] ss:$16 sps:$4 sm:$0xff]  }
  0x24   :  { %v4612_v49 = vld [vmem:[%s6705_s1 + $0x4] ss:$8 sps:$4 sm:$0xff]   ;;  %v4585_v51 = vld [vmem:[%s6707_s3 + $0x168] ss:$16 sps:$4 sm:$0xff]   ;;  %v4590_v54 = vld [vmem:[%s6707_s3 + $0x180] ss:$16 sps:$4 sm:$0xff]  }
  0x25   :  { %v4586_v52 = vld [vmem:[%s6707_s3 + $0x184] ss:$16 sps:$4 sm:$0xff]   ;;  %v4588_v53 = vld [vmem:[%s6707_s3 + $0x18c] ss:$16 sps:$4 sm:$0xff]   ;;  %659 = vmatprep.mubr.bf16.mxu0 %v4612_v49  ;;  %772 = vmatprep.mubr.bf16.mxu1 %v4612_v49  ;;  %v4591_v55 = vld [vmem:[%s6707_s3 + $0x188] ss:$16 sps:$4 sm:$0xff]  }
  0x26   :  { %636 = vmatpush1.bf16.msra.mxu0 %v4542_v21  ;;  %749 = vmatpush1.bf16.msra.mxu1 %v4543_v22  ;;  %v4592_v56 = vld [vmem:[%s6707_s3 + $0x1a4] ss:$16 sps:$4 sm:$0xff]   ;;  %v4594_v57 = vld [vmem:[%s6707_s3 + $0x1ac] ss:$16 sps:$4 sm:$0xff]   ;;  %v4596_v58 = vld [vmem:[%s6707_s3 + $0x1a0] ss:$16 sps:$4 sm:$0xff]  }
  0x27   :  { %637 = vmatprep.subr.bf16.mxu0 %v4544_v23  ;;  %750 = vmatprep.subr.bf16.mxu1 %v4546_v24  ;;  %v4597_v59 = vld [vmem:[%s6707_s3 + $0x1a8] ss:$16 sps:$4 sm:$0xff]   ;;  %v4598_v60 = vld [vmem:[%s6707_s3 + $0x1c4] ss:$16 sps:$4 sm:$0xff]   ;;  %v4600_v61 = vld [vmem:[%s6707_s3 + $0x1cc] ss:$16 sps:$4 sm:$0xff]  }
  0x28   :  { %v4602_v62 = vld [vmem:[%s6707_s3 + $0x1c0] ss:$16 sps:$4 sm:$0xff]   ;;  %v4603_v63 = vld [vmem:[%s6707_s3 + $0x1c8] ss:$16 sps:$4 sm:$0xff]   ;;  %v4604_v0 = vld [vmem:[%s6707_s3 + $0x1e4] ss:$16 sps:$4 sm:$0xff]  }
  0x29   :  { %v4606_v1 = vld [vmem:[%s6707_s3 + $0x1ec] ss:$16 sps:$4 sm:$0xff]   ;;  %v4608_v6 = vld [vmem:[%s6707_s3 + $0x1e0] ss:$16 sps:$4 sm:$0xff]   ;;  %v4609_v7 = vld [vmem:[%s6707_s3 + $0x1e8] ss:$16 sps:$4 sm:$0xff]  }
  0x2a   :  { %638 = vmatpush1.bf16.msra.mxu0 %v4548_v25  ;;  %751 = vmatpush1.bf16.msra.mxu1 %v4549_v26  ;;  %v62_v2 = vld [vmem:[%s6708_s4 + $0x8] sm:$0xff]  ;;  %v64_v4 = vld [vmem:[%s6708_s4 + $0x18] sm:$0xff]  ;;  %v61_v8 = vld [vmem:[%s6708_s4] sm:$0xff] }
  0x2b   :  { %639 = vmatprep.subr.bf16.mxu0 %v4550_v27  ;;  %752 = vmatprep.subr.bf16.mxu1 %v4552_v28  ;;  %v66_v3 = vld [vmem:[%s6708_s4 + $0x28] sm:$0xff]  ;;  %v68_v5 = vld [vmem:[%s6708_s4 + $0x38] sm:$0xff]  ;;  %v65_v10 = vld [vmem:[%s6708_s4 + $0x20] sm:$0xff] }
  0x2c   :  { %v5122_v9 = vpack.c.bf16 %v66_v3, %v62_v2  ;;  %v5127_v11 = vpack.c.bf16 %v68_v5, %v64_v4  ;;  %v4610_v12 = vld [vmem:[%s6705_s1] ss:$8 sps:$4 sm:$0xff]   ;;  %v4613_v15 = vld [vmem:[%s6705_s1 + $0x14] ss:$8 sps:$4 sm:$0xff]   ;;  %v5147_v19 = vpack.c.bf16 %v65_v10, %v61_v8 }
  0x2d   :  { %v70_v13 = vld [vmem:[%s6708_s4 + $0x48] sm:$0xff]  ;;  %v63_v17 = vld [vmem:[%s6708_s4 + $0x10] sm:$0xff]  ;;  %v69_v20 = vld [vmem:[%s6708_s4 + $0x40] sm:$0xff] }
  0x2e   :  { %640 = vmatpush1.bf16.msra.mxu0 %v4554_v29  ;;  %753 = vmatpush1.bf16.msra.mxu1 %v4555_v30  ;;  %v74_v14 = vld [vmem:[%s6708_s4 + $0x68] sm:$0xff]  ;;  %v67_v18 = vld [vmem:[%s6708_s4 + $0x30] sm:$0xff]  ;;  %v72_v21 = vld [vmem:[%s6708_s4 + $0x58] sm:$0xff] }
  0x2f   :  { %641 = vmatprep.subr.bf16.mxu0 %v4556_v31  ;;  %754 = vmatprep.subr.bf16.mxu1 %v4558_v32  ;;  %v76_v22 = vld [vmem:[%s6708_s4 + $0x78] sm:$0xff]  ;;  %v5160_v23 = vpack.c.bf16 %v74_v14, %v70_v13  ;;  %v73_v24 = vld [vmem:[%s6708_s4 + $0x60] sm:$0xff]  ;;  %v5165_v25 = vpack.c.bf16 %v67_v18, %v63_v17  ;;  %v78_v26 = vld [vmem:[%s6708_s4 + $0x88] sm:$0xff] }
  0x30   :  { %v82_v27 = vld [vmem:[%s6708_s4 + $0xa8] sm:$0xff]  ;;  %v5173_v28 = vpack.c.bf16 %v76_v22, %v72_v21  ;;  %v71_v29 = vld [vmem:[%s6708_s4 + $0x50] sm:$0xff]  ;;  %v5182_v31 = vpack.c.bf16 %v73_v24, %v69_v20  ;;  %v77_v32 = vld [vmem:[%s6708_s4 + $0x80] sm:$0xff] }
  0x31   :  { %v75_v30 = vld [vmem:[%s6708_s4 + $0x70] sm:$0xff]  ;;  %v100_v2 = vld [vmem:[%s6708_s4 + $0x138] sm:$0xff]  ;;  %v102_v3 = vld [vmem:[%s6708_s4 + $0x148] sm:$0xff] }
  0x32   :  { %642 = vmatpush1.bf16.msra.mxu0 %v4560_v33  ;;  %755 = vmatpush1.bf16.msra.mxu1 %v4561_v34  ;;  %v4615_v33 = vld [vmem:[%s6705_s1 + $0x10] ss:$8 sps:$4 sm:$0xff]   ;;  %v5191_v34 = vpack.c.bf16 %v82_v27, %v78_v26  ;;  %v5296_v4 = vld [vmem:[%s6706_s2 + $0x8] sm:$0xff]  ;;  %v4619_v8 = vld [vmem:[%s6705_s1 + $0x34] ss:$8 sps:$4 sm:$0xff]  }
  0x33   :  { %643 = vmatprep.subr.bf16.mxu0 %v4562_v35  ;;  %756 = vmatprep.subr.bf16.mxu1 %v4564_v36  ;;  %v81_v35 = vld [vmem:[%s6708_s4 + $0xa0] sm:$0xff]  ;;  %v5197_v36 = vpack.c.bf16 %v75_v30, %v71_v29  ;;  %v106_v5 = vld [vmem:[%s6708_s4 + $0x168] sm:$0xff]  ;;  %v104_v10 = vld [vmem:[%s6708_s4 + $0x158] sm:$0xff]  ;;  %vm3916_vm1 = vcmp.gt.s32.totalorder %v5296_v4, 0  ;;  %vm3926_vm9 = vcmp.gt.s32.totalorder %v5296_v4, 1  ;;  %vm3936_vm10 = vcmp.gt.s32.totalorder %v5296_v4, 2 }
  0x34   :  { %v101_v18 = vld [vmem:[%s6708_s4 + $0x140] sm:$0xff]  ;;  %v110_v21 = vld [vmem:[%s6708_s4 + $0x188] sm:$0xff]  ;;  %v103_v26 = vld [vmem:[%s6708_s4 + $0x150] sm:$0xff]  ;;  %v1134_v29 = vsel %vm3916_vm1, 1, %v4796_v16  ;;  %vm3946_vm11 = vcmp.gt.s32.totalorder %v5296_v4, 3  ;;  %vm3956_vm12 = vcmp.gt.s32.totalorder %v5296_v4, 4 }
  0x35   :  { %v105_v20 = vld [vmem:[%s6708_s4 + $0x160] sm:$0xff]  ;;  %v114_v24 = vld [vmem:[%s6708_s4 + $0x1a8] sm:$0xff]  ;;  %v107_v27 = vld [vmem:[%s6708_s4 + $0x170] sm:$0xff]  ;;  %vm3966_vm13 = vcmp.gt.s32.totalorder %v5296_v4, 5  ;;  %vm3976_vm14 = vcmp.gt.s32.totalorder %v5296_v4, 6  ;;  %vm3986_vm15 = vcmp.gt.s32.totalorder %v5296_v4, 7 }
  0x36   :  { %644 = vmatpush1.bf16.msra.mxu0 %v4566_v37  ;;  %757 = vmatpush1.bf16.msra.mxu1 %v4567_v38  ;;  %v80_v37 = vld [vmem:[%s6708_s4 + $0x98] sm:$0xff] }
  0x37   :  { %645 = vmatprep.subr.bf16.mxu0 %v4568_v39  ;;  %758 = vmatprep.subr.bf16.mxu1 %v4570_v40  ;;  %v84_v38 = vld [vmem:[%s6708_s4 + $0xb8] sm:$0xff]  ;;  %v86_v39 = vld [vmem:[%s6708_s4 + $0xc8] sm:$0xff] }
  0x38   :  { %v90_v40 = vld [vmem:[%s6708_s4 + $0xe8] sm:$0xff]  ;;  %v4621_v30 = vld [vmem:[%s6705_s1 + $0x30] ss:$8 sps:$4 sm:$0xff]  }
  0x39   :  { %v5237_v49 = vpack.c.bf16 %v90_v40, %v86_v39  ;;  %v112_v39 = vld [vmem:[%s6708_s4 + $0x198] sm:$0xff] }
  0x3a   :  { %646 = vmatpush1.bf16.msra.mxu0 %v4572_v41  ;;  %759 = vmatpush1.bf16.msra.mxu1 %v4573_v42  ;;  %v79_v41 = vld [vmem:[%s6708_s4 + $0x90] sm:$0xff]  ;;  %v116_v40 = vld [vmem:[%s6708_s4 + $0x1b8] sm:$0xff] }
  0x3b   :  { %647 = vmatprep.subr.bf16.mxu0 %v4574_v43  ;;  %760 = vmatprep.subr.bf16.mxu1 %v4576_v44  ;;  %v83_v42 = vld [vmem:[%s6708_s4 + $0xb0] sm:$0xff]  ;;  %v4616_v43 = vld [vmem:[%s6705_s1 + $0x24] ss:$8 sps:$4 sm:$0xff]   ;;  %v88_v44 = vld [vmem:[%s6708_s4 + $0xd8] sm:$0xff] }
  0x3e   :  { %648 = vmatpush1.bf16.msra.mxu0 %v4578_v45  ;;  %761 = vmatpush1.bf16.msra.mxu1 %v4579_v46  ;;  %v92_v45 = vld [vmem:[%s6708_s4 + $0xf8] sm:$0xff]  ;;  %v5229_v46 = vpack.c.bf16 %v81_v35, %v77_v32  ;;  %v5357_v32 = vpack.c.bf16 %v105_v20, %v101_v18  ;;  %v113_v35 = vld [vmem:[%s6708_s4 + $0x1a0] sm:$0xff] }
  0x3f   :  { %649 = vmatprep.subr.bf16.mxu0 %v4580_v47  ;;  %762 = vmatprep.subr.bf16.mxu1 %v4582_v48  ;;  %v5231_v47 = vpack.c.bf16 %v84_v38, %v80_v37  ;;  %v85_v48 = vld [vmem:[%s6708_s4 + $0xc0] sm:$0xff]  ;;  %v5367_v37 = vpack.c.bf16 %v114_v24, %v110_v21  ;;  %v5369_v38 = vpack.c.bf16 %v107_v27, %v103_v26  ;;  %v4631_v26 = vld [vmem:[%s6705_s1 + $0x74] ss:$8 sps:$4 sm:$0xff]  }
  0x40   :  { %v4628_v18 = vld [vmem:[%s6705_s1 + $0x64] ss:$8 sps:$4 sm:$0xff]   ;;  %v4630_v24 = vld [vmem:[%s6705_s1 + $0x60] ss:$8 sps:$4 sm:$0xff]  }
  0x42   :  { %650 = vmatpush1.bf16.msra.mxu0 %v4584_v50  ;;  %763 = vmatpush1.bf16.msra.mxu1 %v4585_v51  ;;  %v5239_v50 = vpack.c.bf16 %v83_v42, %v79_v41  ;;  %v89_v51 = vld [vmem:[%s6708_s4 + $0xe0] sm:$0xff]  ;;  %v118_v41 = vld [vmem:[%s6708_s4 + $0x1c8] sm:$0xff] }
  0x43   :  { %651 = vmatprep.subr.bf16.mxu0 %v4586_v52  ;;  %764 = vmatprep.subr.bf16.mxu1 %v4588_v53  ;;  %v94_v52 = vld [vmem:[%s6708_s4 + $0x108] sm:$0xff] }
  0x44   :  { %v98_v53 = vld [vmem:[%s6708_s4 + $0x128] sm:$0xff] }
  0x45   :  { %v122_v42 = vld [vmem:[%s6708_s4 + $0x1e8] sm:$0xff] }
  0x46   :  { %652 = vmatpush1.bf16.msra.mxu0 %v4590_v54  ;;  %765 = vmatpush1.bf16.msra.mxu1 %v4591_v55  ;;  %v5250_v54 = vpack.c.bf16 %v92_v45, %v88_v44  ;;  %v87_v55 = vld [vmem:[%s6708_s4 + $0xd0] sm:$0xff]  ;;  %v4622_v45 = vld [vmem:[%s6705_s1 + $0x44] ss:$8 sps:$4 sm:$0xff]  }
  0x47   :  { %653 = vmatprep.subr.bf16.mxu0 %v4592_v56  ;;  %766 = vmatprep.subr.bf16.mxu1 %v4594_v57  ;;  %v91_v56 = vld [vmem:[%s6708_s4 + $0xf0] sm:$0xff]  ;;  %v5261_v57 = vld [vmem:[%s6706_s2] sm:$0xff] }
  0x48   :  { %vm3915_vm0 = vcmp.gt.s32.totalorder %v5261_v57, 0  ;;  %v115_v44 = vld [vmem:[%s6708_s4 + $0x1b0] sm:$0xff]  ;;  %vm3935_vm2 = vcmp.gt.s32.totalorder %v5261_v57, 2  ;;  %vm3945_vm3 = vcmp.gt.s32.totalorder %v5261_v57, 3  ;;  %vm3955_vm4 = vcmp.gt.s32.totalorder %v5261_v57, 4 }
  0x49   :  { %vm3965_vm5 = vcmp.gt.s32.totalorder %v5261_v57, 5  ;;  %vm3975_vm6 = vcmp.gt.s32.totalorder %v5261_v57, 6  ;;  %vm3985_vm7 = vcmp.gt.s32.totalorder %v5261_v57, 7  ;;  %vm3925_vm8 = vcmp.gt.s32.totalorder %v5261_v57, 1 }
  0x4a   :  { %654 = vmatpush1.bf16.msra.mxu0 %v4596_v58  ;;  %767 = vmatpush1.bf16.msra.mxu1 %v4597_v59  ;;  %v4618_v58 = vld [vmem:[%s6705_s1 + $0x20] ss:$8 sps:$4 sm:$0xff]   ;;  %v5269_v59 = vpack.c.bf16 %v89_v51, %v85_v48  ;;  %v120_v48 = vld [vmem:[%s6708_s4 + $0x1d8] sm:$0xff]  ;;  %v2938_v20 = vsel %vm3965_vm5, 1, %v4796_v16  ;;  %v3299_v21 = vsel %vm3975_vm6, 1, %v4796_v16  ;;  %v3660_v27 = vsel %vm3985_vm7, 1, %v4796_v16 }
  0x4b   :  { %655 = vmatprep.subr.bf16.mxu0 %v4598_v60  ;;  %768 = vmatprep.subr.bf16.mxu1 %v4600_v61  ;;  %v93_v60 = vld [vmem:[%s6708_s4 + $0x100] sm:$0xff]  ;;  %v124_v51 = vld [vmem:[%s6708_s4 + $0x1f8] sm:$0xff] }
  0x4c   :  { %v97_v61 = vld [vmem:[%s6708_s4 + $0x120] sm:$0xff] }
  0x4d   :  { %v5318_v13 = vpack.c.bf16 %v97_v61, %v93_v60  ;;  %v121_v60 = vld [vmem:[%s6708_s4 + $0x1e0] sm:$0xff]  ;;  %v5417_v61 = vpack.c.bf16 %v124_v51, %v120_v48  ;;  %v2217_v51 = vsel %vm3946_vm11, 1, %v4796_v16 }
  0x4e   :  { %656 = vmatpush1.bf16.msra.mxu0 %v4602_v62  ;;  %769 = vmatpush1.bf16.msra.mxu1 %v4603_v63  ;;  %v96_v62 = vld [vmem:[%s6708_s4 + $0x118] sm:$0xff]  ;;  %v1133_v63 = vsel %vm3915_vm0, 1, %v4796_v16 }
  0x4f   :  { %657 = vmatprep.subr.bf16.mxu0 %v4604_v0  ;;  %770 = vmatprep.subr.bf16.mxu1 %v4606_v1  ;;  %v5283_v0 = vpack.c.bf16 %v98_v53, %v94_v52  ;;  %v5285_v1 = vpack.c.bf16 %v91_v56, %v87_v55  ;;  %v5320_v14 = vpack.c.bf16 %v100_v2, %v96_v62  ;;  %v119_v62 = vld [vmem:[%s6708_s4 + $0x1d0] sm:$0xff]  ;;  %v1855_v2 = vsel %vm3935_vm2, 1, %v4796_v16 }
  0x50   :  { %1136 = vperm.xlu0 %4512, %v1133_v63   ;;  %v5402_v53 = vpack.c.bf16 %v116_v40, %v112_v39  ;;  %v5407_v55 = vpack.c.bf16 %v122_v42, %v118_v41  ;;  %v123_v63 = vld [vmem:[%s6708_s4 + $0x1f0] sm:$0xff]  ;;  %v1494_v39 = vsel %vm3925_vm8, 1, %v4796_v16  ;;  %v1495_v40 = vsel %vm3926_vm9, 1, %v4796_v16 }
  0x51   :  { %1497 = vperm.xlu1 %4513, %v1494_v39   ;;  %v207_v41 = vlaneseq  ;;  %v1856_v42 = vsel %vm3936_vm10, 1, %v4796_v16 }
  0x52   :  { %658 = vmatpush1.bf16.msra.mxu0 %v4608_v6  ;;  %771 = vmatpush1.bf16.msra.mxu1 %v4609_v7  ;;  %v95_v6 = vld [vmem:[%s6708_s4 + $0x110] sm:$0xff] }
  0x53   :  { %3996 = vmatprep.subr.bf16.mxu0 %v5122_v9  ;;  %4028 = vmatprep.subr.bf16.mxu1 %v5127_v11  ;;  %v99_v7 = vld [vmem:[%s6708_s4 + $0x130] sm:$0xff] }
  0x54   :  { %v5327_v17 = vpack.c.bf16 %v99_v7, %v95_v6  ;;  %1139 = vperm.xlu0 %4512, %v1134_v29   ;;  %v4624_v6 = vld [vmem:[%s6705_s1 + $0x40] ss:$8 sps:$4 sm:$0xff]   ;;  %v4625_v7 = vld [vmem:[%s6705_s1 + $0x54] ss:$8 sps:$4 sm:$0xff]   ;;  %v4633_v29 = vld [vmem:[%s6705_s1 + $0x70] ss:$8 sps:$4 sm:$0xff]  }
  0x55   :  { %660 = vmatmul.mubr.bf16.vlgmr.msra.gmra.mrb[0].mxu0 %v4610_v12  ;;  %773 = vmatmul.mubr.bf16.vlgmr.msra.gmra.mrb[0].mxu1 %v4610_v12  ;;  %v108_v12 = vld [vmem:[%s6708_s4 + $0x178] sm:$0xff] }
  0x56   :  { %3998 = vmatpush1.bf16.msra.mxu0 %v5147_v19  ;;  %669 = vmatprep.mubr.bf16.mxu0 %v4613_v15  ;;  %v5338_v22 = vpack.c.bf16 %v108_v12, %v104_v10  ;;  %v2577_v10 = vsel %vm3955_vm4, 1, %v4796_v16  ;;  %v4627_v12 = vld [vmem:[%s6705_s1 + $0x50] ss:$8 sps:$4 sm:$0xff]  }
  0x57   :  { %782 = vmatprep.mubr.bf16.mxu1 %v4613_v15  ;;  %4000 = vmatprep.subr.bf16.mxu0 %v5160_v23  ;;  %v5325_v15 = vpack.c.bf16 %v106_v5, %v102_v3  ;;  %v5432_v5 = vpack.c.bf16 %v123_v63, %v119_v62 }
  0x58   :  { %4030 = vmatpush1.bf16.msra.mxu1 %v5165_v25  ;;  %1858 = vperm.xlu0 %4512, %v1855_v2  }
  0x59   :  { %4032 = vmatprep.subr.bf16.mxu1 %v5173_v28  ;;  %1500 = vperm.xlu1 %4513, %v1495_v40  }
  0x5a   :  { %4002 = vmatpush1.bf16.msra.mxu0 %v5182_v31 }
  0x5b   :  { %4004 = vmatprep.subr.bf16.mxu0 %v5191_v34 }
  0x5c   :  { %4034 = vmatpush1.bf16.msra.mxu1 %v5197_v36 }
  0x5d   :  { %670 = vmatmul.mubr.bf16.gmra.mrb[4].mxu0 %v4615_v33  ;;  %783 = vmatmul.mubr.bf16.gmra.mrb[4].mxu1 %v4615_v33  ;;  %v109_v33 = vld [vmem:[%s6708_s4 + $0x180] sm:$0xff] }
  0x5e   :  { %679 = vmatprep.mubr.bf16.mxu0 %v4616_v43  ;;  %792 = vmatprep.mubr.bf16.mxu1 %v4616_v43  ;;  %v111_v43 = vld [vmem:[%s6708_s4 + $0x190] sm:$0xff]  ;;  %v5400_v52 = vpack.c.bf16 %v113_v35, %v109_v33  ;;  %v5475_v33 = vld [vmem:[%s6711_s7] sm:$0xff]  ;;  %v5484_v35 = vld [vmem:[%s6711_s7 + $0x8] sm:$0xff] }
  0x5f   :  { %4006 = vmatpush1.bf16.msra.mxu0 %v5229_v46  ;;  %4036 = vmatprep.subr.bf16.mxu1 %v5231_v47  ;;  %v5409_v56 = vpack.c.bf16 %v115_v44, %v111_v43  ;;  %v5529_v43 = vshrl.u32 %v207_v41, 7 }
  0x60   :  { %4008 = vmatprep.subr.bf16.mxu0 %v5237_v49  ;;  %4038 = vmatpush1.bf16.msra.mxu1 %v5239_v50 }
  0x61   :  { %4040 = vmatprep.subr.bf16.mxu1 %v5250_v54  ;;  %1861 = vperm.xlu1 %4513, %v1856_v42   ;;  %v209_v62 = vsub.s32 0, %v5529_v43  ;;  %v217_v2 = vsub.s32 2, %v5529_v43  ;;  %v2939_v42 = vsel %vm3966_vm13, 1, %v4796_v16 }
  0x63   :  { %4010 = vmatpush1.bf16.msra.mxu0 %v5269_v59 }
  0x64   :  { %4012 = vmatprep.subr.bf16.mxu0 %v5283_v0  ;;  %4042 = vmatpush1.bf16.msra.mxu1 %v5285_v1 }
  0x65   :  { %680 = vmatmul.mubr.bf16.gmra.mrb[8].mxu0 %v4618_v58  ;;  %793 = vmatmul.mubr.bf16.gmra.mrb[8].mxu1 %v4618_v58  ;;  %v117_v58 = vld [vmem:[%s6708_s4 + $0x1c0] sm:$0xff] }
  0x66   :  { %689 = vmatprep.mubr.bf16.mxu0 %v4619_v8  ;;  %802 = vmatprep.mubr.bf16.mxu1 %v4619_v8  ;;  %v5428_v3 = vpack.c.bf16 %v121_v60, %v117_v58  ;;  %v2216_v8 = vsel %vm3945_vm3, 1, %v4796_v16 }
  0x67   :  { %4014 = vmatpush1.bf16.msra.mxu0 %v5318_v13  ;;  %4044 = vmatprep.subr.bf16.mxu1 %v5320_v14 }
  0x68   :  { %4016 = vmatprep.subr.bf16.mxu0 %v5325_v15  ;;  %4046 = vmatpush1.bf16.msra.mxu1 %v5327_v17 }
  0x69   :  { %4048 = vmatprep.subr.bf16.mxu1 %v5338_v22  ;;  %2219 = vperm.xlu0 %4512, %v2216_v8   ;;  %v213_v8 = vsub.s32 1, %v5529_v43 }
  0x6a   :  { %2222 = vperm.xlu1 %4513, %v2217_v51  }
  0x6b   :  { %4018 = vmatpush1.bf16.msra.mxu0 %v5357_v32 }
  0x6c   :  { %4020 = vmatprep.subr.bf16.mxu0 %v5367_v37  ;;  %4050 = vmatpush1.bf16.msra.mxu1 %v5369_v38 }
  0x6d   :  { %690 = vmatmul.mubr.bf16.gmra.mrb[12].mxu0 %v4621_v30  ;;  %803 = vmatmul.mubr.bf16.gmra.mrb[12].mxu1 %v4621_v30  ;;  %v6713_v30 = vmov 0.0  }
  0x6e   :  { %699 = vmatprep.mubr.bf16.mxu0 %v4622_v45  ;;  %812 = vmatprep.mubr.bf16.mxu1 %v4622_v45 }
  0x6f   :  { %4022 = vmatpush1.bf16.msra.mxu0 %v5400_v52  ;;  %4052 = vmatprep.subr.bf16.mxu1 %v5402_v53 }
  0x70   :  { %4024 = vmatprep.subr.bf16.mxu0 %v5407_v55  ;;  %4054 = vmatpush1.bf16.msra.mxu1 %v5409_v56 }
  0x71   :  { %4056 = vmatprep.subr.bf16.mxu1 %v5417_v61  ;;  %2580 = vperm.xlu0 %4512, %v2577_v10   ;;  %v221_v10 = vsub.s32 3, %v5529_v43 }
  0x73   :  { %4026 = vmatpush1.bf16.msra.mxu0 %v5428_v3 }
  0x74   :  { %4058 = vmatpush1.bf16.msra.mxu1 %v5432_v5  ;;  %4060 = vmatprep.subr.bf16.mxu0 %v5122_v9 }
  0x75   :  { %700 = vmatmul.mubr.bf16.gmra.mrb[16].mxu0 %v4624_v6  ;;  %813 = vmatmul.mubr.bf16.gmra.mrb[16].mxu1 %v4624_v6 }
  0x76   :  { %709 = vmatprep.mubr.bf16.mxu0 %v4625_v7  ;;  %822 = vmatprep.mubr.bf16.mxu1 %v4625_v7  ;;  %v205_v7 = vld [vmem:[%s6709_s5] sm:$0xf] }
  0x77   :  { %4092 = vmatprep.subr.bf16.mxu1 %v5127_v11  ;;  %2941 = vperm.xlu0 %4512, %v2938_v20   ;;  %v5560_v20 = vrot.slane %v205_v7, %v217_v2 }
  0x7b   :  { %3302 = vperm.xlu0 %4512, %v3299_v21   ;;  %v5562_v21 = vrot.slane %v205_v7, %v213_v8 }
  0x7d   :  { %710 = vmatmul.mubr.bf16.gmra.mrb[20].mxu0 %v4627_v12  ;;  %823 = vmatmul.mubr.bf16.gmra.mrb[20].mxu1 %v4627_v12  ;;  %v2578_v12 = vsel %vm3956_vm12, 1, %v4796_v16 }
  0x7e   :  { %719 = vmatprep.mubr.bf16.mxu0 %v4628_v18  ;;  %832 = vmatprep.mubr.bf16.mxu1 %v4628_v18  ;;  %v5558_v18 = vrot.slane %v205_v7, %v209_v62 }
  0x7f   :  { %3663 = vperm.xlu0 %4512, %v3660_v27   ;;  %2583 = vperm.xlu1 %4513, %v2578_v12  }
  0x83   :  { %2944 = vperm.xlu1 %4513, %v2939_v42  }
  0x85   :  { %720 = vmatmul.mubr.bf16.gmra.mrb[24].mxu0 %v4630_v24  ;;  %833 = vmatmul.mubr.bf16.gmra.mrb[24].mxu1 %v4630_v24  ;;  %v5564_v24 = vrot.slane %v205_v7, %v221_v10 }
  0x86   :  { %729 = vmatprep.mubr.bf16.mxu0 %v4631_v26  ;;  %842 = vmatprep.mubr.bf16.mxu1 %v4631_v26 }
  0x8d   :  { %730 = vmatmul.mubr.bf16.gmra.mrb[28].mxu0 %v4633_v29  ;;  %843 = vmatmul.mubr.bf16.gmra.mrb[28].mxu1 %v4633_v29 }
  0x8e   :  { %996 = vmatprep.mubr.f32.mxu0 %v6713_v30  ;;  %1073 = vmatprep.mubr.f32.mxu1 %v6713_v30 }
  0x95   :  { %997 = vmatmul.mubr.f32.vlgmr.msra.gmra.mrb[32].mxu0 %v5475_v33  ;;  %1074 = vmatmul.mubr.f32.vlgmr.msra.gmra.mrb[32].mxu1 %v5475_v33 }
  0x96   :  { %1002 = vmatprep.mubr.f32.mxu0 %v6713_v30  ;;  %1079 = vmatprep.mubr.f32.mxu1 %v6713_v30 }
  0x97   :  { %4062 = vmatpush1.bf16.msra.mxu0 %v5147_v19  ;;  %4094 = vmatpush1.bf16.msra.mxu1 %v5165_v25 }
  0x98   :  { %4064 = vmatprep.subr.bf16.mxu0 %v5160_v23  ;;  %4096 = vmatprep.subr.bf16.mxu1 %v5173_v28 }
  0x99   :  { %1003 = vmatmul.mubr.f32.gmra.mrb[34].mxu0 %v5484_v35  ;;  %1080 = vmatmul.mubr.f32.gmra.mrb[34].mxu1 %v5484_v35 }
  0x9a   :  { %1356 = vmatprep.mubr.f32.mxu0 %v6713_v30  ;;  %1433 = vmatprep.mubr.f32.mxu1 %v6713_v30 }
  0x9b   :  { %4066 = vmatpush1.bf16.msra.mxu0 %v5182_v31  ;;  %4098 = vmatpush1.bf16.msra.mxu1 %v5197_v36 }
  0x9c   :  { %4068 = vmatprep.subr.bf16.mxu0 %v5191_v34  ;;  %4100 = vmatprep.subr.bf16.mxu1 %v5231_v47 }
  0x9f   :  { %4070 = vmatpush1.bf16.msra.mxu0 %v5229_v46  ;;  %4102 = vmatpush1.bf16.msra.mxu1 %v5239_v50 }
  0xa0   :  { %4072 = vmatprep.subr.bf16.mxu0 %v5237_v49  ;;  %4104 = vmatprep.subr.bf16.mxu1 %v5250_v54 }
  0xa3   :  { %4074 = vmatpush1.bf16.msra.mxu0 %v5269_v59  ;;  %4106 = vmatpush1.bf16.msra.mxu1 %v5285_v1 }
  0xa4   :  { %4076 = vmatprep.subr.bf16.mxu0 %v5283_v0  ;;  %4108 = vmatprep.subr.bf16.mxu1 %v5320_v14 }
  0xa7   :  { %4078 = vmatpush1.bf16.msra.mxu0 %v5318_v13  ;;  %4110 = vmatpush1.bf16.msra.mxu1 %v5327_v17 }
  0xa8   :  { %4080 = vmatprep.subr.bf16.mxu0 %v5325_v15  ;;  %4112 = vmatprep.subr.bf16.mxu1 %v5338_v22 }
  0xab   :  { %4082 = vmatpush1.bf16.msra.mxu0 %v5357_v32  ;;  %4114 = vmatpush1.bf16.msra.mxu1 %v5369_v38 }
  0xac   :  { %4084 = vmatprep.subr.bf16.mxu0 %v5367_v37  ;;  %4116 = vmatprep.subr.bf16.mxu1 %v5402_v53 }
  0xaf   :  { %4086 = vmatpush1.bf16.msra.mxu0 %v5400_v52  ;;  %4118 = vmatpush1.bf16.msra.mxu1 %v5409_v56 }
  0xb0   :  { %4088 = vmatprep.subr.bf16.mxu0 %v5407_v55  ;;  %4120 = vmatprep.subr.bf16.mxu1 %v5417_v61 }
  0xb3   :  { %4090 = vmatpush1.bf16.msra.mxu0 %v5428_v3  ;;  %4122 = vmatpush1.bf16.msra.mxu1 %v5432_v5 }
  0xb4   :  { %4124 = vmatprep.subr.bf16.mxu0 %v5122_v9  ;;  %4156 = vmatprep.subr.bf16.mxu1 %v5127_v11 }
 0x128   :  { %v5531_v44 = vpop.f32.mrb[0].mxu0  ;;  %v5533_v57 = vpop.f32.mrb[0].mxu1 }
 0x129   :  { %v5535_v45 = vpop.f32.mrb[1].mxu0  ;;  %v5537_v48 = vpop.f32.mrb[1].mxu1 }
 0x12a   :  { %v5540_v58 = vpop.f32.mrb[2].mxu0  ;;  %v5542_v60 = vpop.f32.mrb[2].mxu1 }
 0x12b   :  { %v5546_v63 = vpop.f32.mrb[3].mxu0  ;;  %v5549_v6 = vpop.f32.mrb[3].mxu1 }
 0x130   :  { %v671_v26 = vpop.f32.mrb[4].mxu0  ;;  %v784_v27 = vpop.f32.mrb[4].mxu1 }
 0x131   :  { %v5567_v29 = vadd.f32 %v671_v26, %v5558_v18  ;;  %v673_v39 = vpop.f32.mrb[5].mxu0  ;;  %v5570_v40 = vadd.f32 %v784_v27, %v5560_v20  ;;  %v786_v41 = vpop.f32.mrb[5].mxu1 }
 0x132   :  { %v5574_v51 = vadd.f32 %v673_v39, %v5562_v21  ;;  %v675_v62 = vpop.f32.mrb[6].mxu0  ;;  %v5577_v2 = vadd.f32 %v786_v41, %v5564_v24  ;;  %v788_v7 = vpop.f32.mrb[6].mxu1  ;;  %v3300_v41 = vsel %vm3976_vm14, 1, %v4796_v16 }
 0x133   :  { %v5581_v8 = vadd.f32 %v675_v62, %v5558_v18  ;;  %v677_v10 = vpop.f32.mrb[7].mxu0  ;;  %v5584_v12 = vadd.f32 %v788_v7, %v5560_v20  ;;  %v790_v26 = vpop.f32.mrb[7].mxu1  ;;  %3305 = vperm.xlu1 %4513, %v3300_v41  }
 0x134   :  { %6715 = vst [vmem:[#allocation5_spill] sm:$0xff] %v5577_v2  ;;  %v5587_v27 = vadd.f32 %v677_v10, %v5562_v21  ;;  %v5590_v39 = vadd.f32 %v790_v26, %v5564_v24 }
 0x135   :  { %6716 = vst [vmem:[#allocation6_spill] sm:$0xff] %v5581_v8  ;;  %6717 = vst [vmem:[#allocation7_spill] sm:$0xff] %v5584_v12 }
 0x136   :  { %6718 = vst [vmem:[#allocation8_spill] sm:$0xff] %v5587_v27  ;;  %6719 = vst [vmem:[#allocation9_spill] sm:$0xff] %v5590_v39  ;;  %v3661_v27 = vsel %vm3986_vm15, 1, %v4796_v16 }
 0x137   :  { %3666 = vperm.xlu1 %4513, %v3661_v27  }
 0x138   :  { %v681_v30 = vpop.f32.mrb[8].mxu0  ;;  %v794_v2 = vpop.f32.mrb[8].mxu1 }
 0x139   :  { %v5595_v62 = vadd.f32 %v681_v30, %v5558_v18  ;;  %v683_v7 = vpop.f32.mrb[9].mxu0  ;;  %v5598_v12 = vadd.f32 %v794_v2, %v5560_v20  ;;  %v796_v10 = vpop.f32.mrb[9].mxu1 }
 0x13a   :  { %v5602_v26 = vadd.f32 %v683_v7, %v5562_v21  ;;  %v685_v42 = vpop.f32.mrb[10].mxu0  ;;  %v5605_v39 = vadd.f32 %v796_v10, %v5564_v24  ;;  %v798_v4 = vpop.f32.mrb[10].mxu1 }
 0x13b   :  { %6720 = vst [vmem:[#allocation10_spill] sm:$0xff] %v5595_v62  ;;  %6721 = vst [vmem:[#allocation11_spill] sm:$0xff] %v5598_v12  ;;  %v5608_v41 = vadd.f32 %v685_v42, %v5558_v18  ;;  %v687_v30 = vpop.f32.mrb[11].mxu0  ;;  %v5611_v62 = vadd.f32 %v798_v4, %v5560_v20  ;;  %v800_v2 = vpop.f32.mrb[11].mxu1 }
 0x13c   :  { %6722 = vst [vmem:[#allocation12_spill] sm:$0xff] %v5602_v26  ;;  %6723 = vst [vmem:[#allocation13_spill] sm:$0xff] %v5605_v39  ;;  %v5614_v12 = vadd.f32 %v687_v30, %v5562_v21  ;;  %v5617_v16 = vadd.f32 %v800_v2, %v5564_v24 }
 0x13d   :  { %6724 = vst [vmem:[#allocation14_spill] sm:$0xff] %v5608_v41  ;;  %6725 = vst [vmem:[#allocation15_spill] sm:$0xff] %v5611_v62 }
 0x13e   :  { %6726 = vst [vmem:[#allocation16_spill] sm:$0xff] %v5614_v12  ;;  %6727 = vst [vmem:[#allocation17_spill] sm:$0xff] %v5617_v16 }
 0x140   :  { %v691_v7 = vpop.f32.mrb[12].mxu0  ;;  %v804_v26 = vpop.f32.mrb[12].mxu1 }
 0x141   :  { %v5620_v10 = vadd.f32 %v691_v7, %v5558_v18  ;;  %v693_v39 = vpop.f32.mrb[13].mxu0  ;;  %v5623_v42 = vadd.f32 %v804_v26, %v5560_v20  ;;  %v806_v41 = vpop.f32.mrb[13].mxu1 }
 0x142   :  { %v5626_v4 = vadd.f32 %v693_v39, %v5562_v21  ;;  %v695_v62 = vpop.f32.mrb[14].mxu0  ;;  %v5629_v30 = vadd.f32 %v806_v41, %v5564_v24  ;;  %v808_v2 = vpop.f32.mrb[14].mxu1 }
 0x143   :  { %6728 = vst [vmem:[#allocation18_spill] sm:$0xff] %v5620_v10  ;;  %6729 = vst [vmem:[#allocation19_spill] sm:$0xff] %v5623_v42  ;;  %v5632_v27 = vadd.f32 %v695_v62, %v5558_v18  ;;  %v697_v16 = vpop.f32.mrb[15].mxu0  ;;  %v5635_v7 = vadd.f32 %v808_v2, %v5560_v20  ;;  %v810_v10 = vpop.f32.mrb[15].mxu1 }
 0x144   :  { %6730 = vst [vmem:[#allocation20_spill] sm:$0xff] %v5626_v4  ;;  %6731 = vst [vmem:[#allocation21_spill] sm:$0xff] %v5629_v30  ;;  %v5638_v26 = vadd.f32 %v697_v16, %v5562_v21  ;;  %v5641_v42 = vadd.f32 %v810_v10, %v5564_v24 }
 0x145   :  { %6732 = vst [vmem:[#allocation22_spill] sm:$0xff] %v5632_v27  ;;  %6733 = vst [vmem:[#allocation23_spill] sm:$0xff] %v5635_v7 }
 0x146   :  { %6734 = vst [vmem:[#allocation24_spill] sm:$0xff] %v5638_v26  ;;  %6735 = vst [vmem:[#allocation25_spill] sm:$0xff] %v5641_v42 }
 0x148   :  { %v701_v39 = vpop.f32.mrb[16].mxu0  ;;  %v814_v4 = vpop.f32.mrb[16].mxu1 }
 0x149   :  { %v5644_v41 = vadd.f32 %v701_v39, %v5558_v18  ;;  %v703_v30 = vpop.f32.mrb[17].mxu0  ;;  %v5647_v62 = vadd.f32 %v814_v4, %v5560_v20  ;;  %v816_v27 = vpop.f32.mrb[17].mxu1 }
 0x14a   :  { %v5650_v2 = vadd.f32 %v703_v30, %v5562_v21  ;;  %v705_v7 = vpop.f32.mrb[18].mxu0  ;;  %v5653_v16 = vadd.f32 %v816_v27, %v5564_v24  ;;  %v818_v26 = vpop.f32.mrb[18].mxu1 }
 0x14b   :  { %6736 = vst [vmem:[#allocation26_spill] sm:$0xff] %v5644_v41  ;;  %6737 = vst [vmem:[#allocation27_spill] sm:$0xff] %v5647_v62  ;;  %v5656_v10 = vadd.f32 %v705_v7, %v5558_v18  ;;  %v707_v42 = vpop.f32.mrb[19].mxu0  ;;  %v5659_v39 = vadd.f32 %v818_v26, %v5560_v20  ;;  %v820_v41 = vpop.f32.mrb[19].mxu1 }
 0x14c   :  { %6738 = vst [vmem:[#allocation28_spill] sm:$0xff] %v5650_v2  ;;  %6739 = vst [vmem:[#allocation29_spill] sm:$0xff] %v5653_v16  ;;  %v5662_v4 = vadd.f32 %v707_v42, %v5562_v21  ;;  %v5665_v62 = vadd.f32 %v820_v41, %v5564_v24 }
 0x14d   :  { %6740 = vst [vmem:[#allocation30_spill] sm:$0xff] %v5656_v10  ;;  %6741 = vst [vmem:[#allocation31_spill] sm:$0xff] %v5659_v39 }
 0x14e   :  { %6742 = vst [vmem:[#allocation32_spill] sm:$0xff] %v5662_v4  ;;  %6743 = vst [vmem:[#allocation33_spill] sm:$0xff] %v5665_v62 }
 0x150   :  { %v711_v30 = vpop.f32.mrb[20].mxu0  ;;  %v824_v2 = vpop.f32.mrb[20].mxu1 }
 0x151   :  { %v5668_v27 = vadd.f32 %v711_v30, %v5558_v18  ;;  %v713_v16 = vpop.f32.mrb[21].mxu0  ;;  %v5671_v7 = vadd.f32 %v824_v2, %v5560_v20  ;;  %v826_v10 = vpop.f32.mrb[21].mxu1 }
 0x152   :  { %v5674_v26 = vadd.f32 %v713_v16, %v5562_v21  ;;  %v715_v39 = vpop.f32.mrb[22].mxu0  ;;  %v5677_v42 = vadd.f32 %v826_v10, %v5564_v24  ;;  %v828_v4 = vpop.f32.mrb[22].mxu1 }
 0x153   :  { %6744 = vst [vmem:[#allocation34_spill] sm:$0xff] %v5668_v27  ;;  %6745 = vst [vmem:[#allocation35_spill] sm:$0xff] %v5671_v7  ;;  %v5680_v41 = vadd.f32 %v715_v39, %v5558_v18  ;;  %v717_v62 = vpop.f32.mrb[23].mxu0  ;;  %v5683_v30 = vadd.f32 %v828_v4, %v5560_v20  ;;  %v830_v27 = vpop.f32.mrb[23].mxu1 }
 0x154   :  { %6746 = vst [vmem:[#allocation36_spill] sm:$0xff] %v5674_v26  ;;  %6747 = vst [vmem:[#allocation37_spill] sm:$0xff] %v5677_v42  ;;  %v5686_v2 = vadd.f32 %v717_v62, %v5562_v21  ;;  %v5689_v7 = vadd.f32 %v830_v27, %v5564_v24 }
 0x155   :  { %6748 = vst [vmem:[#allocation38_spill] sm:$0xff] %v5680_v41  ;;  %6749 = vst [vmem:[#allocation39_spill] sm:$0xff] %v5683_v30 }
 0x156   :  { %6750 = vst [vmem:[#allocation40_spill] sm:$0xff] %v5686_v2  ;;  %6751 = vst [vmem:[#allocation41_spill] sm:$0xff] %v5689_v7 }
 0x158   :  { %v721_v16 = vpop.f32.mrb[24].mxu0  ;;  %v834_v26 = vpop.f32.mrb[24].mxu1 }
 0x159   :  { %v5692_v10 = vadd.f32 %v721_v16, %v5558_v18  ;;  %v723_v42 = vpop.f32.mrb[25].mxu0  ;;  %v5695_v39 = vadd.f32 %v834_v26, %v5560_v20  ;;  %v836_v41 = vpop.f32.mrb[25].mxu1 }
 0x15a   :  { %v5698_v4 = vadd.f32 %v723_v42, %v5562_v21  ;;  %v725_v30 = vpop.f32.mrb[26].mxu0  ;;  %v5701_v62 = vadd.f32 %v836_v41, %v5564_v24  ;;  %v838_v2 = vpop.f32.mrb[26].mxu1 }
 0x15b   :  { %6752 = vst [vmem:[#allocation42_spill] sm:$0xff] %v5692_v10  ;;  %6753 = vst [vmem:[#allocation43_spill] sm:$0xff] %v5695_v39  ;;  %v5704_v27 = vadd.f32 %v725_v30, %v5558_v18  ;;  %v727_v7 = vpop.f32.mrb[27].mxu0  ;;  %v5707_v16 = vadd.f32 %v838_v2, %v5560_v20  ;;  %v840_v10 = vpop.f32.mrb[27].mxu1 }
 0x15c   :  { %6754 = vst [vmem:[#allocation44_spill] sm:$0xff] %v5698_v4  ;;  %6755 = vst [vmem:[#allocation45_spill] sm:$0xff] %v5701_v62  ;;  %v5710_v26 = vadd.f32 %v727_v7, %v5562_v21  ;;  %v5713_v39 = vadd.f32 %v840_v10, %v5564_v24 }
 0x15d   :  { %6756 = vst [vmem:[#allocation46_spill] sm:$0xff] %v5704_v27  ;;  %6757 = vst [vmem:[#allocation47_spill] sm:$0xff] %v5707_v16 }
 0x15e   :  { %6758 = vst [vmem:[#allocation48_spill] sm:$0xff] %v5710_v26  ;;  %6759 = vst [vmem:[#allocation49_spill] sm:$0xff] %v5713_v39 }
 0x160   :  { %v731_v42 = vpop.f32.mrb[28].mxu0  ;;  %v844_v4 = vpop.f32.mrb[28].mxu1 }
 0x161   :  { %v5716_v41 = vadd.f32 %v731_v42, %v5558_v18  ;;  %v733_v62 = vpop.f32.mrb[29].mxu0  ;;  %v5719_v30 = vadd.f32 %v844_v4, %v5560_v20  ;;  %v846_v27 = vpop.f32.mrb[29].mxu1 }
 0x162   :  { %v5722_v2 = vadd.f32 %v733_v62, %v5562_v21  ;;  %v735_v16 = vpop.f32.mrb[30].mxu0  ;;  %v5725_v7 = vadd.f32 %v846_v27, %v5564_v24  ;;  %v848_v26 = vpop.f32.mrb[30].mxu1  ;;  %v662_v62 = vadd.f32 %v5531_v44, %v5558_v18  ;;  %v775_v27 = vadd.f32 %v5533_v57, %v5560_v20 }
 0x163   :  { %6760 = vst [vmem:[#allocation50_spill] sm:$0xff] %v5716_v41  ;;  %6761 = vst [vmem:[#allocation51_spill] sm:$0xff] %v5719_v30  ;;  %v5728_v10 = vadd.f32 %v735_v16, %v5558_v18  ;;  %v737_v39 = vpop.f32.mrb[31].mxu0  ;;  %v5731_v42 = vadd.f32 %v848_v26, %v5560_v20  ;;  %v850_v41 = vpop.f32.mrb[31].mxu1  ;;  %v664_v16 = vadd.f32 %v5535_v45, %v5562_v21 }
 0x164   :  { %6762 = vst [vmem:[#allocation52_spill] sm:$0xff] %v5722_v2  ;;  %6763 = vst [vmem:[#allocation53_spill] sm:$0xff] %v5725_v7  ;;  %v5734_v4 = vadd.f32 %v737_v39, %v5562_v21  ;;  %v5737_v30 = vadd.f32 %v850_v41, %v5564_v24  ;;  %v777_v26 = vadd.f32 %v5537_v48, %v5564_v24 }
 0x165   :  { %6764 = vst [vmem:[#allocation54_spill] sm:$0xff] %v5728_v10  ;;  %6765 = vst [vmem:[#allocation55_spill] sm:$0xff] %v5731_v42  ;;  %v666_v44 = vadd.f32 %v5540_v58, %v5558_v18  ;;  %v779_v57 = vadd.f32 %v5542_v60, %v5560_v20  ;;  %v668_v45 = vadd.f32 %v5546_v63, %v5562_v21 }
 0x166   :  { %6766 = vst [vmem:[#allocation56_spill] sm:$0xff] %v5734_v4  ;;  %6767 = vst [vmem:[#allocation57_spill] sm:$0xff] %v5737_v30  ;;  %v781_v48 = vadd.f32 %v5549_v6, %v5564_v24 }
 0x168   :  { %v998_v42 = vpop.f32.mrb[32].mxu0  ;;  %v1075_v10 = vpop.f32.mrb[32].mxu1 }
 0x169   :  { %v1086_v7 = vadd.f32 %v998_v42, %v662_v62  ;;  %v1088_v39 = vadd.f32 %v1075_v10, %v775_v27  ;;  %v1000_v4 = vpop.f32.mrb[33].mxu0  ;;  %v1077_v2 = vpop.f32.mrb[33].mxu1 }
 0x16a   :  { %v1087_v41 = vadd.f32 %v1000_v4, %v664_v16  ;;  %v1089_v30 = vadd.f32 %v1077_v2, %v777_v26 }
 0x16b   :  { %v1094_v12 = vmul.f32 0.5, %v1086_v7 }
 0x16c   :  { %v1102_v8 = vmul.f32 0.5, %v1087_v41  ;;  %v1004_v42 = vpop.f32.mrb[34].mxu0  ;;  %v1081_v10 = vpop.f32.mrb[34].mxu1  ;;  %v1112_v63 = vmul.f32 0.5, %v1089_v30 }
 0x16d   :  { %4634 = vtanh.f32 %v1094_v12  ;;  %v1090_v62 = vadd.f32 %v1004_v42, %v666_v44  ;;  %v1092_v4 = vadd.f32 %v1081_v10, %v779_v57  ;;  %v1006_v2 = vpop.f32.mrb[35].mxu0  ;;  %v1083_v27 = vpop.f32.mrb[35].mxu1 }
 0x16e   :  { %4636 = vtanh.f32 %v1102_v8  ;;  %v1091_v58 = vadd.f32 %v1006_v2, %v668_v45  ;;  %v1093_v18 = vadd.f32 %v1083_v27, %v781_v48  ;;  %v919_v8 = vld [vmem:[%s6712_s8] sm:$0xff] }
 0x16f   :  { %v1095_v16 = vmul.f32 0.5, %v1090_v62  ;;  %4638 = vtanh.f32 %v1088_v39  ;;  %v1137_v39 = vpop.permute.xlu0 %1136  ;;  %v920_v62 = vld [vmem:[%s6712_s8 + $0x8] sm:$0xff] }
 0x170   :  { %v1103_v60 = vmul.f32 0.5, %v1091_v58  ;;  %v1113_v12 = vmul.f32 0.5, %v1093_v18  ;;  %vm1141_vm0 = vcmp.eq.s32.totalorder %v1137_v39, 1 }
 0x171   :  { %4640 = vtanh.f32 %v1095_v16 }
 0x172   :  { %4642 = vtanh.f32 %v1103_v60 }
 0x173   :  { %4644 = vtanh.f32 %v1092_v4  ;;  %v1140_v60 = vpop.permute.xlu0 %1139 }
 0x174   :  { %4646 = vtanh.f32 %v1112_v63  ;;  %vm1142_vm1 = vcmp.eq.s32.totalorder %v1140_v60, 1 }
 0x175   :  { %4648 = vtanh.f32 %v1113_v12 }
 0x177   :  { %v4635_v20 = vpop.eup %4634 }
 0x178   :  { %v4637_v6 = vpop.eup %4636  ;;  %v1098_v21 = vmul.f32 0.5, %v4635_v20  ;;  %v4798_v20 = vmov 1966171168  }
 0x179   :  { %v1106_v24 = vmul.f32 0.5, %v4637_v6  ;;  %v4639_v7 = vpop.eup %4638  ;;  %v1149_v6 = vunpack.c.l.s4 %v4798_v20 }
 0x17a   :  { %v1100_v26 = vadd.f32 0.5, %v1098_v21 }
 0x17b   :  { %v4641_v41 = vpop.eup %4640  ;;  %v1108_v44 = vadd.f32 0.5, %v1106_v24 }
 0x17c   :  { %v4643_v57 = vpop.eup %4642  ;;  %v1099_v45 = vmul.f32 0.5, %v4641_v41  ;;  %v1122_v48 = vmul.f32 %v4639_v7, %v1100_v26  ;;  %v1150_v26 = vunpack.c.0.s8 %v1149_v6 }
 0x17d   :  { %v1107_v30 = vmul.f32 0.5, %v4643_v57  ;;  %v1120_v42 = vmul.f32 %v1108_v44, %v919_v8  ;;  %v4645_v4 = vpop.eup %4644 }
 0x17e   :  { %v1101_v10 = vadd.f32 0.5, %v1099_v45  ;;  %v4647_v63 = vpop.eup %4646 }
 0x17f   :  { %v1109_v2 = vadd.f32 0.5, %v1107_v30  ;;  %v1124_v27 = vadd.f32 %v1122_v48, %v1120_v42  ;;  %v1116_v12 = vmul.f32 0.5, %v4647_v63  ;;  %v4649_v7 = vpop.eup %4648 }
 0x180   :  { %v1123_v58 = vmul.f32 %v4645_v4, %v1101_v10  ;;  %v1117_v44 = vmul.f32 0.5, %v4649_v7 }
 0x181   :  { %4650 = vtanh.f32 %v1124_v27  ;;  %v5762_v18 = vsel %vm1141_vm0, %v1124_v27, %v919_v8  ;;  %v1121_v16 = vmul.f32 %v1109_v2, %v920_v62  ;;  %v1118_v41 = vadd.f32 0.5, %v1116_v12 }
 0x182   :  { %v5768_v8 = vsub.s32 %v1150_v26, %v5529_v43  ;;  %v1119_v48 = vadd.f32 0.5, %v1117_v44  ;;  %v6768_v27 = vmov 0.0  }
 0x183   :  { %v1125_v21 = vadd.f32 %v1123_v58, %v1121_v16 }
 0x185   :  { %4652 = vtanh.f32 %v1125_v21  ;;  %v5765_v24 = vsel %vm1142_vm1, %v1125_v21, %v920_v62 }
 0x18b   :  { %v4651_v57 = vpop.eup %4650 }
 0x18c   :  { %v1128_v45 = vmul.f32 %v4651_v57, %v1118_v41 }
 0x18e   :  { %v1143_v30 = vsel %vm1141_vm0, %v1128_v45, 0.0  ;;  %v5773_v42 = vsel %vm1141_vm0, %v1128_v45, %v5475_v33 }
 0x18f   :  { %v4653_v10 = vpop.eup %4652  ;;  %v1147_v62 = vcombine.high %v1143_v30, %v1143_v30  ;;  %v1154_v4 = vrot.slane %v1143_v30, %v5768_v8  ;;  %1357 = vmatmul.mubr.f32.vlgmr.msra.gmra.mrb[36].mxu0 %v5773_v42  ;;  %1434 = vmatmul.mubr.f32.vlgmr.msra.gmra.mrb[36].mxu1 %v5773_v42 }
 0x190   :  { %v1129_v2 = vmul.f32 %v4653_v10, %v1119_v48  ;;  %1362 = vmatprep.mubr.f32.mxu0 %v6768_v27  ;;  %1439 = vmatprep.mubr.f32.mxu1 %v6768_v27 }
 0x191   :  { %v1161_v43 = vrot.slane %v1147_v62, %v5768_v8  ;;  %v1162_v58 = vcombine.high %v1154_v4, %v1154_v4  ;;  %v1170_v39 = vrot.slane %v1154_v4, %v5768_v8  ;;  %3917 = vst.sshfl [vmem:[%s6710_s6] sm:$0x1 pattern:$0x73625140] %v1154_v4  ;;  %4126 = vmatpush1.bf16.msra.mxu0 %v5147_v19 }
 0x192   :  { %4158 = vmatpush1.bf16.msra.mxu1 %v5165_v25  ;;  %v1144_v33 = vsel %vm1142_vm1, %v1129_v2, 0.0  ;;  %v5790_v16 = vsel %vm1142_vm1, %v1129_v2, %v5484_v35  ;;  %4128 = vmatprep.subr.bf16.mxu0 %v5160_v23 }
 0x193   :  { %4160 = vmatprep.subr.bf16.mxu1 %v5173_v28  ;;  %v1163_v63 = vcombine.high %v1161_v43, %v1161_v43  ;;  %v1177_v20 = vrot.slane %v1161_v43, %v5768_v8  ;;  %v1184_v6 = vrot.slane %v1162_v58, %v5768_v8  ;;  %v1192_v21 = vcombine.high %v1170_v39, %v1170_v39 }
 0x194   :  { %3918 = vst.sshfl [vmem:[%s6710_s6 + $0x8] sm:$0x1 pattern:$0x73625140] %v1162_v58  ;;  %1363 = vmatmul.mubr.f32.gmra.mrb[38].mxu0 %v5790_v16  ;;  %v1196_v35 = vcombine.high %v1144_v33, %v1144_v33  ;;  %v1203_v60 = vrot.slane %v1144_v33, %v5768_v8  ;;  %1440 = vmatmul.mubr.f32.gmra.mrb[38].mxu1 %v5790_v16 }
 0x195   :  { %3919 = vst.sshfl [vmem:[%s6710_s6 + $0x20] sm:$0x1 pattern:$0x73625140] %v1161_v43  ;;  %1717 = vmatprep.mubr.f32.mxu0 %v6768_v27  ;;  %v1191_v12 = vrot.slane %v1163_v63, %v5768_v8  ;;  %v1193_v7 = vcombine.high %v1177_v20, %v1177_v20  ;;  %v1194_v26 = vcombine.high %v1184_v6, %v1184_v6  ;;  %1263 = vst [vmem:[%s6710_s6 + $0x10] sm:$0x1] %v1192_v21 }
 0x196   :  { %3920 = vst.sshfl [vmem:[%s6710_s6 + $0x28] sm:$0x1 pattern:$0x73625140] %v1163_v63  ;;  %4130 = vmatpush1.bf16.msra.mxu0 %v5182_v31  ;;  %4162 = vmatpush1.bf16.msra.mxu1 %v5197_v36  ;;  %v1210_v41 = vrot.slane %v1196_v35, %v5768_v8  ;;  %v1211_v44 = vcombine.high %v1203_v60, %v1203_v60 }
 0x197   :  { %v1219_v57 = vrot.slane %v1203_v60, %v5768_v8  ;;  %3921 = vst.sshfl [vmem:[%s6710_s6 + $0x40] sm:$0x1 pattern:$0x73625140] %v1203_v60  ;;  %4132 = vmatprep.subr.bf16.mxu0 %v5191_v34  ;;  %4164 = vmatprep.subr.bf16.mxu1 %v5231_v47  ;;  %v1195_v45 = vcombine.high %v1191_v12, %v1191_v12  ;;  %1264 = vst [vmem:[%s6710_s6 + $0x18] sm:$0x1] %v1194_v26 }
 0x198   :  { %1267 = vst [vmem:[%s6710_s6 + $0x30] sm:$0x1] %v1193_v7  ;;  %1794 = vmatprep.mubr.f32.mxu1 %v6768_v27  ;;  %v1212_v48 = vcombine.high %v1210_v41, %v1210_v41  ;;  %v1226_v30 = vrot.slane %v1210_v41, %v5768_v8  ;;  %v1233_v10 = vrot.slane %v1211_v44, %v5768_v8  ;;  %3922 = vst.sshfl [vmem:[%s6710_s6 + $0x48] sm:$0x1 pattern:$0x73625140] %v1211_v44 }
 0x199   :  { %v1241_v62 = vcombine.high %v1219_v57, %v1219_v57  ;;  %3923 = vst.sshfl [vmem:[%s6710_s6 + $0x60] sm:$0x1 pattern:$0x73625140] %v1210_v41  ;;  %1268 = vst [vmem:[%s6710_s6 + $0x38] sm:$0x1] %v1195_v45 }
 0x19a   :  { %4134 = vmatpush1.bf16.msra.mxu0 %v5229_v46  ;;  %4166 = vmatpush1.bf16.msra.mxu1 %v5239_v50  ;;  %v1240_v4 = vrot.slane %v1212_v48, %v5768_v8  ;;  %v1242_v2 = vcombine.high %v1226_v30, %v1226_v30  ;;  %v1243_v43 = vcombine.high %v1233_v10, %v1233_v10  ;;  %v6769_v60 = vld [vmem:[#allocation5_spill] sm:$0xff]  ;;  %v6770_v44 = vld [vmem:[#allocation6_spill] sm:$0xff]  ;;  %v6771_v30 = vld [vmem:[#allocation7_spill] sm:$0xff] }
 0x19b   :  { %1271 = vst [vmem:[%s6710_s6 + $0x50] sm:$0x1] %v1241_v62  ;;  %3924 = vst.sshfl [vmem:[%s6710_s6 + $0x68] sm:$0x1 pattern:$0x73625140] %v1212_v48  ;;  %4136 = vmatprep.subr.bf16.mxu0 %v5237_v49  ;;  %4168 = vmatprep.subr.bf16.mxu1 %v5250_v54 }
 0x19c   :  { %v1244_v58 = vcombine.high %v1240_v4, %v1240_v4  ;;  %1272 = vst [vmem:[%s6710_s6 + $0x58] sm:$0x1] %v1243_v43  ;;  %1275 = vst [vmem:[%s6710_s6 + $0x70] sm:$0x1] %v1242_v2  ;;  %v6773_v2 = vld [vmem:[#allocation9_spill] sm:$0xff] }
 0x19e   :  { %4138 = vmatpush1.bf16.msra.mxu0 %v5269_v59  ;;  %4170 = vmatpush1.bf16.msra.mxu1 %v5285_v1  ;;  %1276 = vst [vmem:[%s6710_s6 + $0x78] sm:$0x1] %v1244_v58 }
 0x19f   :  { %4140 = vmatprep.subr.bf16.mxu0 %v5283_v0  ;;  %4172 = vmatprep.subr.bf16.mxu1 %v5320_v14 }
 0x1a2   :  { %4142 = vmatpush1.bf16.msra.mxu0 %v5318_v13  ;;  %4174 = vmatpush1.bf16.msra.mxu1 %v5327_v17 }
 0x1a3   :  { %4144 = vmatprep.subr.bf16.mxu0 %v5325_v15  ;;  %4176 = vmatprep.subr.bf16.mxu1 %v5338_v22 }
 0x1a6   :  { %4146 = vmatpush1.bf16.msra.mxu0 %v5357_v32  ;;  %4178 = vmatpush1.bf16.msra.mxu1 %v5369_v38 }
 0x1a7   :  { %4148 = vmatprep.subr.bf16.mxu0 %v5367_v37  ;;  %4180 = vmatprep.subr.bf16.mxu1 %v5402_v53 }
 0x1aa   :  { %4150 = vmatpush1.bf16.msra.mxu0 %v5400_v52  ;;  %4182 = vmatpush1.bf16.msra.mxu1 %v5409_v56 }
 0x1ab   :  { %4152 = vmatprep.subr.bf16.mxu0 %v5407_v55  ;;  %4184 = vmatprep.subr.bf16.mxu1 %v5417_v61 }
 0x1ae   :  { %4154 = vmatpush1.bf16.msra.mxu0 %v5428_v3  ;;  %4186 = vmatpush1.bf16.msra.mxu1 %v5432_v5 }
 0x1af   :  { %4188 = vmatprep.subr.bf16.mxu0 %v5122_v9  ;;  %4220 = vmatprep.subr.bf16.mxu1 %v5127_v11 }
 0x262   :  { %v1358_v39 = vpop.f32.mrb[36].mxu0  ;;  %v1435_v33 = vpop.f32.mrb[36].mxu1 }
 0x263   :  { %v1446_v63 = vadd.f32 %v1358_v39, %v5567_v29  ;;  %v1448_v20 = vadd.f32 %v1435_v33, %v5570_v40  ;;  %v1360_v6 = vpop.f32.mrb[37].mxu0  ;;  %v1437_v21 = vpop.f32.mrb[37].mxu1  ;;  %v6772_v29 = vld [vmem:[#allocation8_spill] sm:$0xff] }
 0x264   :  { %v1447_v35 = vadd.f32 %v1360_v6, %v5574_v51  ;;  %v1449_v12 = vadd.f32 %v1437_v21, %v6769_v60 }
 0x265   :  { %v1454_v7 = vmul.f32 0.5, %v1446_v63 }
 0x266   :  { %v1462_v26 = vmul.f32 0.5, %v1447_v35  ;;  %v1472_v58 = vmul.f32 0.5, %v1449_v12 }
 0x267   :  { %v1364_v41 = vpop.f32.mrb[38].mxu0  ;;  %4654 = vtanh.f32 %v1454_v7  ;;  %v1441_v45 = vpop.f32.mrb[38].mxu1 }
 0x268   :  { %v1450_v57 = vadd.f32 %v1364_v41, %v6770_v44  ;;  %v1366_v48 = vpop.f32.mrb[39].mxu0  ;;  %4656 = vtanh.f32 %v1462_v26  ;;  %v1452_v10 = vadd.f32 %v1441_v45, %v6771_v30  ;;  %v1443_v40 = vpop.f32.mrb[39].mxu1 }
 0x269   :  { %v1451_v62 = vadd.f32 %v1366_v48, %v6772_v29  ;;  %v1453_v43 = vadd.f32 %v1443_v40, %v6773_v2  ;;  %4658 = vtanh.f32 %v1448_v20  ;;  %v1498_v41 = vpop.permute.xlu1 %1497 }
 0x26a   :  { %v1455_v4 = vmul.f32 0.5, %v1450_v57  ;;  %vm1502_vm2 = vcmp.eq.s32.totalorder %v1498_v41, 1 }
 0x26b   :  { %v1463_v51 = vmul.f32 0.5, %v1451_v62  ;;  %v1473_v21 = vmul.f32 0.5, %v1453_v43 }
 0x26c   :  { %4660 = vtanh.f32 %v1455_v4 }
 0x26d   :  { %4662 = vtanh.f32 %v1463_v51  ;;  %v1501_v2 = vpop.permute.xlu1 %1500 }
 0x26e   :  { %4664 = vtanh.f32 %v1452_v10  ;;  %vm1503_vm3 = vcmp.eq.s32.totalorder %v1501_v2, 1 }
 0x26f   :  { %4666 = vtanh.f32 %v1472_v58 }
 0x270   :  { %4668 = vtanh.f32 %v1473_v21 }
 0x271   :  { %v4655_v39 = vpop.eup %4654 }
 0x272   :  { %v4657_v33 = vpop.eup %4656  ;;  %v1458_v63 = vmul.f32 0.5, %v4655_v39 }
 0x273   :  { %v1466_v6 = vmul.f32 0.5, %v4657_v33  ;;  %v4659_v35 = vpop.eup %4658 }
 0x274   :  { %v1460_v60 = vadd.f32 0.5, %v1458_v63 }
 0x275   :  { %v1468_v26 = vadd.f32 0.5, %v1466_v6 }
 0x276   :  { %v4661_v7 = vpop.eup %4660  ;;  %v1482_v45 = vmul.f32 %v4659_v35, %v1460_v60 }
 0x277   :  { %v4663_v44 = vpop.eup %4662  ;;  %v1459_v57 = vmul.f32 0.5, %v4661_v7  ;;  %v1480_v20 = vmul.f32 %v1468_v26, %v5762_v18 }
 0x278   :  { %v1467_v48 = vmul.f32 0.5, %v4663_v44  ;;  %v4665_v30 = vpop.eup %4664 }
 0x279   :  { %v1461_v12 = vadd.f32 0.5, %v1459_v57  ;;  %v1484_v29 = vadd.f32 %v1482_v45, %v1480_v20  ;;  %v4667_v43 = vpop.eup %4666 }
 0x27a   :  { %v1469_v10 = vadd.f32 0.5, %v1467_v48  ;;  %v1476_v39 = vmul.f32 0.5, %v4667_v43  ;;  %v4669_v33 = vpop.eup %4668 }
 0x27b   :  { %v1483_v62 = vmul.f32 %v4665_v30, %v1461_v12  ;;  %4670 = vtanh.f32 %v1484_v29  ;;  %v5892_v4 = vsel %vm1502_vm2, %v1484_v29, %v5762_v18  ;;  %v1477_v6 = vmul.f32 0.5, %v4669_v33 }
 0x27c   :  { %v1481_v40 = vmul.f32 %v1469_v10, %v5765_v24  ;;  %v1478_v63 = vadd.f32 0.5, %v1476_v39 }
 0x27d   :  { %v1479_v60 = vadd.f32 0.5, %v1477_v6 }
 0x27e   :  { %v1485_v51 = vadd.f32 %v1483_v62, %v1481_v40 }
 0x280   :  { %4672 = vtanh.f32 %v1485_v51  ;;  %v5896_v58 = vsel %vm1503_vm3, %v1485_v51, %v5765_v24 }
 0x285   :  { %v4671_v21 = vpop.eup %4670 }
 0x286   :  { %v1488_v35 = vmul.f32 %v4671_v21, %v1478_v63 }
 0x288   :  { %v1504_v7 = vsel %vm1502_vm2, %v1488_v35, 0.0  ;;  %v5901_v18 = vsel %vm1502_vm2, %v1488_v35, %v5773_v42 }
 0x289   :  { %v1508_v44 = vcombine.high %v1504_v7, %v1504_v7  ;;  %v1515_v57 = vrot.slane %v1504_v7, %v5768_v8  ;;  %1718 = vmatmul.mubr.f32.vlgmr.msra.gmra.mrb[40].mxu0 %v5901_v18  ;;  %1795 = vmatmul.mubr.f32.vlgmr.msra.gmra.mrb[40].mxu1 %v5901_v18 }
 0x28a   :  { %v4673_v26 = vpop.eup %4672  ;;  %1723 = vmatprep.mubr.f32.mxu0 %v6768_v27  ;;  %1800 = vmatprep.mubr.f32.mxu1 %v6768_v27 }
 0x28b   :  { %v1489_v24 = vmul.f32 %v4673_v26, %v1479_v60  ;;  %v1522_v45 = vrot.slane %v1508_v44, %v5768_v8  ;;  %v1523_v20 = vcombine.high %v1515_v57, %v1515_v57  ;;  %v1531_v41 = vrot.slane %v1515_v57, %v5768_v8  ;;  %3927 = vst.sshfl [vmem:[%s6710_s6 + $0x1] sm:$0x1 pattern:$0x73625140] %v1515_v57 }
 0x28c   :  { %4190 = vmatpush1.bf16.msra.mxu0 %v5147_v19  ;;  %4222 = vmatpush1.bf16.msra.mxu1 %v5165_v25 }
 0x28d   :  { %v1505_v42 = vsel %vm1503_vm3, %v1489_v24, 0.0  ;;  %v5918_v48 = vsel %vm1503_vm3, %v1489_v24, %v5790_v16  ;;  %4192 = vmatprep.subr.bf16.mxu0 %v5160_v23  ;;  %4224 = vmatprep.subr.bf16.mxu1 %v5173_v28  ;;  %v1524_v12 = vcombine.high %v1522_v45, %v1522_v45  ;;  %v1538_v30 = vrot.slane %v1522_v45, %v5768_v8 }
 0x28e   :  { %v1545_v10 = vrot.slane %v1523_v20, %v5768_v8  ;;  %v1553_v29 = vcombine.high %v1531_v41, %v1531_v41  ;;  %3928 = vst.sshfl [vmem:[%s6710_s6 + $0x9] sm:$0x1 pattern:$0x73625140] %v1523_v20  ;;  %1724 = vmatmul.mubr.f32.gmra.mrb[42].mxu0 %v5918_v48  ;;  %v1557_v16 = vcombine.high %v1505_v42, %v1505_v42  ;;  %v6774_v20 = vld [vmem:[#allocation10_spill] sm:$0xff] }
 0x28f   :  { %3929 = vst.sshfl [vmem:[%s6710_s6 + $0x21] sm:$0x1 pattern:$0x73625140] %v1522_v45  ;;  %v1564_v62 = vrot.slane %v1505_v42, %v5768_v8  ;;  %1801 = vmatmul.mubr.f32.gmra.mrb[42].mxu1 %v5918_v48  ;;  %2078 = vmatprep.mubr.f32.mxu0 %v6768_v27  ;;  %v1552_v40 = vrot.slane %v1524_v12, %v5768_v8  ;;  %v6775_v42 = vld [vmem:[#allocation11_spill] sm:$0xff] }
 0x290   :  { %v1554_v2 = vcombine.high %v1538_v30, %v1538_v30  ;;  %v1555_v43 = vcombine.high %v1545_v10, %v1545_v10  ;;  %1624 = vst [vmem:[%s6710_s6 + $0x11] sm:$0x1] %v1553_v29  ;;  %3930 = vst.sshfl [vmem:[%s6710_s6 + $0x29] sm:$0x1 pattern:$0x73625140] %v1524_v12  ;;  %4194 = vmatpush1.bf16.msra.mxu0 %v5182_v31  ;;  %4226 = vmatpush1.bf16.msra.mxu1 %v5197_v36 }
 0x291   :  { %v1571_v51 = vrot.slane %v1557_v16, %v5768_v8  ;;  %v1572_v39 = vcombine.high %v1564_v62, %v1564_v62  ;;  %v1580_v33 = vrot.slane %v1564_v62, %v5768_v8  ;;  %3931 = vst.sshfl [vmem:[%s6710_s6 + $0x41] sm:$0x1 pattern:$0x73625140] %v1564_v62  ;;  %4196 = vmatprep.subr.bf16.mxu0 %v5191_v34  ;;  %v6776_v29 = vld [vmem:[#allocation12_spill] sm:$0xff]  ;;  %v6777_v62 = vld [vmem:[#allocation13_spill] sm:$0xff] }
 0x292   :  { %4228 = vmatprep.subr.bf16.mxu1 %v5231_v47  ;;  %v1556_v63 = vcombine.high %v1552_v40, %v1552_v40  ;;  %1625 = vst [vmem:[%s6710_s6 + $0x19] sm:$0x1] %v1555_v43  ;;  %1628 = vst [vmem:[%s6710_s6 + $0x31] sm:$0x1] %v1554_v2  ;;  %2155 = vmatprep.mubr.f32.mxu1 %v6768_v27 }
 0x293   :  { %v1573_v6 = vcombine.high %v1571_v51, %v1571_v51  ;;  %v1587_v21 = vrot.slane %v1571_v51, %v5768_v8  ;;  %v1594_v35 = vrot.slane %v1572_v39, %v5768_v8  ;;  %v1602_v60 = vcombine.high %v1580_v33, %v1580_v33  ;;  %3932 = vst.sshfl [vmem:[%s6710_s6 + $0x49] sm:$0x1 pattern:$0x73625140] %v1572_v39  ;;  %v6778_v39 = vld [vmem:[#allocation14_spill] sm:$0xff] }
 0x294   :  { %3933 = vst.sshfl [vmem:[%s6710_s6 + $0x61] sm:$0x1 pattern:$0x73625140] %v1571_v51  ;;  %1629 = vst [vmem:[%s6710_s6 + $0x39] sm:$0x1] %v1556_v63  ;;  %4198 = vmatpush1.bf16.msra.mxu0 %v5229_v46  ;;  %4230 = vmatpush1.bf16.msra.mxu1 %v5239_v50 }
 0x295   :  { %v1601_v7 = vrot.slane %v1573_v6, %v5768_v8  ;;  %v1603_v26 = vcombine.high %v1587_v21, %v1587_v21  ;;  %v1604_v44 = vcombine.high %v1594_v35, %v1594_v35  ;;  %1632 = vst [vmem:[%s6710_s6 + $0x51] sm:$0x1] %v1602_v60  ;;  %3934 = vst.sshfl [vmem:[%s6710_s6 + $0x69] sm:$0x1 pattern:$0x73625140] %v1573_v6  ;;  %4200 = vmatprep.subr.bf16.mxu0 %v5237_v49 }
 0x296   :  { %4232 = vmatprep.subr.bf16.mxu1 %v5250_v54  ;;  %v6779_v21 = vld [vmem:[#allocation15_spill] sm:$0xff]  ;;  %v6780_v60 = vld [vmem:[#allocation16_spill] sm:$0xff] }
 0x297   :  { %v1605_v57 = vcombine.high %v1601_v7, %v1601_v7  ;;  %1633 = vst [vmem:[%s6710_s6 + $0x59] sm:$0x1] %v1604_v44  ;;  %1636 = vst [vmem:[%s6710_s6 + $0x71] sm:$0x1] %v1603_v26 }
 0x298   :  { %4202 = vmatpush1.bf16.msra.mxu0 %v5269_v59  ;;  %4234 = vmatpush1.bf16.msra.mxu1 %v5285_v1 }
 0x299   :  { %1637 = vst [vmem:[%s6710_s6 + $0x79] sm:$0x1] %v1605_v57  ;;  %4204 = vmatprep.subr.bf16.mxu0 %v5283_v0  ;;  %4236 = vmatprep.subr.bf16.mxu1 %v5320_v14  ;;  %v6781_v57 = vld [vmem:[#allocation17_spill] sm:$0xff] }
 0x29c   :  { %4206 = vmatpush1.bf16.msra.mxu0 %v5318_v13  ;;  %4238 = vmatpush1.bf16.msra.mxu1 %v5327_v17 }
 0x29d   :  { %4208 = vmatprep.subr.bf16.mxu0 %v5325_v15  ;;  %4240 = vmatprep.subr.bf16.mxu1 %v5338_v22 }
 0x2a0   :  { %4210 = vmatpush1.bf16.msra.mxu0 %v5357_v32  ;;  %4242 = vmatpush1.bf16.msra.mxu1 %v5369_v38 }
 0x2a1   :  { %4212 = vmatprep.subr.bf16.mxu0 %v5367_v37  ;;  %4244 = vmatprep.subr.bf16.mxu1 %v5402_v53 }
 0x2a4   :  { %4214 = vmatpush1.bf16.msra.mxu0 %v5400_v52  ;;  %4246 = vmatpush1.bf16.msra.mxu1 %v5409_v56 }
 0x2a5   :  { %4216 = vmatprep.subr.bf16.mxu0 %v5407_v55  ;;  %4248 = vmatprep.subr.bf16.mxu1 %v5417_v61 }
 0x2a8   :  { %4218 = vmatpush1.bf16.msra.mxu0 %v5428_v3  ;;  %4250 = vmatpush1.bf16.msra.mxu1 %v5432_v5 }
 0x2a9   :  { %4252 = vmatprep.subr.bf16.mxu0 %v5122_v9  ;;  %4284 = vmatprep.subr.bf16.mxu1 %v5127_v11 }
 0x35c   :  { %v1719_v24 = vpop.f32.mrb[40].mxu0  ;;  %v1796_v45 = vpop.f32.mrb[40].mxu1 }
 0x35d   :  { %v1807_v41 = vadd.f32 %v1719_v24, %v6774_v20  ;;  %v1809_v12 = vadd.f32 %v1796_v45, %v6775_v42  ;;  %v1721_v30 = vpop.f32.mrb[41].mxu0  ;;  %v1798_v10 = vpop.f32.mrb[41].mxu1 }
 0x35e   :  { %v1808_v16 = vadd.f32 %v1721_v30, %v6776_v29  ;;  %v1810_v40 = vadd.f32 %v1798_v10, %v6777_v62 }
 0x35f   :  { %v1815_v2 = vmul.f32 0.5, %v1807_v41 }
 0x360   :  { %v1823_v43 = vmul.f32 0.5, %v1808_v16  ;;  %v1833_v20 = vmul.f32 0.5, %v1810_v40 }
 0x361   :  { %v1725_v51 = vpop.f32.mrb[42].mxu0  ;;  %4674 = vtanh.f32 %v1815_v2 }
 0x362   :  { %v1811_v33 = vadd.f32 %v1725_v51, %v6778_v39  ;;  %v1802_v63 = vpop.f32.mrb[42].mxu1  ;;  %v1727_v6 = vpop.f32.mrb[43].mxu0  ;;  %4676 = vtanh.f32 %v1823_v43 }
 0x363   :  { %v1813_v35 = vadd.f32 %v1802_v63, %v6779_v21  ;;  %v1812_v7 = vadd.f32 %v1727_v6, %v6780_v60  ;;  %v1804_v26 = vpop.f32.mrb[43].mxu1  ;;  %4678 = vtanh.f32 %v1809_v12  ;;  %v1859_v21 = vpop.permute.xlu0 %1858 }
 0x364   :  { %v1816_v44 = vmul.f32 0.5, %v1811_v33  ;;  %v1814_v24 = vadd.f32 %v1804_v26, %v6781_v57  ;;  %vm1863_vm4 = vcmp.eq.s32.totalorder %v1859_v21, 1 }
 0x365   :  { %v1824_v45 = vmul.f32 0.5, %v1812_v7 }
 0x366   :  { %4680 = vtanh.f32 %v1816_v44  ;;  %v1834_v29 = vmul.f32 0.5, %v1814_v24  ;;  %v1862_v24 = vpop.permute.xlu1 %1861 }
 0x367   :  { %4682 = vtanh.f32 %v1824_v45  ;;  %vm1864_vm5 = vcmp.eq.s32.totalorder %v1862_v24, 1 }
 0x368   :  { %4684 = vtanh.f32 %v1813_v35 }
 0x369   :  { %4686 = vtanh.f32 %v1833_v20 }
 0x36a   :  { %4688 = vtanh.f32 %v1834_v29 }
 0x36b   :  { %v4675_v41 = vpop.eup %4674 }
 0x36c   :  { %v4677_v42 = vpop.eup %4676  ;;  %v1819_v30 = vmul.f32 0.5, %v4675_v41 }
 0x36d   :  { %v1827_v10 = vmul.f32 0.5, %v4677_v42  ;;  %v4679_v16 = vpop.eup %4678 }
 0x36e   :  { %v1821_v62 = vadd.f32 0.5, %v1819_v30 }
 0x36f   :  { %v1829_v43 = vadd.f32 0.5, %v1827_v10 }
 0x370   :  { %v4681_v2 = vpop.eup %4680  ;;  %v1843_v39 = vmul.f32 %v4679_v16, %v1821_v62 }
 0x371   :  { %v4683_v51 = vpop.eup %4682  ;;  %v1820_v33 = vmul.f32 0.5, %v4681_v2  ;;  %v1841_v12 = vmul.f32 %v1829_v43, %v5892_v4 }
 0x372   :  { %v1828_v63 = vmul.f32 0.5, %v4683_v51  ;;  %v4685_v40 = vpop.eup %4684 }
 0x373   :  { %v1822_v6 = vadd.f32 0.5, %v1820_v33  ;;  %v1845_v35 = vadd.f32 %v1843_v39, %v1841_v12  ;;  %v4687_v57 = vpop.eup %4686 }
 0x374   :  { %v1830_v60 = vadd.f32 0.5, %v1828_v63  ;;  %v1837_v41 = vmul.f32 0.5, %v4687_v57  ;;  %v4689_v42 = vpop.eup %4688 }
 0x375   :  { %v1844_v7 = vmul.f32 %v4685_v40, %v1822_v6  ;;  %4690 = vtanh.f32 %v1845_v35  ;;  %v6020_v44 = vsel %vm1863_vm4, %v1845_v35, %v5892_v4  ;;  %v1838_v10 = vmul.f32 0.5, %v4689_v42 }
 0x376   :  { %v1842_v26 = vmul.f32 %v1830_v60, %v5896_v58  ;;  %v1839_v30 = vadd.f32 0.5, %v1837_v41 }
 0x377   :  { %v1840_v2 = vadd.f32 0.5, %v1838_v10 }
 0x378   :  { %v1846_v45 = vadd.f32 %v1844_v7, %v1842_v26 }
 0x37a   :  { %4692 = vtanh.f32 %v1846_v45  ;;  %v6024_v20 = vsel %vm1864_vm5, %v1846_v45, %v5896_v58 }
 0x37f   :  { %v4691_v29 = vpop.eup %4690 }
 0x380   :  { %v1849_v16 = vmul.f32 %v4691_v29, %v1839_v30 }
 0x382   :  { %v1865_v62 = vsel %vm1863_vm4, %v1849_v16, 0.0  ;;  %v6029_v4 = vsel %vm1863_vm4, %v1849_v16, %v5901_v18 }
 0x383   :  { %v1869_v51 = vcombine.high %v1865_v62, %v1865_v62  ;;  %v1876_v39 = vrot.slane %v1865_v62, %v5768_v8  ;;  %2079 = vmatmul.mubr.f32.vlgmr.msra.gmra.mrb[44].mxu0 %v6029_v4  ;;  %2156 = vmatmul.mubr.f32.vlgmr.msra.gmra.mrb[44].mxu1 %v6029_v4 }
 0x384   :  { %v4693_v43 = vpop.eup %4692  ;;  %2084 = vmatprep.mubr.f32.mxu0 %v6768_v27  ;;  %2161 = vmatprep.mubr.f32.mxu1 %v6768_v27 }
 0x385   :  { %v1850_v58 = vmul.f32 %v4693_v43, %v1840_v2  ;;  %v1883_v33 = vrot.slane %v1869_v51, %v5768_v8  ;;  %v1884_v12 = vcombine.high %v1876_v39, %v1876_v39  ;;  %v1892_v63 = vrot.slane %v1876_v39, %v5768_v8  ;;  %3937 = vst.sshfl [vmem:[%s6710_s6 + $0x2] sm:$0x1 pattern:$0x73625140] %v1876_v39 }
 0x386   :  { %4254 = vmatpush1.bf16.msra.mxu0 %v5147_v19  ;;  %4286 = vmatpush1.bf16.msra.mxu1 %v5165_v25 }
 0x387   :  { %v1866_v18 = vsel %vm1864_vm5, %v1850_v58, 0.0  ;;  %v6046_v6 = vsel %vm1864_vm5, %v1850_v58, %v5918_v48  ;;  %4256 = vmatprep.subr.bf16.mxu0 %v5160_v23  ;;  %4288 = vmatprep.subr.bf16.mxu1 %v5173_v28  ;;  %v1885_v40 = vcombine.high %v1883_v33, %v1883_v33  ;;  %v1899_v21 = vrot.slane %v1883_v33, %v5768_v8 }
 0x388   :  { %v1906_v35 = vrot.slane %v1884_v12, %v5768_v8  ;;  %v1914_v60 = vcombine.high %v1892_v63, %v1892_v63  ;;  %3938 = vst.sshfl [vmem:[%s6710_s6 + $0xa] sm:$0x1 pattern:$0x73625140] %v1884_v12  ;;  %2085 = vmatmul.mubr.f32.gmra.mrb[46].mxu0 %v6046_v6  ;;  %v1918_v48 = vcombine.high %v1866_v18, %v1866_v18  ;;  %v6782_v12 = vld [vmem:[#allocation18_spill] sm:$0xff] }
 0x389   :  { %3939 = vst.sshfl [vmem:[%s6710_s6 + $0x22] sm:$0x1 pattern:$0x73625140] %v1883_v33  ;;  %v1925_v7 = vrot.slane %v1866_v18, %v5768_v8  ;;  %2162 = vmatmul.mubr.f32.gmra.mrb[46].mxu1 %v6046_v6  ;;  %2439 = vmatprep.mubr.f32.mxu0 %v6768_v27  ;;  %v1913_v26 = vrot.slane %v1885_v40, %v5768_v8  ;;  %v6783_v18 = vld [vmem:[#allocation19_spill] sm:$0xff] }
 0x38a   :  { %v1915_v57 = vcombine.high %v1899_v21, %v1899_v21  ;;  %v1916_v24 = vcombine.high %v1906_v35, %v1906_v35  ;;  %1985 = vst [vmem:[%s6710_s6 + $0x12] sm:$0x1] %v1914_v60  ;;  %3940 = vst.sshfl [vmem:[%s6710_s6 + $0x2a] sm:$0x1 pattern:$0x73625140] %v1885_v40  ;;  %4258 = vmatpush1.bf16.msra.mxu0 %v5182_v31  ;;  %4290 = vmatpush1.bf16.msra.mxu1 %v5197_v36 }
 0x38b   :  { %v1932_v45 = vrot.slane %v1918_v48, %v5768_v8  ;;  %v1933_v41 = vcombine.high %v1925_v7, %v1925_v7  ;;  %v1941_v42 = vrot.slane %v1925_v7, %v5768_v8  ;;  %3941 = vst.sshfl [vmem:[%s6710_s6 + $0x42] sm:$0x1 pattern:$0x73625140] %v1925_v7  ;;  %4260 = vmatprep.subr.bf16.mxu0 %v5191_v34  ;;  %v6784_v60 = vld [vmem:[#allocation20_spill] sm:$0xff]  ;;  %v6785_v7 = vld [vmem:[#allocation21_spill] sm:$0xff] }
 0x38c   :  { %4292 = vmatprep.subr.bf16.mxu1 %v5231_v47  ;;  %v1917_v30 = vcombine.high %v1913_v26, %v1913_v26  ;;  %1986 = vst [vmem:[%s6710_s6 + $0x1a] sm:$0x1] %v1916_v24  ;;  %1989 = vst [vmem:[%s6710_s6 + $0x32] sm:$0x1] %v1915_v57  ;;  %2516 = vmatprep.mubr.f32.mxu1 %v6768_v27 }
 0x38d   :  { %v1934_v10 = vcombine.high %v1932_v45, %v1932_v45  ;;  %v1948_v29 = vrot.slane %v1932_v45, %v5768_v8  ;;  %v1955_v16 = vrot.slane %v1933_v41, %v5768_v8  ;;  %v1963_v62 = vcombine.high %v1941_v42, %v1941_v42  ;;  %3942 = vst.sshfl [vmem:[%s6710_s6 + $0x4a] sm:$0x1 pattern:$0x73625140] %v1933_v41  ;;  %v6786_v41 = vld [vmem:[#allocation22_spill] sm:$0xff] }
 0x38e   :  { %3943 = vst.sshfl [vmem:[%s6710_s6 + $0x62] sm:$0x1 pattern:$0x73625140] %v1932_v45  ;;  %1990 = vst [vmem:[%s6710_s6 + $0x3a] sm:$0x1] %v1917_v30  ;;  %4262 = vmatpush1.bf16.msra.mxu0 %v5229_v46  ;;  %4294 = vmatpush1.bf16.msra.mxu1 %v5239_v50 }
 0x38f   :  { %v1962_v2 = vrot.slane %v1934_v10, %v5768_v8  ;;  %v1964_v43 = vcombine.high %v1948_v29, %v1948_v29  ;;  %v1965_v51 = vcombine.high %v1955_v16, %v1955_v16  ;;  %1993 = vst [vmem:[%s6710_s6 + $0x52] sm:$0x1] %v1963_v62  ;;  %3944 = vst.sshfl [vmem:[%s6710_s6 + $0x6a] sm:$0x1 pattern:$0x73625140] %v1934_v10  ;;  %4264 = vmatprep.subr.bf16.mxu0 %v5237_v49 }
 0x390   :  { %4296 = vmatprep.subr.bf16.mxu1 %v5250_v54  ;;  %v6787_v29 = vld [vmem:[#allocation23_spill] sm:$0xff]  ;;  %v6788_v62 = vld [vmem:[#allocation24_spill] sm:$0xff] }
 0x391   :  { %v1966_v39 = vcombine.high %v1962_v2, %v1962_v2  ;;  %1994 = vst [vmem:[%s6710_s6 + $0x5a] sm:$0x1] %v1965_v51  ;;  %1997 = vst [vmem:[%s6710_s6 + $0x72] sm:$0x1] %v1964_v43 }
 0x392   :  { %4266 = vmatpush1.bf16.msra.mxu0 %v5269_v59  ;;  %4298 = vmatpush1.bf16.msra.mxu1 %v5285_v1 }
 0x393   :  { %1998 = vst [vmem:[%s6710_s6 + $0x7a] sm:$0x1] %v1966_v39  ;;  %4268 = vmatprep.subr.bf16.mxu0 %v5283_v0  ;;  %4300 = vmatprep.subr.bf16.mxu1 %v5320_v14  ;;  %v6789_v39 = vld [vmem:[#allocation25_spill] sm:$0xff] }
 0x396   :  { %4270 = vmatpush1.bf16.msra.mxu0 %v5318_v13  ;;  %4302 = vmatpush1.bf16.msra.mxu1 %v5327_v17 }
 0x397   :  { %4272 = vmatprep.subr.bf16.mxu0 %v5325_v15  ;;  %4304 = vmatprep.subr.bf16.mxu1 %v5338_v22 }
 0x39a   :  { %4274 = vmatpush1.bf16.msra.mxu0 %v5357_v32  ;;  %4306 = vmatpush1.bf16.msra.mxu1 %v5369_v38 }
 0x39b   :  { %4276 = vmatprep.subr.bf16.mxu0 %v5367_v37  ;;  %4308 = vmatprep.subr.bf16.mxu1 %v5402_v53 }
 0x39e   :  { %4278 = vmatpush1.bf16.msra.mxu0 %v5400_v52  ;;  %4310 = vmatpush1.bf16.msra.mxu1 %v5409_v56 }
 0x39f   :  { %4280 = vmatprep.subr.bf16.mxu0 %v5407_v55  ;;  %4312 = vmatprep.subr.bf16.mxu1 %v5417_v61 }
 0x3a2   :  { %4282 = vmatpush1.bf16.msra.mxu0 %v5428_v3  ;;  %4314 = vmatpush1.bf16.msra.mxu1 %v5432_v5 }
 0x3a3   :  { %4316 = vmatprep.subr.bf16.mxu0 %v5122_v9  ;;  %4348 = vmatprep.subr.bf16.mxu1 %v5127_v11 }
 0x456   :  { %v2080_v58 = vpop.f32.mrb[44].mxu0  ;;  %v2157_v33 = vpop.f32.mrb[44].mxu1 }
 0x457   :  { %v2168_v63 = vadd.f32 %v2080_v58, %v6782_v12  ;;  %v2170_v40 = vadd.f32 %v2157_v33, %v6783_v18  ;;  %v2082_v21 = vpop.f32.mrb[45].mxu0  ;;  %v2159_v35 = vpop.f32.mrb[45].mxu1 }
 0x458   :  { %v2169_v48 = vadd.f32 %v2082_v21, %v6784_v60  ;;  %v2171_v26 = vadd.f32 %v2159_v35, %v6785_v7 }
 0x459   :  { %v2176_v57 = vmul.f32 0.5, %v2168_v63 }
 0x45a   :  { %v2184_v24 = vmul.f32 0.5, %v2169_v48  ;;  %v2194_v12 = vmul.f32 0.5, %v2171_v26 }
 0x45b   :  { %v2086_v45 = vpop.f32.mrb[46].mxu0  ;;  %4694 = vtanh.f32 %v2176_v57 }
 0x45c   :  { %v2172_v42 = vadd.f32 %v2086_v45, %v6786_v41  ;;  %v2163_v30 = vpop.f32.mrb[46].mxu1  ;;  %v2088_v10 = vpop.f32.mrb[47].mxu0  ;;  %4696 = vtanh.f32 %v2184_v24 }
 0x45d   :  { %v2174_v16 = vadd.f32 %v2163_v30, %v6787_v29  ;;  %v2173_v2 = vadd.f32 %v2088_v10, %v6788_v62  ;;  %v2165_v43 = vpop.f32.mrb[47].mxu1  ;;  %4698 = vtanh.f32 %v2170_v40  ;;  %v2220_v29 = vpop.permute.xlu0 %2219 }
 0x45e   :  { %v2177_v51 = vmul.f32 0.5, %v2172_v42  ;;  %v2175_v58 = vadd.f32 %v2165_v43, %v6789_v39  ;;  %vm2224_vm6 = vcmp.eq.s32.totalorder %v2220_v29, 1 }
 0x45f   :  { %v2185_v33 = vmul.f32 0.5, %v2173_v2 }
 0x460   :  { %4700 = vtanh.f32 %v2177_v51  ;;  %v2195_v60 = vmul.f32 0.5, %v2175_v58  ;;  %v2223_v58 = vpop.permute.xlu1 %2222 }
 0x461   :  { %4702 = vtanh.f32 %v2185_v33  ;;  %vm2225_vm7 = vcmp.eq.s32.totalorder %v2223_v58, 1 }
 0x462   :  { %4704 = vtanh.f32 %v2174_v16 }
 0x463   :  { %4706 = vtanh.f32 %v2194_v12 }
 0x464   :  { %4708 = vtanh.f32 %v2195_v60 }
 0x465   :  { %v4695_v63 = vpop.eup %4694 }
 0x466   :  { %v4697_v18 = vpop.eup %4696  ;;  %v2180_v21 = vmul.f32 0.5, %v4695_v63 }
 0x467   :  { %v2188_v35 = vmul.f32 0.5, %v4697_v18  ;;  %v4699_v48 = vpop.eup %4698 }
 0x468   :  { %v2182_v7 = vadd.f32 0.5, %v2180_v21 }
 0x469   :  { %v2190_v24 = vadd.f32 0.5, %v2188_v35 }
 0x46a   :  { %v4701_v57 = vpop.eup %4700  ;;  %v2204_v41 = vmul.f32 %v4699_v48, %v2182_v7 }
 0x46b   :  { %v4703_v45 = vpop.eup %4702  ;;  %v2181_v42 = vmul.f32 0.5, %v4701_v57  ;;  %v2202_v40 = vmul.f32 %v2190_v24, %v6020_v44 }
 0x46c   :  { %v2189_v30 = vmul.f32 0.5, %v4703_v45  ;;  %v4705_v26 = vpop.eup %4704 }
 0x46d   :  { %v2183_v10 = vadd.f32 0.5, %v2181_v42  ;;  %v2206_v16 = vadd.f32 %v2204_v41, %v2202_v40  ;;  %v4707_v39 = vpop.eup %4706 }
 0x46e   :  { %v2191_v62 = vadd.f32 0.5, %v2189_v30  ;;  %v2198_v63 = vmul.f32 0.5, %v4707_v39  ;;  %v4709_v18 = vpop.eup %4708 }
 0x46f   :  { %v2205_v2 = vmul.f32 %v4705_v26, %v2183_v10  ;;  %4710 = vtanh.f32 %v2206_v16  ;;  %v6148_v51 = vsel %vm2224_vm6, %v2206_v16, %v6020_v44  ;;  %v2199_v35 = vmul.f32 0.5, %v4709_v18 }
 0x470   :  { %v2203_v43 = vmul.f32 %v2191_v62, %v6024_v20  ;;  %v2200_v21 = vadd.f32 0.5, %v2198_v63 }
 0x471   :  { %v2201_v57 = vadd.f32 0.5, %v2199_v35 }
 0x472   :  { %v2207_v33 = vadd.f32 %v2205_v2, %v2203_v43 }
 0x474   :  { %4712 = vtanh.f32 %v2207_v33  ;;  %v6152_v12 = vsel %vm2225_vm7, %v2207_v33, %v6024_v20 }
 0x479   :  { %v4711_v60 = vpop.eup %4710 }
 0x47a   :  { %v2210_v48 = vmul.f32 %v4711_v60, %v2200_v21 }
 0x47c   :  { %v2226_v7 = vsel %vm2224_vm6, %v2210_v48, 0.0  ;;  %v6157_v44 = vsel %vm2224_vm6, %v2210_v48, %v6029_v4 }
 0x47d   :  { %v2230_v45 = vcombine.high %v2226_v7, %v2226_v7  ;;  %v2237_v41 = vrot.slane %v2226_v7, %v5768_v8  ;;  %2440 = vmatmul.mubr.f32.vlgmr.msra.gmra.mrb[48].mxu0 %v6157_v44  ;;  %2517 = vmatmul.mubr.f32.vlgmr.msra.gmra.mrb[48].mxu1 %v6157_v44 }
 0x47e   :  { %v4713_v24 = vpop.eup %4712  ;;  %2445 = vmatprep.mubr.f32.mxu0 %v6768_v27  ;;  %2522 = vmatprep.mubr.f32.mxu1 %v6768_v27 }
 0x47f   :  { %v2211_v20 = vmul.f32 %v4713_v24, %v2201_v57  ;;  %v2244_v42 = vrot.slane %v2230_v45, %v5768_v8  ;;  %v2245_v40 = vcombine.high %v2237_v41, %v2237_v41  ;;  %v2253_v30 = vrot.slane %v2237_v41, %v5768_v8  ;;  %3947 = vst.sshfl [vmem:[%s6710_s6 + $0x3] sm:$0x1 pattern:$0x73625140] %v2237_v41 }
 0x480   :  { %4318 = vmatpush1.bf16.msra.mxu0 %v5147_v19  ;;  %4350 = vmatpush1.bf16.msra.mxu1 %v5165_v25 }
 0x481   :  { %v2227_v4 = vsel %vm2225_vm7, %v2211_v20, 0.0  ;;  %v6174_v10 = vsel %vm2225_vm7, %v2211_v20, %v6046_v6  ;;  %4320 = vmatprep.subr.bf16.mxu0 %v5160_v23  ;;  %4352 = vmatprep.subr.bf16.mxu1 %v5173_v28  ;;  %v2246_v26 = vcombine.high %v2244_v42, %v2244_v42  ;;  %v2260_v29 = vrot.slane %v2244_v42, %v5768_v8 }
 0x482   :  { %v2267_v16 = vrot.slane %v2245_v40, %v5768_v8  ;;  %v2275_v62 = vcombine.high %v2253_v30, %v2253_v30  ;;  %3948 = vst.sshfl [vmem:[%s6710_s6 + $0xb] sm:$0x1 pattern:$0x73625140] %v2245_v40  ;;  %2446 = vmatmul.mubr.f32.gmra.mrb[50].mxu0 %v6174_v10  ;;  %v2279_v6 = vcombine.high %v2227_v4, %v2227_v4  ;;  %v6790_v40 = vld [vmem:[#allocation26_spill] sm:$0xff] }
 0x483   :  { %3949 = vst.sshfl [vmem:[%s6710_s6 + $0x23] sm:$0x1 pattern:$0x73625140] %v2244_v42  ;;  %v2286_v2 = vrot.slane %v2227_v4, %v5768_v8  ;;  %2523 = vmatmul.mubr.f32.gmra.mrb[50].mxu1 %v6174_v10  ;;  %2800 = vmatprep.mubr.f32.mxu0 %v6768_v27  ;;  %v2274_v43 = vrot.slane %v2246_v26, %v5768_v8  ;;  %v6791_v4 = vld [vmem:[#allocation27_spill] sm:$0xff] }
 0x484   :  { %v2276_v39 = vcombine.high %v2260_v29, %v2260_v29  ;;  %v2277_v58 = vcombine.high %v2267_v16, %v2267_v16  ;;  %2346 = vst [vmem:[%s6710_s6 + $0x13] sm:$0x1] %v2275_v62  ;;  %3950 = vst.sshfl [vmem:[%s6710_s6 + $0x2b] sm:$0x1 pattern:$0x73625140] %v2246_v26  ;;  %4322 = vmatpush1.bf16.msra.mxu0 %v5182_v31  ;;  %4354 = vmatpush1.bf16.msra.mxu1 %v5197_v36 }
 0x485   :  { %v2293_v33 = vrot.slane %v2279_v6, %v5768_v8  ;;  %v2294_v63 = vcombine.high %v2286_v2, %v2286_v2  ;;  %v2302_v18 = vrot.slane %v2286_v2, %v5768_v8  ;;  %3951 = vst.sshfl [vmem:[%s6710_s6 + $0x43] sm:$0x1 pattern:$0x73625140] %v2286_v2  ;;  %4324 = vmatprep.subr.bf16.mxu0 %v5191_v34  ;;  %v6792_v62 = vld [vmem:[#allocation28_spill] sm:$0xff]  ;;  %v6793_v2 = vld [vmem:[#allocation29_spill] sm:$0xff] }
 0x486   :  { %4356 = vmatprep.subr.bf16.mxu1 %v5231_v47  ;;  %v2278_v21 = vcombine.high %v2274_v43, %v2274_v43  ;;  %2347 = vst [vmem:[%s6710_s6 + $0x1b] sm:$0x1] %v2277_v58  ;;  %2350 = vst [vmem:[%s6710_s6 + $0x33] sm:$0x1] %v2276_v39  ;;  %2877 = vmatprep.mubr.f32.mxu1 %v6768_v27 }
 0x487   :  { %v2295_v35 = vcombine.high %v2293_v33, %v2293_v33  ;;  %v2309_v60 = vrot.slane %v2293_v33, %v5768_v8  ;;  %v2316_v48 = vrot.slane %v2294_v63, %v5768_v8  ;;  %v2324_v7 = vcombine.high %v2302_v18, %v2302_v18  ;;  %3952 = vst.sshfl [vmem:[%s6710_s6 + $0x4b] sm:$0x1 pattern:$0x73625140] %v2294_v63  ;;  %v6794_v63 = vld [vmem:[#allocation30_spill] sm:$0xff] }
 0x488   :  { %3953 = vst.sshfl [vmem:[%s6710_s6 + $0x63] sm:$0x1 pattern:$0x73625140] %v2293_v33  ;;  %2351 = vst [vmem:[%s6710_s6 + $0x3b] sm:$0x1] %v2278_v21  ;;  %4326 = vmatpush1.bf16.msra.mxu0 %v5229_v46  ;;  %4358 = vmatpush1.bf16.msra.mxu1 %v5239_v50 }
 0x489   :  { %v2323_v57 = vrot.slane %v2295_v35, %v5768_v8  ;;  %v2325_v24 = vcombine.high %v2309_v60, %v2309_v60  ;;  %v2326_v45 = vcombine.high %v2316_v48, %v2316_v48  ;;  %2354 = vst [vmem:[%s6710_s6 + $0x53] sm:$0x1] %v2324_v7  ;;  %3954 = vst.sshfl [vmem:[%s6710_s6 + $0x6b] sm:$0x1 pattern:$0x73625140] %v2295_v35  ;;  %4328 = vmatprep.subr.bf16.mxu0 %v5237_v49 }
 0x48a   :  { %4360 = vmatprep.subr.bf16.mxu1 %v5250_v54  ;;  %v6795_v60 = vld [vmem:[#allocation31_spill] sm:$0xff]  ;;  %v6796_v7 = vld [vmem:[#allocation32_spill] sm:$0xff] }
 0x48b   :  { %v2327_v41 = vcombine.high %v2323_v57, %v2323_v57  ;;  %2355 = vst [vmem:[%s6710_s6 + $0x5b] sm:$0x1] %v2326_v45  ;;  %2358 = vst [vmem:[%s6710_s6 + $0x73] sm:$0x1] %v2325_v24 }
 0x48c   :  { %4330 = vmatpush1.bf16.msra.mxu0 %v5269_v59  ;;  %4362 = vmatpush1.bf16.msra.mxu1 %v5285_v1 }
 0x48d   :  { %2359 = vst [vmem:[%s6710_s6 + $0x7b] sm:$0x1] %v2327_v41  ;;  %4332 = vmatprep.subr.bf16.mxu0 %v5283_v0  ;;  %4364 = vmatprep.subr.bf16.mxu1 %v5320_v14  ;;  %v6797_v41 = vld [vmem:[#allocation33_spill] sm:$0xff] }
 0x490   :  { %4334 = vmatpush1.bf16.msra.mxu0 %v5318_v13  ;;  %4366 = vmatpush1.bf16.msra.mxu1 %v5327_v17 }
 0x491   :  { %4336 = vmatprep.subr.bf16.mxu0 %v5325_v15  ;;  %4368 = vmatprep.subr.bf16.mxu1 %v5338_v22 }
 0x494   :  { %4338 = vmatpush1.bf16.msra.mxu0 %v5357_v32  ;;  %4370 = vmatpush1.bf16.msra.mxu1 %v5369_v38 }
 0x495   :  { %4340 = vmatprep.subr.bf16.mxu0 %v5367_v37  ;;  %4372 = vmatprep.subr.bf16.mxu1 %v5402_v53 }
 0x498   :  { %4342 = vmatpush1.bf16.msra.mxu0 %v5400_v52  ;;  %4374 = vmatpush1.bf16.msra.mxu1 %v5409_v56 }
 0x499   :  { %4344 = vmatprep.subr.bf16.mxu0 %v5407_v55  ;;  %4376 = vmatprep.subr.bf16.mxu1 %v5417_v61 }
 0x49c   :  { %4346 = vmatpush1.bf16.msra.mxu0 %v5428_v3  ;;  %4378 = vmatpush1.bf16.msra.mxu1 %v5432_v5 }
 0x49d   :  { %4380 = vmatprep.subr.bf16.mxu0 %v5122_v9  ;;  %4412 = vmatprep.subr.bf16.mxu1 %v5127_v11 }
 0x550   :  { %v2441_v20 = vpop.f32.mrb[48].mxu0  ;;  %v2518_v42 = vpop.f32.mrb[48].mxu1 }
 0x551   :  { %v2529_v30 = vadd.f32 %v2441_v20, %v6790_v40  ;;  %v2531_v26 = vadd.f32 %v2518_v42, %v6791_v4  ;;  %v2443_v29 = vpop.f32.mrb[49].mxu0  ;;  %v2520_v16 = vpop.f32.mrb[49].mxu1 }
 0x552   :  { %v2530_v6 = vadd.f32 %v2443_v29, %v6792_v62  ;;  %v2532_v43 = vadd.f32 %v2520_v16, %v6793_v2 }
 0x553   :  { %v2537_v39 = vmul.f32 0.5, %v2529_v30 }
 0x554   :  { %v2545_v58 = vmul.f32 0.5, %v2530_v6  ;;  %v2555_v40 = vmul.f32 0.5, %v2532_v43 }
 0x555   :  { %v2447_v33 = vpop.f32.mrb[50].mxu0  ;;  %4714 = vtanh.f32 %v2537_v39 }
 0x556   :  { %v2533_v18 = vadd.f32 %v2447_v33, %v6794_v63  ;;  %v2524_v21 = vpop.f32.mrb[50].mxu1  ;;  %v2449_v35 = vpop.f32.mrb[51].mxu0  ;;  %4716 = vtanh.f32 %v2545_v58 }
 0x557   :  { %v2535_v48 = vadd.f32 %v2524_v21, %v6795_v60  ;;  %v2534_v57 = vadd.f32 %v2449_v35, %v6796_v7  ;;  %v2526_v24 = vpop.f32.mrb[51].mxu1  ;;  %4718 = vtanh.f32 %v2531_v26  ;;  %v2581_v60 = vpop.permute.xlu0 %2580 }
 0x558   :  { %v2538_v45 = vmul.f32 0.5, %v2533_v18  ;;  %v2536_v20 = vadd.f32 %v2526_v24, %v6797_v41  ;;  %vm2585_vm8 = vcmp.eq.s32.totalorder %v2581_v60, 1 }
 0x559   :  { %v2546_v42 = vmul.f32 0.5, %v2534_v57 }
 0x55a   :  { %4720 = vtanh.f32 %v2538_v45  ;;  %v2556_v62 = vmul.f32 0.5, %v2536_v20  ;;  %v2584_v20 = vpop.permute.xlu1 %2583 }
 0x55b   :  { %4722 = vtanh.f32 %v2546_v42  ;;  %vm2586_vm9 = vcmp.eq.s32.totalorder %v2584_v20, 1 }
 0x55c   :  { %4724 = vtanh.f32 %v2535_v48 }
 0x55d   :  { %4726 = vtanh.f32 %v2555_v40 }
 0x55e   :  { %4728 = vtanh.f32 %v2556_v62 }
 0x55f   :  { %v4715_v30 = vpop.eup %4714 }
 0x560   :  { %v4717_v4 = vpop.eup %4716  ;;  %v2541_v29 = vmul.f32 0.5, %v4715_v30 }
 0x561   :  { %v2549_v16 = vmul.f32 0.5, %v4717_v4  ;;  %v4719_v6 = vpop.eup %4718 }
 0x562   :  { %v2543_v2 = vadd.f32 0.5, %v2541_v29 }
 0x563   :  { %v2551_v58 = vadd.f32 0.5, %v2549_v16 }
 0x564   :  { %v4721_v39 = vpop.eup %4720  ;;  %v2565_v63 = vmul.f32 %v4719_v6, %v2543_v2 }
 0x565   :  { %v4723_v33 = vpop.eup %4722  ;;  %v2542_v18 = vmul.f32 0.5, %v4721_v39  ;;  %v2563_v26 = vmul.f32 %v2551_v58, %v6148_v51 }
 0x566   :  { %v2550_v21 = vmul.f32 0.5, %v4723_v33  ;;  %v4725_v43 = vpop.eup %4724 }
 0x567   :  { %v2544_v35 = vadd.f32 0.5, %v2542_v18  ;;  %v2567_v48 = vadd.f32 %v2565_v63, %v2563_v26  ;;  %v4727_v41 = vpop.eup %4726 }
 0x568   :  { %v2552_v7 = vadd.f32 0.5, %v2550_v21  ;;  %v2559_v30 = vmul.f32 0.5, %v4727_v41  ;;  %v4729_v4 = vpop.eup %4728 }
 0x569   :  { %v2566_v57 = vmul.f32 %v4725_v43, %v2544_v35  ;;  %4730 = vtanh.f32 %v2567_v48  ;;  %v6276_v45 = vsel %vm2585_vm8, %v2567_v48, %v6148_v51  ;;  %v2560_v16 = vmul.f32 0.5, %v4729_v4 }
 0x56a   :  { %v2564_v24 = vmul.f32 %v2552_v7, %v6152_v12  ;;  %v2561_v29 = vadd.f32 0.5, %v2559_v30 }
 0x56b   :  { %v2562_v39 = vadd.f32 0.5, %v2560_v16 }
 0x56c   :  { %v2568_v42 = vadd.f32 %v2566_v57, %v2564_v24 }
 0x56e   :  { %4732 = vtanh.f32 %v2568_v42  ;;  %v6280_v40 = vsel %vm2586_vm9, %v2568_v42, %v6152_v12 }
 0x573   :  { %v4731_v62 = vpop.eup %4730 }
 0x574   :  { %v2571_v6 = vmul.f32 %v4731_v62, %v2561_v29 }
 0x576   :  { %v2587_v2 = vsel %vm2585_vm8, %v2571_v6, 0.0  ;;  %v6285_v51 = vsel %vm2585_vm8, %v2571_v6, %v6157_v44 }
 0x577   :  { %v2591_v33 = vcombine.high %v2587_v2, %v2587_v2  ;;  %v2598_v63 = vrot.slane %v2587_v2, %v5768_v8  ;;  %2801 = vmatmul.mubr.f32.vlgmr.msra.gmra.mrb[52].mxu0 %v6285_v51  ;;  %2878 = vmatmul.mubr.f32.vlgmr.msra.gmra.mrb[52].mxu1 %v6285_v51 }
 0x578   :  { %v4733_v58 = vpop.eup %4732  ;;  %2806 = vmatprep.mubr.f32.mxu0 %v6768_v27  ;;  %2883 = vmatprep.mubr.f32.mxu1 %v6768_v27 }
 0x579   :  { %v2572_v12 = vmul.f32 %v4733_v58, %v2562_v39  ;;  %v2605_v18 = vrot.slane %v2591_v33, %v5768_v8  ;;  %v2606_v26 = vcombine.high %v2598_v63, %v2598_v63  ;;  %v2614_v21 = vrot.slane %v2598_v63, %v5768_v8  ;;  %3957 = vst.sshfl [vmem:[%s6710_s6 + $0x4] sm:$0x1 pattern:$0x73625140] %v2598_v63 }
 0x57a   :  { %4382 = vmatpush1.bf16.msra.mxu0 %v5147_v19  ;;  %4414 = vmatpush1.bf16.msra.mxu1 %v5165_v25 }
 0x57b   :  { %v2588_v44 = vsel %vm2586_vm9, %v2572_v12, 0.0  ;;  %v6302_v35 = vsel %vm2586_vm9, %v2572_v12, %v6174_v10  ;;  %4384 = vmatprep.subr.bf16.mxu0 %v5160_v23  ;;  %4416 = vmatprep.subr.bf16.mxu1 %v5173_v28  ;;  %v2607_v43 = vcombine.high %v2605_v18, %v2605_v18  ;;  %v2621_v60 = vrot.slane %v2605_v18, %v5768_v8 }
 0x57c   :  { %v2628_v48 = vrot.slane %v2606_v26, %v5768_v8  ;;  %v2636_v7 = vcombine.high %v2614_v21, %v2614_v21  ;;  %3958 = vst.sshfl [vmem:[%s6710_s6 + $0xc] sm:$0x1 pattern:$0x73625140] %v2606_v26  ;;  %2807 = vmatmul.mubr.f32.gmra.mrb[54].mxu0 %v6302_v35  ;;  %v2640_v10 = vcombine.high %v2588_v44, %v2588_v44  ;;  %v6798_v26 = vld [vmem:[#allocation34_spill] sm:$0xff] }
 0x57d   :  { %3959 = vst.sshfl [vmem:[%s6710_s6 + $0x24] sm:$0x1 pattern:$0x73625140] %v2605_v18  ;;  %v2647_v57 = vrot.slane %v2588_v44, %v5768_v8  ;;  %2884 = vmatmul.mubr.f32.gmra.mrb[54].mxu1 %v6302_v35  ;;  %3161 = vmatprep.mubr.f32.mxu0 %v6768_v27  ;;  %v2635_v24 = vrot.slane %v2607_v43, %v5768_v8  ;;  %v6799_v44 = vld [vmem:[#allocation35_spill] sm:$0xff] }
 0x57e   :  { %v2637_v41 = vcombine.high %v2621_v60, %v2621_v60  ;;  %v2638_v20 = vcombine.high %v2628_v48, %v2628_v48  ;;  %2707 = vst [vmem:[%s6710_s6 + $0x14] sm:$0x1] %v2636_v7  ;;  %3960 = vst.sshfl [vmem:[%s6710_s6 + $0x2c] sm:$0x1 pattern:$0x73625140] %v2607_v43  ;;  %4386 = vmatpush1.bf16.msra.mxu0 %v5182_v31  ;;  %4418 = vmatpush1.bf16.msra.mxu1 %v5197_v36 }
 0x57f   :  { %v2654_v42 = vrot.slane %v2640_v10, %v5768_v8  ;;  %v2655_v30 = vcombine.high %v2647_v57, %v2647_v57  ;;  %v2663_v4 = vrot.slane %v2647_v57, %v5768_v8  ;;  %3961 = vst.sshfl [vmem:[%s6710_s6 + $0x44] sm:$0x1 pattern:$0x73625140] %v2647_v57  ;;  %4388 = vmatprep.subr.bf16.mxu0 %v5191_v34  ;;  %v6800_v7 = vld [vmem:[#allocation36_spill] sm:$0xff]  ;;  %v6801_v57 = vld [vmem:[#allocation37_spill] sm:$0xff] }
 0x580   :  { %4420 = vmatprep.subr.bf16.mxu1 %v5231_v47  ;;  %v2639_v29 = vcombine.high %v2635_v24, %v2635_v24  ;;  %2708 = vst [vmem:[%s6710_s6 + $0x1c] sm:$0x1] %v2638_v20  ;;  %2711 = vst [vmem:[%s6710_s6 + $0x34] sm:$0x1] %v2637_v41  ;;  %3238 = vmatprep.mubr.f32.mxu1 %v6768_v27 }
 0x581   :  { %v2656_v16 = vcombine.high %v2654_v42, %v2654_v42  ;;  %v2670_v62 = vrot.slane %v2654_v42, %v5768_v8  ;;  %v2677_v6 = vrot.slane %v2655_v30, %v5768_v8  ;;  %v2685_v2 = vcombine.high %v2663_v4, %v2663_v4  ;;  %3962 = vst.sshfl [vmem:[%s6710_s6 + $0x4c] sm:$0x1 pattern:$0x73625140] %v2655_v30  ;;  %v6802_v30 = vld [vmem:[#allocation38_spill] sm:$0xff] }
 0x582   :  { %3963 = vst.sshfl [vmem:[%s6710_s6 + $0x64] sm:$0x1 pattern:$0x73625140] %v2654_v42  ;;  %2712 = vst [vmem:[%s6710_s6 + $0x3c] sm:$0x1] %v2639_v29  ;;  %4390 = vmatpush1.bf16.msra.mxu0 %v5229_v46  ;;  %4422 = vmatpush1.bf16.msra.mxu1 %v5239_v50 }
 0x583   :  { %v2684_v39 = vrot.slane %v2656_v16, %v5768_v8  ;;  %v2686_v58 = vcombine.high %v2670_v62, %v2670_v62  ;;  %v2687_v33 = vcombine.high %v2677_v6, %v2677_v6  ;;  %2715 = vst [vmem:[%s6710_s6 + $0x54] sm:$0x1] %v2685_v2  ;;  %3964 = vst.sshfl [vmem:[%s6710_s6 + $0x6c] sm:$0x1 pattern:$0x73625140] %v2656_v16  ;;  %4392 = vmatprep.subr.bf16.mxu0 %v5237_v49 }
 0x584   :  { %4424 = vmatprep.subr.bf16.mxu1 %v5250_v54  ;;  %v6803_v29 = vld [vmem:[#allocation39_spill] sm:$0xff]  ;;  %v6804_v62 = vld [vmem:[#allocation40_spill] sm:$0xff] }
 0x585   :  { %v2688_v63 = vcombine.high %v2684_v39, %v2684_v39  ;;  %2716 = vst [vmem:[%s6710_s6 + $0x5c] sm:$0x1] %v2687_v33  ;;  %2719 = vst [vmem:[%s6710_s6 + $0x74] sm:$0x1] %v2686_v58  ;;  %v6805_v58 = vld [vmem:[#allocation41_spill] sm:$0xff] }
 0x586   :  { %4394 = vmatpush1.bf16.msra.mxu0 %v5269_v59  ;;  %4426 = vmatpush1.bf16.msra.mxu1 %v5285_v1 }
 0x587   :  { %2720 = vst [vmem:[%s6710_s6 + $0x7c] sm:$0x1] %v2688_v63  ;;  %4396 = vmatprep.subr.bf16.mxu0 %v5283_v0  ;;  %4428 = vmatprep.subr.bf16.mxu1 %v5320_v14 }
 0x58a   :  { %4398 = vmatpush1.bf16.msra.mxu0 %v5318_v13  ;;  %4430 = vmatpush1.bf16.msra.mxu1 %v5327_v17 }
 0x58b   :  { %4400 = vmatprep.subr.bf16.mxu0 %v5325_v15  ;;  %4432 = vmatprep.subr.bf16.mxu1 %v5338_v22 }
 0x58e   :  { %4402 = vmatpush1.bf16.msra.mxu0 %v5357_v32  ;;  %4434 = vmatpush1.bf16.msra.mxu1 %v5369_v38 }
 0x58f   :  { %4404 = vmatprep.subr.bf16.mxu0 %v5367_v37  ;;  %4436 = vmatprep.subr.bf16.mxu1 %v5402_v53 }
 0x592   :  { %4406 = vmatpush1.bf16.msra.mxu0 %v5400_v52  ;;  %4438 = vmatpush1.bf16.msra.mxu1 %v5409_v56 }
 0x593   :  { %4408 = vmatprep.subr.bf16.mxu0 %v5407_v55  ;;  %4440 = vmatprep.subr.bf16.mxu1 %v5417_v61 }
 0x596   :  { %4410 = vmatpush1.bf16.msra.mxu0 %v5428_v3  ;;  %4442 = vmatpush1.bf16.msra.mxu1 %v5432_v5 }
 0x597   :  { %4444 = vmatprep.subr.bf16.mxu0 %v5122_v9  ;;  %4476 = vmatprep.subr.bf16.mxu1 %v5127_v11 }
 0x64a   :  { %v2802_v12 = vpop.f32.mrb[52].mxu0  ;;  %v2879_v18 = vpop.f32.mrb[52].mxu1 }
 0x64b   :  { %v2890_v21 = vadd.f32 %v2802_v12, %v6798_v26  ;;  %v2892_v43 = vadd.f32 %v2879_v18, %v6799_v44  ;;  %v2804_v60 = vpop.f32.mrb[53].mxu0  ;;  %v2881_v48 = vpop.f32.mrb[53].mxu1 }
 0x64c   :  { %v2891_v10 = vadd.f32 %v2804_v60, %v6800_v7  ;;  %v2893_v24 = vadd.f32 %v2881_v48, %v6801_v57 }
 0x64d   :  { %v2898_v41 = vmul.f32 0.5, %v2890_v21 }
 0x64e   :  { %v2906_v20 = vmul.f32 0.5, %v2891_v10  ;;  %v2916_v12 = vmul.f32 0.5, %v2893_v24 }
 0x64f   :  { %v2808_v42 = vpop.f32.mrb[54].mxu0  ;;  %4734 = vtanh.f32 %v2898_v41 }
 0x650   :  { %v2894_v9 = vadd.f32 %v2808_v42, %v6802_v30  ;;  %v2885_v4 = vpop.f32.mrb[54].mxu1  ;;  %v2810_v11 = vpop.f32.mrb[55].mxu0  ;;  %4736 = vtanh.f32 %v2906_v20 }
 0x651   :  { %v2896_v16 = vadd.f32 %v2885_v4, %v6803_v29  ;;  %v2895_v6 = vadd.f32 %v2810_v11, %v6804_v62  ;;  %v2887_v2 = vpop.f32.mrb[55].mxu1  ;;  %4738 = vtanh.f32 %v2892_v43  ;;  %v2942_v4 = vpop.permute.xlu0 %2941 }
 0x652   :  { %v2899_v39 = vmul.f32 0.5, %v2894_v9  ;;  %v2897_v33 = vadd.f32 %v2887_v2, %v6805_v58  ;;  %vm2946_vm10 = vcmp.eq.s32.totalorder %v2942_v4, 1 }
 0x653   :  { %v2907_v63 = vmul.f32 0.5, %v2895_v6 }
 0x654   :  { %4740 = vtanh.f32 %v2899_v39  ;;  %v2917_v60 = vmul.f32 0.5, %v2897_v33  ;;  %v2945_v39 = vpop.permute.xlu1 %2944 }
 0x655   :  { %4742 = vtanh.f32 %v2907_v63  ;;  %vm2947_vm11 = vcmp.eq.s32.totalorder %v2945_v39, 1 }
 0x656   :  { %4744 = vtanh.f32 %v2896_v16 }
 0x657   :  { %4746 = vtanh.f32 %v2916_v12 }
 0x658   :  { %4748 = vtanh.f32 %v2917_v60 }
 0x659   :  { %v4735_v18 = vpop.eup %4734 }
 0x65a   :  { %v4737_v26 = vpop.eup %4736  ;;  %v2902_v21 = vmul.f32 0.5, %v4735_v18 }
 0x65b   :  { %v2910_v44 = vmul.f32 0.5, %v4737_v26  ;;  %v4739_v48 = vpop.eup %4738 }
 0x65c   :  { %v2904_v7 = vadd.f32 0.5, %v2902_v21 }
 0x65d   :  { %v2912_v57 = vadd.f32 0.5, %v2910_v44 }
 0x65e   :  { %v4741_v10 = vpop.eup %4740  ;;  %v2926_v20 = vmul.f32 %v4739_v48, %v2904_v7 }
 0x65f   :  { %v4743_v41 = vpop.eup %4742  ;;  %v2903_v42 = vmul.f32 0.5, %v4741_v10  ;;  %v2924_v43 = vmul.f32 %v2912_v57, %v6276_v45 }
 0x660   :  { %v2911_v30 = vmul.f32 0.5, %v4743_v41  ;;  %v4745_v24 = vpop.eup %4744 }
 0x661   :  { %v2905_v9 = vadd.f32 0.5, %v2903_v42  ;;  %v2928_v11 = vadd.f32 %v2926_v20, %v2924_v43  ;;  %v4747_v2 = vpop.eup %4746 }
 0x662   :  { %v2913_v29 = vadd.f32 0.5, %v2911_v30  ;;  %v2920_v63 = vmul.f32 0.5, %v4747_v2  ;;  %v4749_v12 = vpop.eup %4748 }
 0x663   :  { %v2927_v16 = vmul.f32 %v4745_v24, %v2905_v9  ;;  %4750 = vtanh.f32 %v2928_v11  ;;  %v6404_v6 = vsel %vm2946_vm10, %v2928_v11, %v6276_v45  ;;  %v2921_v26 = vmul.f32 0.5, %v4749_v12 }
 0x664   :  { %v2925_v62 = vmul.f32 %v2913_v29, %v6280_v40  ;;  %v2922_v18 = vadd.f32 0.5, %v2920_v63 }
 0x665   :  { %v2923_v48 = vadd.f32 0.5, %v2921_v26 }
 0x666   :  { %v2929_v58 = vadd.f32 %v2927_v16, %v2925_v62 }
 0x668   :  { %4752 = vtanh.f32 %v2929_v58  ;;  %v6408_v33 = vsel %vm2947_vm11, %v2929_v58, %v6280_v40 }
 0x66d   :  { %v4751_v21 = vpop.eup %4750 }
 0x66e   :  { %v2932_v44 = vmul.f32 %v4751_v21, %v2922_v18  ;;  %v6813_v21 = vld [vmem:[#allocation49_spill] sm:$0xff] }
 0x670   :  { %v2948_v60 = vsel %vm2946_vm10, %v2932_v44, 0.0  ;;  %v6413_v45 = vsel %vm2946_vm10, %v2932_v44, %v6285_v51 }
 0x671   :  { %v2952_v10 = vcombine.high %v2948_v60, %v2948_v60  ;;  %v2959_v57 = vrot.slane %v2948_v60, %v5768_v8  ;;  %3162 = vmatmul.mubr.f32.vlgmr.msra.gmra.mrb[56].mxu0 %v6413_v45  ;;  %3239 = vmatmul.mubr.f32.vlgmr.msra.gmra.mrb[56].mxu1 %v6413_v45 }
 0x672   :  { %v4753_v7 = vpop.eup %4752  ;;  %3167 = vmatprep.mubr.f32.mxu0 %v6768_v27  ;;  %3244 = vmatprep.mubr.f32.mxu1 %v6768_v27 }
 0x673   :  { %v2933_v40 = vmul.f32 %v4753_v7, %v2923_v48  ;;  %v2966_v41 = vrot.slane %v2952_v10, %v5768_v8  ;;  %v2967_v20 = vcombine.high %v2959_v57, %v2959_v57  ;;  %v2975_v42 = vrot.slane %v2959_v57, %v5768_v8  ;;  %3967 = vst.sshfl [vmem:[%s6710_s6 + $0x5] sm:$0x1 pattern:$0x73625140] %v2959_v57 }
 0x674   :  { %4446 = vmatpush1.bf16.msra.mxu0 %v5147_v19  ;;  %4478 = vmatpush1.bf16.msra.mxu1 %v5165_v25 }
 0x675   :  { %v2949_v51 = vsel %vm2947_vm11, %v2933_v40, 0.0  ;;  %v6430_v43 = vsel %vm2947_vm11, %v2933_v40, %v6302_v35  ;;  %4448 = vmatprep.subr.bf16.mxu0 %v5160_v23  ;;  %4480 = vmatprep.subr.bf16.mxu1 %v5173_v28  ;;  %v2968_v30 = vcombine.high %v2966_v41, %v2966_v41  ;;  %v2982_v9 = vrot.slane %v2966_v41, %v5768_v8 }
 0x676   :  { %v2989_v24 = vrot.slane %v2967_v20, %v5768_v8  ;;  %v2997_v4 = vcombine.high %v2975_v42, %v2975_v42  ;;  %3968 = vst.sshfl [vmem:[%s6710_s6 + $0xd] sm:$0x1 pattern:$0x73625140] %v2967_v20  ;;  %3168 = vmatmul.mubr.f32.gmra.mrb[58].mxu0 %v6430_v43  ;;  %v3001_v19 = vcombine.high %v2949_v51, %v2949_v51 }
 0x677   :  { %3969 = vst.sshfl [vmem:[%s6710_s6 + $0x25] sm:$0x1 pattern:$0x73625140] %v2966_v41  ;;  %v3008_v23 = vrot.slane %v2949_v51, %v5768_v8  ;;  %3245 = vmatmul.mubr.f32.gmra.mrb[58].mxu1 %v6430_v43  ;;  %3522 = vmatprep.mubr.f32.mxu0 %v6768_v27  ;;  %v2996_v25 = vrot.slane %v2968_v30, %v5768_v8 }
 0x678   :  { %v2998_v28 = vcombine.high %v2982_v9, %v2982_v9  ;;  %v2999_v35 = vcombine.high %v2989_v24, %v2989_v24  ;;  %3068 = vst [vmem:[%s6710_s6 + $0x15] sm:$0x1] %v2997_v4  ;;  %3970 = vst.sshfl [vmem:[%s6710_s6 + $0x2d] sm:$0x1 pattern:$0x73625140] %v2968_v30  ;;  %4450 = vmatpush1.bf16.msra.mxu0 %v5182_v31  ;;  %4482 = vmatpush1.bf16.msra.mxu1 %v5197_v36 }
 0x679   :  { %v3015_v11 = vrot.slane %v3001_v19, %v5768_v8  ;;  %v3016_v29 = vcombine.high %v3008_v23, %v3008_v23  ;;  %v3024_v16 = vrot.slane %v3008_v23, %v5768_v8  ;;  %3971 = vst.sshfl [vmem:[%s6710_s6 + $0x45] sm:$0x1 pattern:$0x73625140] %v3008_v23  ;;  %4452 = vmatprep.subr.bf16.mxu0 %v5191_v34 }
 0x67a   :  { %4484 = vmatprep.subr.bf16.mxu1 %v5231_v47  ;;  %v3000_v62 = vcombine.high %v2996_v25, %v2996_v25  ;;  %3069 = vst [vmem:[%s6710_s6 + $0x1d] sm:$0x1] %v2999_v35  ;;  %3072 = vst [vmem:[%s6710_s6 + $0x35] sm:$0x1] %v2998_v28  ;;  %3599 = vmatprep.mubr.f32.mxu1 %v6768_v27  ;;  %v3303_v35 = vpop.permute.xlu0 %3302 }
 0x67b   :  { %v3017_v31 = vcombine.high %v3015_v11, %v3015_v11  ;;  %v3031_v36 = vrot.slane %v3015_v11, %v5768_v8  ;;  %v3038_v2 = vrot.slane %v3016_v29, %v5768_v8  ;;  %v3046_v39 = vcombine.high %v3024_v16, %v3024_v16  ;;  %3972 = vst.sshfl [vmem:[%s6710_s6 + $0x4d] sm:$0x1 pattern:$0x73625140] %v3016_v29 }
 0x67c   :  { %3973 = vst.sshfl [vmem:[%s6710_s6 + $0x65] sm:$0x1 pattern:$0x73625140] %v3015_v11  ;;  %3073 = vst [vmem:[%s6710_s6 + $0x3d] sm:$0x1] %v3000_v62  ;;  %4454 = vmatpush1.bf16.msra.mxu0 %v5229_v46  ;;  %4486 = vmatpush1.bf16.msra.mxu1 %v5239_v50 }
 0x67d   :  { %v3045_v34 = vrot.slane %v3017_v31, %v5768_v8  ;;  %v3047_v47 = vcombine.high %v3031_v36, %v3031_v36  ;;  %v3048_v58 = vcombine.high %v3038_v2, %v3038_v2  ;;  %3076 = vst [vmem:[%s6710_s6 + $0x55] sm:$0x1] %v3046_v39  ;;  %3974 = vst.sshfl [vmem:[%s6710_s6 + $0x6d] sm:$0x1 pattern:$0x73625140] %v3017_v31  ;;  %4456 = vmatprep.subr.bf16.mxu0 %v5237_v49  ;;  %v3306_v2 = vpop.permute.xlu1 %3305 }
 0x67e   :  { %4488 = vmatprep.subr.bf16.mxu1 %v5250_v54  ;;  %v6806_v50 = vld [vmem:[#allocation42_spill] sm:$0xff]  ;;  %vm3307_vm12 = vcmp.eq.s32.totalorder %v3303_v35, 1  ;;  %vm3308_vm13 = vcmp.eq.s32.totalorder %v3306_v2, 1 }
 0x67f   :  { %v3049_v63 = vcombine.high %v3045_v34, %v3045_v34  ;;  %3077 = vst [vmem:[%s6710_s6 + $0x5d] sm:$0x1] %v3048_v58  ;;  %3080 = vst [vmem:[%s6710_s6 + $0x75] sm:$0x1] %v3047_v47 }
 0x680   :  { %4458 = vmatpush1.bf16.msra.mxu0 %v5269_v59  ;;  %4490 = vmatpush1.bf16.msra.mxu1 %v5285_v1  ;;  %v6807_v59 = vld [vmem:[#allocation43_spill] sm:$0xff] }
 0x681   :  { %3081 = vst [vmem:[%s6710_s6 + $0x7d] sm:$0x1] %v3049_v63  ;;  %4460 = vmatprep.subr.bf16.mxu0 %v5283_v0  ;;  %4492 = vmatprep.subr.bf16.mxu1 %v5320_v14  ;;  %v6808_v14 = vld [vmem:[#allocation44_spill] sm:$0xff] }
 0x684   :  { %4462 = vmatpush1.bf16.msra.mxu0 %v5318_v13  ;;  %4494 = vmatpush1.bf16.msra.mxu1 %v5327_v17  ;;  %v6809_v17 = vld [vmem:[#allocation45_spill] sm:$0xff] }
 0x685   :  { %4464 = vmatprep.subr.bf16.mxu0 %v5325_v15  ;;  %4496 = vmatprep.subr.bf16.mxu1 %v5338_v22 }
 0x688   :  { %4466 = vmatpush1.bf16.msra.mxu0 %v5357_v32  ;;  %4498 = vmatpush1.bf16.msra.mxu1 %v5369_v38 }
 0x689   :  { %4468 = vmatprep.subr.bf16.mxu0 %v5367_v37  ;;  %4500 = vmatprep.subr.bf16.mxu1 %v5402_v53 }
 0x68c   :  { %4470 = vmatpush1.bf16.msra.mxu0 %v5400_v52  ;;  %4502 = vmatpush1.bf16.msra.mxu1 %v5409_v56  ;;  %v6810_v52 = vld [vmem:[#allocation46_spill] sm:$0xff] }
 0x68d   :  { %4472 = vmatprep.subr.bf16.mxu0 %v5407_v55  ;;  %4504 = vmatprep.subr.bf16.mxu1 %v5417_v61  ;;  %v6811_v61 = vld [vmem:[#allocation47_spill] sm:$0xff] }
 0x690   :  { %4474 = vmatpush1.bf16.msra.mxu0 %v5428_v3  ;;  %4506 = vmatpush1.bf16.msra.mxu1 %v5432_v5  ;;  %v6812_v5 = vld [vmem:[#allocation48_spill] sm:$0xff] }
 0x744   :  { %v3163_v46 = vpop.f32.mrb[56].mxu0  ;;  %v3240_v49 = vpop.f32.mrb[56].mxu1 }
 0x745   :  { %v3251_v54 = vadd.f32 %v3163_v46, %v6806_v50  ;;  %v3253_v0 = vadd.f32 %v3240_v49, %v6807_v59  ;;  %v3165_v1 = vpop.f32.mrb[57].mxu0  ;;  %v3242_v13 = vpop.f32.mrb[57].mxu1 }
 0x746   :  { %v3252_v15 = vadd.f32 %v3165_v1, %v6808_v14  ;;  %v3254_v22 = vadd.f32 %v3242_v13, %v6809_v17 }
 0x747   :  { %v3259_v32 = vmul.f32 0.5, %v3251_v54 }
 0x748   :  { %v3267_v37 = vmul.f32 0.5, %v3252_v15  ;;  %v3277_v48 = vmul.f32 0.5, %v3254_v22 }
 0x749   :  { %v3169_v38 = vpop.f32.mrb[58].mxu0  ;;  %4754 = vtanh.f32 %v3259_v32 }
 0x74a   :  { %v3255_v53 = vadd.f32 %v3169_v38, %v6810_v52  ;;  %v3246_v55 = vpop.f32.mrb[58].mxu1  ;;  %v3171_v56 = vpop.f32.mrb[59].mxu0  ;;  %4756 = vtanh.f32 %v3267_v37 }
 0x74b   :  { %v3257_v3 = vadd.f32 %v3246_v55, %v6811_v61  ;;  %v3256_v12 = vadd.f32 %v3171_v56, %v6812_v5  ;;  %v3248_v18 = vpop.f32.mrb[59].mxu1  ;;  %4758 = vtanh.f32 %v3253_v0 }
 0x74c   :  { %v3260_v26 = vmul.f32 0.5, %v3255_v53  ;;  %v3258_v44 = vadd.f32 %v3248_v18, %v6813_v21 }
 0x74d   :  { %v3268_v60 = vmul.f32 0.5, %v3256_v12 }
 0x74e   :  { %4760 = vtanh.f32 %v3260_v26  ;;  %v3278_v41 = vmul.f32 0.5, %v3258_v44 }
 0x74f   :  { %4762 = vtanh.f32 %v3268_v60 }
 0x750   :  { %4764 = vtanh.f32 %v3257_v3 }
 0x751   :  { %4766 = vtanh.f32 %v3277_v48 }
 0x752   :  { %4768 = vtanh.f32 %v3278_v41  ;;  %v6814_v41 = vld [vmem:[#allocation50_spill] sm:$0xff] }
 0x753   :  { %v4755_v7 = vpop.eup %4754 }
 0x754   :  { %v4757_v10 = vpop.eup %4756  ;;  %v3263_v57 = vmul.f32 0.5, %v4755_v7 }
 0x755   :  { %v3271_v40 = vmul.f32 0.5, %v4757_v10  ;;  %v4759_v20 = vpop.eup %4758 }
 0x756   :  { %v3265_v42 = vadd.f32 0.5, %v3263_v57 }
 0x757   :  { %v3273_v30 = vadd.f32 0.5, %v3271_v40 }
 0x758   :  { %v4761_v51 = vpop.eup %4760  ;;  %v3287_v24 = vmul.f32 %v4759_v20, %v3265_v42  ;;  %v6815_v42 = vld [vmem:[#allocation51_spill] sm:$0xff] }
 0x759   :  { %v4763_v9 = vpop.eup %4762  ;;  %v3264_v4 = vmul.f32 0.5, %v4761_v51  ;;  %v3285_v19 = vmul.f32 %v3273_v30, %v6404_v6 }
 0x75a   :  { %v3272_v23 = vmul.f32 0.5, %v4763_v9  ;;  %v4765_v28 = vpop.eup %4764 }
 0x75b   :  { %v3266_v25 = vadd.f32 0.5, %v3264_v4  ;;  %v3289_v11 = vadd.f32 %v3287_v24, %v3285_v19  ;;  %v4767_v36 = vpop.eup %4766  ;;  %v6816_v24 = vld [vmem:[#allocation52_spill] sm:$0xff]  ;;  %v6817_v19 = vld [vmem:[#allocation53_spill] sm:$0xff] }
 0x75c   :  { %v3274_v29 = vadd.f32 0.5, %v3272_v23  ;;  %v3281_v47 = vmul.f32 0.5, %v4767_v36  ;;  %v4769_v58 = vpop.eup %4768  ;;  %v6819_v36 = vld [vmem:[#allocation55_spill] sm:$0xff] }
 0x75d   :  { %v3288_v16 = vmul.f32 %v4765_v28, %v3266_v25  ;;  %4770 = vtanh.f32 %v3289_v11  ;;  %v6530_v31 = vsel %vm3307_vm12, %v3289_v11, %v6404_v6  ;;  %v3282_v46 = vmul.f32 0.5, %v4769_v58  ;;  %v6818_v11 = vld [vmem:[#allocation54_spill] sm:$0xff] }
 0x75e   :  { %v3286_v62 = vmul.f32 %v3274_v29, %v6408_v33  ;;  %v3283_v63 = vadd.f32 0.5, %v3281_v47 }
 0x75f   :  { %v3284_v59 = vadd.f32 0.5, %v3282_v46  ;;  %v6821_v46 = vld [vmem:[#allocation57_spill] sm:$0xff] }
 0x760   :  { %v3290_v39 = vadd.f32 %v3288_v16, %v3286_v62 }
 0x762   :  { %4772 = vtanh.f32 %v3290_v39  ;;  %v6534_v34 = vsel %vm3308_vm13, %v3290_v39, %v6408_v33  ;;  %v6820_v39 = vld [vmem:[#allocation56_spill] sm:$0xff] }
 0x767   :  { %v4771_v49 = vpop.eup %4770 }
 0x768   :  { %v3293_v50 = vmul.f32 %v4771_v49, %v3283_v63 }
 0x76a   :  { %v3309_v54 = vsel %vm3307_vm12, %v3293_v50, 0.0  ;;  %v6539_v6 = vsel %vm3307_vm12, %v3293_v50, %v6413_v45 }
 0x76b   :  { %v3313_v1 = vcombine.high %v3309_v54, %v3309_v54  ;;  %v3320_v13 = vrot.slane %v3309_v54, %v5768_v8  ;;  %3523 = vmatmul.mubr.f32.vlgmr.msra.gmra.mrb[60].mxu0 %v6539_v6  ;;  %3600 = vmatmul.mubr.f32.vlgmr.msra.gmra.mrb[60].mxu1 %v6539_v6 }
 0x76c   :  { %v4773_v0 = vpop.eup %4772  ;;  %3528 = vmatprep.mubr.f32.mxu0 %v6768_v27  ;;  %3605 = vmatprep.mubr.f32.mxu1 %v6768_v27 }
 0x76d   :  { %v3294_v33 = vmul.f32 %v4773_v0, %v3284_v59  ;;  %v3327_v14 = vrot.slane %v3313_v1, %v5768_v8  ;;  %v3328_v15 = vcombine.high %v3320_v13, %v3320_v13  ;;  %v3336_v17 = vrot.slane %v3320_v13, %v5768_v8  ;;  %3977 = vst.sshfl [vmem:[%s6710_s6 + $0x6] sm:$0x1 pattern:$0x73625140] %v3320_v13 }
 0x76f   :  { %v3310_v45 = vsel %vm3308_vm13, %v3294_v33, 0.0  ;;  %v6554_v22 = vsel %vm3308_vm13, %v3294_v33, %v6430_v43  ;;  %v3329_v32 = vcombine.high %v3327_v14, %v3327_v14  ;;  %v3343_v37 = vrot.slane %v3327_v14, %v5768_v8  ;;  %3978 = vst.sshfl [vmem:[%s6710_s6 + $0xe] sm:$0x1 pattern:$0x73625140] %v3328_v15 }
 0x770   :  { %v3350_v27 = vrot.slane %v3328_v15, %v5768_v8  ;;  %v3358_v38 = vcombine.high %v3336_v17, %v3336_v17  ;;  %3979 = vst.sshfl [vmem:[%s6710_s6 + $0x26] sm:$0x1 pattern:$0x73625140] %v3327_v14  ;;  %3529 = vmatmul.mubr.f32.gmra.mrb[62].mxu0 %v6554_v22  ;;  %v3362_v52 = vcombine.high %v3310_v45, %v3310_v45 }
 0x771   :  { %v3369_v43 = vrot.slane %v3310_v45, %v5768_v8  ;;  %3606 = vmatmul.mubr.f32.gmra.mrb[62].mxu1 %v6554_v22  ;;  %v3357_v53 = vrot.slane %v3329_v32, %v5768_v8  ;;  %v3359_v55 = vcombine.high %v3343_v37, %v3343_v37  ;;  %3980 = vst.sshfl [vmem:[%s6710_s6 + $0x2e] sm:$0x1 pattern:$0x73625140] %v3329_v32 }
 0x772   :  { %v3360_v56 = vcombine.high %v3350_v27, %v3350_v27  ;;  %3429 = vst [vmem:[%s6710_s6 + $0x16] sm:$0x1] %v3358_v38  ;;  %v3376_v61 = vrot.slane %v3362_v52, %v5768_v8  ;;  %v3664_v38 = vpop.permute.xlu0 %3663 }
 0x773   :  { %v3377_v3 = vcombine.high %v3369_v43, %v3369_v43  ;;  %v3385_v5 = vrot.slane %v3369_v43, %v5768_v8  ;;  %3981 = vst.sshfl [vmem:[%s6710_s6 + $0x46] sm:$0x1 pattern:$0x73625140] %v3369_v43  ;;  %v3361_v12 = vcombine.high %v3357_v53, %v3357_v53  ;;  %3433 = vst [vmem:[%s6710_s6 + $0x36] sm:$0x1] %v3359_v55 }
 0x774   :  { %3430 = vst [vmem:[%s6710_s6 + $0x1e] sm:$0x1] %v3360_v56  ;;  %v3378_v18 = vcombine.high %v3376_v61, %v3376_v61  ;;  %v3392_v26 = vrot.slane %v3376_v61, %v5768_v8  ;;  %3983 = vst.sshfl [vmem:[%s6710_s6 + $0x66] sm:$0x1 pattern:$0x73625140] %v3376_v61 }
 0x775   :  { %v3399_v21 = vrot.slane %v3377_v3, %v5768_v8  ;;  %v3407_v44 = vcombine.high %v3385_v5, %v3385_v5  ;;  %3982 = vst.sshfl [vmem:[%s6710_s6 + $0x4e] sm:$0x1 pattern:$0x73625140] %v3377_v3  ;;  %3434 = vst [vmem:[%s6710_s6 + $0x3e] sm:$0x1] %v3361_v12  ;;  %v3667_v5 = vpop.permute.xlu1 %3666 }
 0x776   :  { %v3406_v60 = vrot.slane %v3378_v18, %v5768_v8  ;;  %v3408_v48 = vcombine.high %v3392_v26, %v3392_v26  ;;  %3984 = vst.sshfl [vmem:[%s6710_s6 + $0x6e] sm:$0x1 pattern:$0x73625140] %v3378_v18  ;;  %vm3668_vm14 = vcmp.eq.s32.totalorder %v3664_v38, 1  ;;  %vm3669_vm15 = vcmp.eq.s32.totalorder %v3667_v5, 1 }
 0x777   :  { %v3409_v7 = vcombine.high %v3399_v21, %v3399_v21  ;;  %3437 = vst [vmem:[%s6710_s6 + $0x56] sm:$0x1] %v3407_v44 }
 0x778   :  { %v3410_v10 = vcombine.high %v3406_v60, %v3406_v60  ;;  %3441 = vst [vmem:[%s6710_s6 + $0x76] sm:$0x1] %v3408_v48 }
 0x779   :  { %3438 = vst [vmem:[%s6710_s6 + $0x5e] sm:$0x1] %v3409_v7 }
 0x77a   :  { %3442 = vst [vmem:[%s6710_s6 + $0x7e] sm:$0x1] %v3410_v10 }
 0x83e   :  { %v3524_v57 = vpop.f32.mrb[60].mxu0  ;;  %v3601_v40 = vpop.f32.mrb[60].mxu1 }
 0x83f   :  { %v3612_v20 = vadd.f32 %v3524_v57, %v6814_v41  ;;  %v3614_v51 = vadd.f32 %v3601_v40, %v6815_v42  ;;  %v3526_v30 = vpop.f32.mrb[61].mxu0  ;;  %v3603_v9 = vpop.f32.mrb[61].mxu1 }
 0x840   :  { %v3613_v4 = vadd.f32 %v3526_v30, %v6816_v24  ;;  %v3615_v23 = vadd.f32 %v3603_v9, %v6817_v19 }
 0x841   :  { %v3620_v25 = vmul.f32 0.5, %v3612_v20 }
 0x842   :  { %v3628_v28 = vmul.f32 0.5, %v3613_v4  ;;  %v3638_v54 = vmul.f32 0.5, %v3615_v23 }
 0x843   :  { %v3530_v35 = vpop.f32.mrb[62].mxu0  ;;  %4774 = vtanh.f32 %v3620_v25 }
 0x844   :  { %v3616_v29 = vadd.f32 %v3530_v35, %v6818_v11  ;;  %v3607_v16 = vpop.f32.mrb[62].mxu1  ;;  %v3532_v62 = vpop.f32.mrb[63].mxu0  ;;  %4776 = vtanh.f32 %v3628_v28 }
 0x845   :  { %v3618_v2 = vadd.f32 %v3607_v16, %v6819_v36  ;;  %v3617_v47 = vadd.f32 %v3532_v62, %v6820_v39  ;;  %v3609_v58 = vpop.f32.mrb[63].mxu1  ;;  %4778 = vtanh.f32 %v3614_v51 }
 0x846   :  { %v3621_v63 = vmul.f32 0.5, %v3616_v29  ;;  %v3619_v49 = vadd.f32 %v3609_v58, %v6821_v46 }
 0x847   :  { %v3629_v50 = vmul.f32 0.5, %v3617_v47 }
 0x848   :  { %4780 = vtanh.f32 %v3621_v63  ;;  %v3639_v33 = vmul.f32 0.5, %v3619_v49 }
 0x849   :  { %4782 = vtanh.f32 %v3629_v50 }
 0x84a   :  { %4784 = vtanh.f32 %v3618_v2 }
 0x84b   :  { %4786 = vtanh.f32 %v3638_v54 }
 0x84c   :  { %4788 = vtanh.f32 %v3639_v33 }
 0x84d   :  { %v4775_v59 = vpop.eup %4774 }
 0x84e   :  { %v4777_v0 = vpop.eup %4776  ;;  %v3624_v1 = vmul.f32 0.5, %v4775_v59 }
 0x84f   :  { %v3632_v13 = vmul.f32 0.5, %v4777_v0  ;;  %v4779_v14 = vpop.eup %4778 }
 0x850   :  { %v3626_v15 = vadd.f32 0.5, %v3624_v1 }
 0x851   :  { %v3634_v45 = vadd.f32 0.5, %v3632_v13 }
 0x852   :  { %v4781_v17 = vpop.eup %4780  ;;  %v3648_v37 = vmul.f32 %v4779_v14, %v3626_v15 }
 0x853   :  { %v4783_v32 = vpop.eup %4782  ;;  %v3625_v27 = vmul.f32 0.5, %v4781_v17  ;;  %v3646_v52 = vmul.f32 %v3634_v45, %v6530_v31 }
 0x854   :  { %v3633_v43 = vmul.f32 0.5, %v4783_v32  ;;  %v4785_v55 = vpop.eup %4784 }
 0x855   :  { %v3627_v53 = vadd.f32 0.5, %v3625_v27  ;;  %v3650_v56 = vadd.f32 %v3648_v37, %v3646_v52  ;;  %v4787_v26 = vpop.eup %4786 }
 0x856   :  { %v3635_v61 = vadd.f32 0.5, %v3633_v43  ;;  %v3642_v60 = vmul.f32 0.5, %v4787_v26  ;;  %v4789_v48 = vpop.eup %4788 }
 0x857   :  { %v3649_v3 = vmul.f32 %v4785_v55, %v3627_v53  ;;  %4790 = vtanh.f32 %v3650_v56  ;;  %v3806_v12 = vsel %vm3668_vm14, %v3650_v56, %v6530_v31  ;;  %v3643_v7 = vmul.f32 0.5, %v4789_v48 }
 0x858   :  { %v3647_v18 = vmul.f32 %v3635_v61, %v6534_v34  ;;  %3810 = vst [vmem:[%s6712_s8] sm:$0xff] %v3806_v12  ;;  %v3644_v31 = vadd.f32 0.5, %v3642_v60 }
 0x859   :  { %v3645_v20 = vadd.f32 0.5, %v3643_v7 }
 0x85a   :  { %v3651_v21 = vadd.f32 %v3649_v3, %v3647_v18 }
 0x85c   :  { %4792 = vtanh.f32 %v3651_v21  ;;  %v3807_v44 = vsel %vm3669_vm15, %v3651_v21, %v6534_v34 }
 0x85d   :  { %3811 = vst [vmem:[%s6712_s8 + $0x8] sm:$0xff] %v3807_v44 }
 0x861   :  { %v4791_v10 = vpop.eup %4790 }
 0x862   :  { %v3654_v57 = vmul.f32 %v4791_v10, %v3644_v31 }
 0x864   :  { %v3670_v40 = vsel %vm3668_vm14, %v3654_v57, 0.0  ;;  %v3804_v41 = vsel %vm3668_vm14, %v3654_v57, %v6539_v6 }
 0x865   :  { %v3674_v51 = vcombine.high %v3670_v40, %v3670_v40  ;;  %v3681_v34 = vrot.slane %v3670_v40, %v5768_v8  ;;  %3808 = vst [vmem:[%s6711_s7] sm:$0xff] %v3804_v41 }
 0x866   :  { %v4793_v42 = vpop.eup %4792 }
 0x867   :  { %v3655_v30 = vmul.f32 %v4793_v42, %v3645_v20  ;;  %v3688_v9 = vrot.slane %v3674_v51, %v5768_v8  ;;  %v3689_v24 = vcombine.high %v3681_v34, %v3681_v34  ;;  %v3697_v4 = vrot.slane %v3681_v34, %v5768_v8  ;;  %3987 = vst.sshfl [vmem:[%s6710_s6 + $0x7] sm:$0x1 pattern:$0x73625140] %v3681_v34 }
 0x869   :  { %v3671_v6 = vsel %vm3669_vm15, %v3655_v30, 0.0  ;;  %v3805_v19 = vsel %vm3669_vm15, %v3655_v30, %v6554_v22  ;;  %v3690_v23 = vcombine.high %v3688_v9, %v3688_v9  ;;  %v3704_v25 = vrot.slane %v3688_v9, %v5768_v8  ;;  %3988 = vst.sshfl [vmem:[%s6710_s6 + $0xf] sm:$0x1 pattern:$0x73625140] %v3689_v24 }
 0x86a   :  { %v3711_v28 = vrot.slane %v3689_v24, %v5768_v8  ;;  %v3719_v35 = vcombine.high %v3697_v4, %v3697_v4  ;;  %3989 = vst.sshfl [vmem:[%s6710_s6 + $0x27] sm:$0x1 pattern:$0x73625140] %v3688_v9  ;;  %3809 = vst [vmem:[%s6711_s7 + $0x8] sm:$0xff] %v3805_v19  ;;  %v3723_v11 = vcombine.high %v3671_v6, %v3671_v6 }
 0x86b   :  { %v3730_v22 = vrot.slane %v3671_v6, %v5768_v8  ;;  %v3718_v29 = vrot.slane %v3690_v23, %v5768_v8  ;;  %v3720_v16 = vcombine.high %v3704_v25, %v3704_v25  ;;  %3990 = vst.sshfl [vmem:[%s6710_s6 + $0x2f] sm:$0x1 pattern:$0x73625140] %v3690_v23 }
 0x86c   :  { %v3721_v62 = vcombine.high %v3711_v28, %v3711_v28  ;;  %3790 = vst [vmem:[%s6710_s6 + $0x17] sm:$0x1] %v3719_v35  ;;  %v3737_v36 = vrot.slane %v3723_v11, %v5768_v8 }
 0x86d   :  { %v3738_v2 = vcombine.high %v3730_v22, %v3730_v22  ;;  %v3746_v39 = vrot.slane %v3730_v22, %v5768_v8  ;;  %3991 = vst.sshfl [vmem:[%s6710_s6 + $0x47] sm:$0x1 pattern:$0x73625140] %v3730_v22  ;;  %v3722_v47 = vcombine.high %v3718_v29, %v3718_v29  ;;  %3794 = vst [vmem:[%s6710_s6 + $0x37] sm:$0x1] %v3720_v16 }
 0x86e   :  { %3791 = vst [vmem:[%s6710_s6 + $0x1f] sm:$0x1] %v3721_v62  ;;  %v3739_v58 = vcombine.high %v3737_v36, %v3737_v36  ;;  %v3753_v63 = vrot.slane %v3737_v36, %v5768_v8  ;;  %3993 = vst.sshfl [vmem:[%s6710_s6 + $0x67] sm:$0x1 pattern:$0x73625140] %v3737_v36 }
 0x86f   :  { %v3760_v46 = vrot.slane %v3738_v2, %v5768_v8  ;;  %v3768_v49 = vcombine.high %v3746_v39, %v3746_v39  ;;  %3992 = vst.sshfl [vmem:[%s6710_s6 + $0x4f] sm:$0x1 pattern:$0x73625140] %v3738_v2  ;;  %3795 = vst [vmem:[%s6710_s6 + $0x3f] sm:$0x1] %v3722_v47 }
 0x870   :  { %v3767_v50 = vrot.slane %v3739_v58, %v5768_v8  ;;  %v3769_v54 = vcombine.high %v3753_v63, %v3753_v63  ;;  %3994 = vst.sshfl [vmem:[%s6710_s6 + $0x6f] sm:$0x1 pattern:$0x73625140] %v3739_v58 }
 0x871   :  { %v3770_v59 = vcombine.high %v3760_v46, %v3760_v46  ;;  %3798 = vst [vmem:[%s6710_s6 + $0x57] sm:$0x1] %v3768_v49 }
 0x872   :  { %v3771_v0 = vcombine.high %v3767_v50, %v3767_v50  ;;  %3802 = vst [vmem:[%s6710_s6 + $0x77] sm:$0x1] %v3769_v54 }
 0x873   :  { %3799 = vst [vmem:[%s6710_s6 + $0x5f] sm:$0x1] %v3770_v59 }
 0x874   :  { %3803 = vst [vmem:[%s6710_s6 + $0x7f] sm:$0x1] %v3771_v0 }
 0x875 PF:  {}

</bundles_post_ra>
